<compile_context>
chip_gen: v5e
topology: v5e:2x2
jax: 0.10.0
libtpu: 0.0.40
codegen_flags: <defaults>
</compile_context>

<pallas_src>
import jax
import jax.numpy as jnp
from jax.experimental import pallas as pl
from jax.experimental.pallas import tpu as pltpu

# ----- Hyperparameters (small shapes consistent with the module) -------------
VECTOR_SIZE = 16          # vectorSize
LABEL_SIZE  = 5           # labelSize
W1   = 8                  # w1  (conv1 out channels)
WD1  = 3                  # wd1 (conv kernel width; odd -> 'same' centre tap)
H1P  = 2                  # h1  (pool1 window along H)
W4   = 32                 # w4
LD1, LD2, LD3, LD4 = 16, 32, 16, 8
BATCH = 512               # demo batch (any batch works; wrapper pads to TB)
TB    = 256               # batch tile per grid step (multiple of MXU rows)

C2   = 2 * W1                     # channels after conv2            = 16
H1   = VECTOR_SIZE // H1P         # H after pool1                   = 8
H2   = H1 // 2                    # H after pool2                   = 4
FLAT = C2 * H2                    # flat_size                       = 64
N_O1 = 2 * H2 * W1                # convT1 output (W1 ch x 2*H2 pos) = 64
BN_EPS = 1e-5

# fused-step widths
N_S1 = W4 + LD2                   # [hd | c1]            = 64
N_S2 = FLAT + LD3                 # [f  | c2]            = 80
N_S3 = N_O1 + LD4                 # [o1 | c3]            = 72
N_S4 = VECTOR_SIZE + LABEL_SIZE   # [recon_pre | logits] = 21
OUT_PAD = 128                     # lane-dense padded packed-output width

# packed output lane offsets: [mu | logvar | recon | logits | pad]
_O_MU = 0
_O_LV = LD1                       # 16
_O_RC = 2 * LD1                   # 32
_O_LG = 2 * LD1 + VECTOR_SIZE     # 48
_O_END = _O_LG + LABEL_SIZE       # 53

# row offsets inside the packed matrix slab
_R_W2  = 0                        # (64, 128) conv2 as one block matmul
_R_WE  = _R_W2 + W1 * H1          # (64, 32)  fc_encoder
_R_MLV = _R_WE + FLAT             # (32, 32)  [fc_mu | fc_logvar], encoder BN folded
_R_S1  = _R_MLV + W4              # (16, 64)  [fc_dec1 | cls1]
_R_S2  = _R_S1 + LD1              # (64, 80)  blockdiag(fc_dec2, cls2), BNs folded
_R_S3  = _R_S2 + N_S1             # (80, 72)  blockdiag(convT1, cls3), BN folded
_R_S4  = _R_S3 + N_S2             # (72, 21)  blockdiag(convT2, cls4), BN folded
_R_END = _R_S4 + N_S3             # 392


# ------------------------------- Pallas kernel -------------------------------
def vae_kernel(xp_ref, eps_ref, wm_ref, wr_ref, out_ref):
    f32 = jnp.float32
    relu = lambda v: jnp.maximum(v, 0.0)
    H = W1 * H1   # 64

    # conv1 (W==1 'same' -> centre tap) + ReLU + MaxPool(h1).
    # xp_ref: (TB, 128) = [xa | xb] pre-tiled in the wrapper, lane = c*H1 + m1.
    # ReLU and the shared per-channel bias are monotone, so the pool-1 max is
    # taken on the pre-activations: pure VPU, no lane concatenates in-kernel.
    XP = xp_ref[...]                                                        # (TB, 128)
    M = wr_ref[0:1, :] * XP                                                 # one 128-lane mul
    P1 = relu(jnp.maximum(M[:, 0:H], M[:, H:2 * H]) + wr_ref[1:2, 0:H])     # (TB, 64)

    # conv2 (centre tap) at every H1 position as ONE matmul; pool2 = max of halves.
    A2 = relu(jnp.dot(P1, wm_ref[_R_W2:_R_WE, :], preferred_element_type=f32)
              + wr_ref[2:3, :])                                             # (TB, 128)
    P2 = jnp.maximum(A2[:, 0:FLAT], A2[:, FLAT:2 * FLAT])                   # (TB, 64)

    # fc_encoder Linear + ReLU (its BatchNorm is folded into the mu/logvar weights)
    ENC = relu(jnp.dot(P2, wm_ref[_R_WE:_R_MLV, 0:W4], preferred_element_type=f32)
               + wr_ref[3:4, 0:W4])                                         # (TB, 32)

    # fused fc_mu / fc_logvar; stored immediately so the vst overlaps the 4-dot chain.
    MLV = (jnp.dot(ENC, wm_ref[_R_MLV:_R_S1, 0:2 * LD1], preferred_element_type=f32)
           + wr_ref[4:5, 0:2 * LD1])                                        # (TB, 32)
    out_ref[:, _O_MU:_O_RC] = MLV                                           # [mu | logvar]

    mu = MLV[:, 0:LD1]
    logvar = MLV[:, LD1:2 * LD1]

    # reparameterize
    z = mu + eps_ref[...] * jnp.exp(0.5 * logvar)                           # (TB, 16)

    # fused decoder + classifier chain (block-diagonal weights, eval-mode dropout)
    S1 = relu(jnp.dot(z, wm_ref[_R_S1:_R_S2, 0:N_S1], preferred_element_type=f32)
              + wr_ref[5:6, 0:N_S1])                                        # [hd | c1]
    S2 = relu(jnp.dot(S1, wm_ref[_R_S2:_R_S3, 0:N_S2], preferred_element_type=f32)
              + wr_ref[6:7, 0:N_S2])                                        # [f  | c2]
    S3 = relu(jnp.dot(S2, wm_ref[_R_S3:_R_S4, 0:N_S3], preferred_element_type=f32)
              + wr_ref[7:8, 0:N_S3])                                        # [o1 | c3]
    S4 = (jnp.dot(S3, wm_ref[_R_S4:_R_END, 0:N_S4], preferred_element_type=f32)
          + wr_ref[8:9, 0:N_S4])                                            # (TB, 21)

    # sigmoid with the divide routed to the EUP (exp already lives there)
    recon = pl.reciprocal(1.0 + jnp.exp(-S4[:, 0:VECTOR_SIZE]), approx=True)
    out_ref[:, _O_RC:_O_LG] = recon
    out_ref[:, _O_LG:_O_END] = S4[:, VECTOR_SIZE:N_S4]                      # logits


# ------------------------------ parameter init --------------------------------
def build_params(key):
    keys = iter(jax.random.split(key, 40))

    def nrm(shape, scale=0.1):
        return (scale * jax.random.normal(next(keys), shape)).astype(jnp.float32)

    return {
        "conv1_w": nrm((W1, 1, 1, WD1)),    "conv1_b": nrm((W1,)),
        "conv2_w": nrm((C2, W1, 1, WD1)),   "conv2_b": nrm((C2,)),
        "fc_enc_w": nrm((W4, FLAT)),        "fc_enc_b": nrm((W4,)),
        "bn_e_gamma": 1.0 + nrm((W4,)),     "bn_e_beta": nrm((W4,)),
        "fc_mu_w": nrm((LD1, W4)),          "fc_mu_b": nrm((LD1,)),
        "fc_lv_w": nrm((LD1, W4)),          "fc_lv_b": nrm((LD1,)),
        "fc_dec1_w": nrm((W4, LD1)),        "fc_dec1_b": nrm((W4,)),
        "bn_d_gamma": 1.0 + nrm((W4,)),     "bn_d_beta": nrm((W4,)),
        "fc_dec2_w": nrm((FLAT, W4)),       "fc_dec2_b": nrm((FLAT,)),
        "convT1_w": nrm((C2, W1, 2, WD1)),  "convT1_b": nrm((W1,)),
        "convT2_w": nrm((W1, 1, H1P, WD1)), "convT2_b": nrm((1,)),
        "cls1_w": nrm((LD2, LD1)),          "cls1_b": nrm((LD2,)),
        "bn_c1_gamma": 1.0 + nrm((LD2,)),   "bn_c1_beta": nrm((LD2,)),
        "cls2_w": nrm((LD3, LD2)),          "cls2_b": nrm((LD3,)),
        "bn_c2_gamma": 1.0 + nrm((LD3,)),   "bn_c2_beta": nrm((LD3,)),
        "cls3_w": nrm((LD4, LD3)),          "cls3_b": nrm((LD4,)),
        "bn_c3_gamma": 1.0 + nrm((LD4,)),   "bn_c3_beta": nrm((LD4,)),
        "cls4_w": nrm((LABEL_SIZE, LD4)),   "cls4_b": nrm((LABEL_SIZE,)),
    }


def _bn_affine(gamma, beta):
    # eval-mode BN with freshly-initialized running stats (mean 0, var 1)
    return gamma / jnp.sqrt(1.0 + BN_EPS), beta


# ------------------- one-time parameter packing (layout plumbing) -------------------
def pack_params(p):
    f32 = jnp.float32
    cw = WD1 // 2

    # conv1 centre tap expanded to the (c*H1 + m1) lane layout
    w1c = p["conv1_w"][:, 0, 0, cw]                       # (W1,)
    w1row = jnp.repeat(w1c, H1)                           # (64,)
    b1row = jnp.repeat(p["conv1_b"], H1)                  # (64,)

    # conv2 centre tap as ONE block matmul over all H1 positions:
    #   W2big[c*H1 + m1, u*FLAT + o*H2 + m] = [m1 == 2m + u] * conv2_w[o, c]
    w2c = p["conv2_w"][:, :, 0, cw]                       # (C2, W1)  [o, c]
    m1g = jnp.arange(H1)[:, None, None]
    ug = jnp.arange(2)[None, :, None]
    mg = jnp.arange(H2)[None, None, :]
    sel1 = (m1g == 2 * mg + ug).astype(f32)               # (H1, 2, H2)
    W2big = (w2c.T[:, None, None, :, None] *
             sel1[None, :, :, None, :]).reshape(W1 * H1, 2 * FLAT)          # (64, 128)
    b2row = jnp.tile(jnp.repeat(p["conv2_b"], H2), 2)     # (128,)

    # fc_encoder; its BN folds into the fused mu/logvar weights
    We = p["fc_enc_w"].T                                  # (FLAT, W4)
    be = p["fc_enc_b"]
    se, she = _bn_affine(p["bn_e_gamma"], p["bn_e_beta"])
    Wmulv = jnp.concatenate([se[:, None] * p["fc_mu_w"].T,
                             se[:, None] * p["fc_lv_w"].T], axis=1)         # (W4, 32)
    bmulv = jnp.concatenate([she @ p["fc_mu_w"].T + p["fc_mu_b"],
                             she @ p["fc_lv_w"].T + p["fc_lv_b"]])          # (32,)

    sd,  shd  = _bn_affine(p["bn_d_gamma"],  p["bn_d_beta"])
    sc1, shc1 = _bn_affine(p["bn_c1_gamma"], p["bn_c1_beta"])
    sc2, shc2 = _bn_affine(p["bn_c2_gamma"], p["bn_c2_beta"])
    sc3, shc3 = _bn_affine(p["bn_c3_gamma"], p["bn_c3_beta"])

    # step 1: z -> [hd | c1]
    Ws1 = jnp.concatenate([p["fc_dec1_w"].T, p["cls1_w"].T], axis=1)        # (16, 64)
    bs1 = jnp.concatenate([p["fc_dec1_b"], p["cls1_b"]])

    # step 2: [hd | c1] -> [f | c2]    (BN_d folded into fc_dec2, BN_c1 into cls2)
    Wd2f = sd[:, None] * p["fc_dec2_w"].T                                   # (W4, FLAT)
    bd2f = shd @ p["fc_dec2_w"].T + p["fc_dec2_b"]
    Wc2f = sc1[:, None] * p["cls2_w"].T                                     # (LD2, LD3)
    bc2f = shc1 @ p["cls2_w"].T + p["cls2_b"]
    Ws2 = jnp.zeros((N_S1, N_S2), f32)
    Ws2 = Ws2.at[0:W4, 0:FLAT].set(Wd2f).at[W4:N_S1, FLAT:N_S2].set(Wc2f)
    bs2 = jnp.concatenate([bd2f, bc2f])

    # step 3: [f | c2] -> [o1 | c3]
    #   convT1 (kH=2, stride 2, centre W tap):
    #   WT1[c*H2 + m, o*(2*H2) + p1] = [p1 == 2m + t] * convT1_w[c, o, t, cw]
    wt1 = p["convT1_w"][:, :, :, cw]                                        # (C2, W1, 2)
    sel2 = (jnp.arange(2 * H2)[None, :, None] ==
            2 * jnp.arange(H2)[:, None, None] +
            jnp.arange(2)[None, None, :]).astype(f32)                       # (H2, 8, 2)
    WT1 = jnp.einsum("mpt,cot->cmop", sel2, wt1).reshape(FLAT, N_O1)        # (64, 64)
    bt1row = jnp.repeat(p["convT1_b"], 2 * H2)                              # (64,)
    Wc3f = sc2[:, None] * p["cls3_w"].T                                     # (LD3, LD4)
    bc3f = shc2 @ p["cls3_w"].T + p["cls3_b"]
    Ws3 = jnp.zeros((N_S2, N_S3), f32)
    Ws3 = Ws3.at[0:FLAT, 0:N_O1].set(WT1).at[FLAT:N_S2, N_O1:N_S3].set(Wc3f)
    bs3 = jnp.concatenate([bt1row, bc3f])

    # step 4: [o1 | c3] -> [recon_pre | logits]
    #   convT2 (kH=h1, stride h1, centre W tap):
    #   WT2[o*(2*H2) + p1, 2*p1 + s] = convT2_w[o, 0, s, cw]
    wt2 = p["convT2_w"][:, 0, :, cw]                                        # (W1, H1P)
    sel3 = (jnp.arange(VECTOR_SIZE)[None, :, None] ==
            2 * jnp.arange(2 * H2)[:, None, None] +
            jnp.arange(H1P)[None, None, :]).astype(f32)                     # (8, 16, 2)
    WT2 = jnp.einsum("phs,os->oph", sel3, wt2).reshape(N_O1, VECTOR_SIZE)   # (64, 16)
    Wc4f = sc3[:, None] * p["cls4_w"].T                                     # (LD4, 5)
    bc4f = shc3 @ p["cls4_w"].T + p["cls4_b"]
    Ws4 = jnp.zeros((N_S3, N_S4), f32)
    Ws4 = Ws4.at[0:N_O1, 0:VECTOR_SIZE].set(WT2)
    Ws4 = Ws4.at[N_O1:N_S3, VECTOR_SIZE:N_S4].set(Wc4f)
    bs4 = jnp.concatenate([jnp.full((VECTOR_SIZE,), p["convT2_b"][0]), bc4f])

    # ---- pack everything into two slabs (1 matrix slab + 1 row slab) ----
    wmat = jnp.zeros((_R_END, 128), f32)
    for r0, m in ((_R_W2, W2big), (_R_WE, We), (_R_MLV, Wmulv), (_R_S1, Ws1),
                  (_R_S2, Ws2), (_R_S3, Ws3), (_R_S4, Ws4)):
        k, n = m.shape
        wmat = wmat.at[r0:r0 + k, 0:n].set(m)

    wrow = jnp.zeros((16, 128), f32)
    # row 0: conv1 centre-tap weights replicated in BOTH 64-lane halves so the
    # kernel does one 128-lane multiply before the pool-1 half-max.
    wrow = wrow.at[0, 0:64].set(w1row).at[0, 64:128].set(w1row)
    for i, v in enumerate((b1row, b2row, be, bmulv, bs1, bs2, bs3, bs4), start=1):
        wrow = wrow.at[i, 0:v.shape[0]].set(v)
    return wmat, wrow


# ------------------------------ wrapper (glue) --------------------------------
def vae_forward(x, eps, wmat, wrow, *, tb=TB):
    B = x.shape[0]
    nb = pl.cdiv(B, tb)
    b_pad = nb * tb

    # Layout plumbing: pre-tile x to the (B, 128) [xa | xb] lane layout where
    #   xa[b, c*H1 + m1] = x[b, 2*m1]   and   xb[b, c*H1 + m1] = x[b, 2*m1 + 1]
    # so the pool-1 partners live in opposite 64-lane halves and no in-kernel
    # lane concatenation is needed.
    xa = jnp.tile(x[:, 0::2], (1, W1))                    # (B, 64)
    xb = jnp.tile(x[:, 1::2], (1, W1))                    # (B, 64)
    xp = jnp.concatenate([xa, xb], axis=1)                # (B, 128)

    if b_pad != B:
        xp = jnp.pad(xp, ((0, b_pad - B), (0, 0)))
        eps = jnp.pad(eps, ((0, b_pad - B), (0, 0)))

    out = pl.pallas_call(
        vae_kernel,
        out_shape=jax.ShapeDtypeStruct((b_pad, OUT_PAD), jnp.float32),
        grid=(nb,),
        in_specs=[
            pl.BlockSpec((tb, 2 * W1 * H1), lambda i: (i, 0)),   # x tile (TB, 128)
            pl.BlockSpec((tb, LD1), lambda i: (i, 0)),           # eps tile (TB, 16)
            pl.BlockSpec((_R_END, 128), lambda i: (0, 0)),       # weight slab, resident
            pl.BlockSpec((16, 128), lambda i: (0, 0)),           # bias/row slab, resident
        ],
        out_specs=pl.BlockSpec((tb, OUT_PAD), lambda i: (i, 0)),  # lane-dense packed out
        compiler_params=pltpu.CompilerParams(
            dimension_semantics=("parallel",)),   # shard batch tiles across TCs (v7x)
    )(xp, eps, wmat, wrow)

    mu = out[:B, _O_MU:_O_LV]
    logvar = out[:B, _O_LV:_O_RC]
    x_recon = out[:B, _O_RC:_O_LG]
    logits = out[:B, _O_LG:_O_END]
    # F.interpolate(size=vectorSize, mode='linear', align_corners=False) on an input
    # that already has length vectorSize is the exact identity -> nothing to do.
    return x_recon, logits, mu, logvar


# ---------------------- plain-JAX reference (PyTorch-style NCHW) ----------------------
def torch_style_reference(x, eps, p):
    cw = WD1 // 2
    B = x.shape[0]
    relu = lambda v: jnp.maximum(v, 0.0)

    def bn(v, gamma, beta):
        return v / jnp.sqrt(1.0 + BN_EPS) * gamma + beta

    c1c = p["conv1_w"][:, 0, 0, cw]
    a1 = relu(x[:, None, :] * c1c[None, :, None] + p["conv1_b"][None, :, None])
    p1 = a1.reshape(B, W1, H1, H1P).max(axis=-1)
    c2c = p["conv2_w"][:, :, 0, cw]
    a2 = relu(jnp.einsum("oc,bch->boh", c2c, p1) + p["conv2_b"][None, :, None])
    p2 = a2.reshape(B, C2, H2, 2).max(axis=-1)
    flat = p2.reshape(B, FLAT)
    e = bn(relu(flat @ p["fc_enc_w"].T + p["fc_enc_b"]), p["bn_e_gamma"], p["bn_e_beta"])
    mu = e @ p["fc_mu_w"].T + p["fc_mu_b"]
    logvar = e @ p["fc_lv_w"].T + p["fc_lv_b"]
    z = mu + eps * jnp.exp(0.5 * logvar)

    hd = bn(relu(z @ p["fc_dec1_w"].T + p["fc_dec1_b"]), p["bn_d_gamma"], p["bn_d_beta"])
    f = relu(hd @ p["fc_dec2_w"].T + p["fc_dec2_b"]).reshape(B, C2, H2)
    t1c = p["convT1_w"][:, :, :, cw]
    o1 = relu(jnp.einsum("bim,iot->bomt", f, t1c).reshape(B, W1, 2 * H2)
              + p["convT1_b"][None, :, None])
    t2c = p["convT2_w"][:, 0, :, cw]
    o2 = jnp.einsum("bip,is->bps", o1, t2c).reshape(B, VECTOR_SIZE) + p["convT2_b"][0]
    recon = jax.nn.sigmoid(o2)

    c = bn(relu(z @ p["cls1_w"].T + p["cls1_b"]), p["bn_c1_gamma"], p["bn_c1_beta"])
    c = bn(relu(c @ p["cls2_w"].T + p["cls2_b"]), p["bn_c2_gamma"], p["bn_c2_beta"])
    c = bn(relu(c @ p["cls3_w"].T + p["cls3_b"]), p["bn_c3_gamma"], p["bn_c3_beta"])
    logits = c @ p["cls4_w"].T + p["cls4_b"]
    return recon, logits, mu, logvar


if __name__ == "__main__":
    key = jax.random.PRNGKey(0)
    pkey, xkey, ekey = jax.random.split(key, 3)
    params = build_params(pkey)
    x = jax.random.uniform(xkey, (BATCH, VECTOR_SIZE), dtype=jnp.float32)
    eps = jax.random.normal(ekey, (BATCH, LD1), dtype=jnp.float32)  # reparam noise

    wmat, wrow = pack_params(params)                      # one-time weight packing
    outs = jax.block_until_ready(vae_forward(x, eps, wmat, wrow))
    refs = torch_style_reference(x, eps, params)
    for name, got, want in zip(["x_recon", "classification", "mu", "logvar"], outs, refs):
        assert got.shape == want.shape, (name, got.shape, want.shape)
        err = float(jnp.max(jnp.abs(got - want)))
        assert err < 2e-3, (name, err)
    print("KERNEL_OK")
</pallas_src>

<mosaic_0001>
module attributes {stable_mosaic.version = 11 : i64} {
  func.func @vae_kernel(%arg0: i32, %arg1: memref<256x128xf32, #tpu.memory_space<vmem>>, %arg2: memref<256x16xf32, #tpu.memory_space<vmem>>, %arg3: memref<392x128xf32, #tpu.memory_space<vmem>>, %arg4: memref<16x128xf32, #tpu.memory_space<vmem>>, %arg5: memref<256x128xf32, #tpu.memory_space<vmem>>) attributes {dimension_semantics = [#tpu.dimension_semantics<parallel>], iteration_bounds = array<i64: 2>, scalar_prefetch = 0 : i64, scratch_operands = 0 : i64, tpu.core_type = #tpu.core_type<tc>, window_params = [{transform_indices = @transform_0, window_bounds = array<i64: 256, 128>}, {transform_indices = @transform_1, window_bounds = array<i64: 256, 16>}, {pipeline_mode = #tpu.pipeline_mode<synchronous>, transform_indices = @transform_2, window_bounds = array<i64: 392, 128>}, {pipeline_mode = #tpu.pipeline_mode<synchronous>, transform_indices = @transform_3, window_bounds = array<i64: 16, 128>}, {transform_indices = @transform_4, window_bounds = array<i64: 256, 128>}]} {
    %c0 = arith.constant 0 : index
    %c0_0 = arith.constant 0 : index
    %0 = vector.load %arg1[%c0, %c0_0] : memref<256x128xf32, #tpu.memory_space<vmem>>, vector<256x128xf32>
    %c0_1 = arith.constant 0 : index
    %c0_2 = arith.constant 0 : index
    %1 = vector.load %arg4[%c0_1, %c0_2] : memref<16x128xf32, #tpu.memory_space<vmem>>, vector<1x128xf32>
    %2 = vector.broadcast %1 : vector<1x128xf32> to vector<256x128xf32>
    %3 = arith.mulf %2, %0 : vector<256x128xf32>
    %4 = vector.extract_strided_slice %3 {offsets = [0, 0], sizes = [256, 64], strides = [1, 1]} : vector<256x128xf32> to vector<256x64xf32>
    %5 = vector.extract_strided_slice %3 {offsets = [0, 64], sizes = [256, 64], strides = [1, 1]} : vector<256x128xf32> to vector<256x64xf32>
    %6 = arith.maximumf %4, %5 : vector<256x64xf32>
    %c1 = arith.constant 1 : index
    %c0_3 = arith.constant 0 : index
    %7 = vector.load %arg4[%c1, %c0_3] : memref<16x128xf32, #tpu.memory_space<vmem>>, vector<1x64xf32>
    %8 = vector.broadcast %7 : vector<1x64xf32> to vector<256x64xf32>
    %9 = arith.addf %6, %8 : vector<256x64xf32>
    %cst = arith.constant 0.000000e+00 : f32
    %10 = vector.broadcast %cst : f32 to vector<256x64xf32>
    %11 = arith.maximumf %9, %10 : vector<256x64xf32>
    %c0_4 = arith.constant 0 : index
    %c0_5 = arith.constant 0 : index
    %12 = vector.load %arg3[%c0_4, %c0_5] : memref<392x128xf32, #tpu.memory_space<vmem>>, vector<64x128xf32>
    %cst_6 = arith.constant dense<0.000000e+00> : vector<256x128xf32>
    %13 = tpu.matmul %11, %12, %cst_6 {dimension_numbers = #tpu.dot_dimension_numbers<[1], [0], [0], [1], [0, 0, 1, 1], [], []>} : vector<256x64xf32>, vector<64x128xf32>, vector<256x128xf32> -> vector<256x128xf32>
    %c2 = arith.constant 2 : index
    %c0_7 = arith.constant 0 : index
    %14 = vector.load %arg4[%c2, %c0_7] : memref<16x128xf32, #tpu.memory_space<vmem>>, vector<1x128xf32>
    %15 = vector.broadcast %14 : vector<1x128xf32> to vector<256x128xf32>
    %16 = arith.addf %13, %15 : vector<256x128xf32>
    %cst_8 = arith.constant 0.000000e+00 : f32
    %17 = vector.broadcast %cst_8 : f32 to vector<256x128xf32>
    %18 = arith.maximumf %16, %17 : vector<256x128xf32>
    %19 = vector.extract_strided_slice %18 {offsets = [0, 0], sizes = [256, 64], strides = [1, 1]} : vector<256x128xf32> to vector<256x64xf32>
    %20 = vector.extract_strided_slice %18 {offsets = [0, 64], sizes = [256, 64], strides = [1, 1]} : vector<256x128xf32> to vector<256x64xf32>
    %21 = arith.maximumf %19, %20 : vector<256x64xf32>
    %c64 = arith.constant 64 : index
    %c0_9 = arith.constant 0 : index
    %22 = vector.load %arg3[%c64, %c0_9] : memref<392x128xf32, #tpu.memory_space<vmem>>, vector<64x32xf32>
    %cst_10 = arith.constant dense<0.000000e+00> : vector<256x32xf32>
    %23 = tpu.matmul %21, %22, %cst_10 {dimension_numbers = #tpu.dot_dimension_numbers<[1], [0], [0], [1], [0, 0, 1, 1], [], []>} : vector<256x64xf32>, vector<64x32xf32>, vector<256x32xf32> -> vector<256x32xf32>
    %c3 = arith.constant 3 : index
    %c0_11 = arith.constant 0 : index
    %24 = vector.load %arg4[%c3, %c0_11] : memref<16x128xf32, #tpu.memory_space<vmem>>, vector<1x32xf32>
    %25 = vector.broadcast %24 : vector<1x32xf32> to vector<256x32xf32>
    %26 = arith.addf %23, %25 : vector<256x32xf32>
    %cst_12 = arith.constant 0.000000e+00 : f32
    %27 = vector.broadcast %cst_12 : f32 to vector<256x32xf32>
    %28 = arith.maximumf %26, %27 : vector<256x32xf32>
    %c128 = arith.constant 128 : index
    %c0_13 = arith.constant 0 : index
    %29 = vector.load %arg3[%c128, %c0_13] : memref<392x128xf32, #tpu.memory_space<vmem>>, vector<32x32xf32>
    %cst_14 = arith.constant dense<0.000000e+00> : vector<256x32xf32>
    %30 = tpu.matmul %28, %29, %cst_14 {dimension_numbers = #tpu.dot_dimension_numbers<[1], [0], [0], [1], [0, 0, 1, 1], [], []>} : vector<256x32xf32>, vector<32x32xf32>, vector<256x32xf32> -> vector<256x32xf32>
    %c4 = arith.constant 4 : index
    %c0_15 = arith.constant 0 : index
    %31 = vector.load %arg4[%c4, %c0_15] : memref<16x128xf32, #tpu.memory_space<vmem>>, vector<1x32xf32>
    %32 = vector.broadcast %31 : vector<1x32xf32> to vector<256x32xf32>
    %33 = arith.addf %30, %32 : vector<256x32xf32>
    %c0_16 = arith.constant 0 : index
    %c0_17 = arith.constant 0 : index
    %34 = vector.load %arg5[%c0_16, %c0_17] : memref<256x128xf32, #tpu.memory_space<vmem>>, vector<256x32xf32>
    tpu.vector_store %arg5[%c0_16, %c0_17], %33 {strides = array<i32>} : memref<256x128xf32, #tpu.memory_space<vmem>>, vector<256x32xf32>,
    %35 = vector.extract_strided_slice %33 {offsets = [0, 0], sizes = [256, 16], strides = [1, 1]} : vector<256x32xf32> to vector<256x16xf32>
    %36 = vector.extract_strided_slice %33 {offsets = [0, 16], sizes = [256, 16], strides = [1, 1]} : vector<256x32xf32> to vector<256x16xf32>
    %c0_18 = arith.constant 0 : index
    %c0_19 = arith.constant 0 : index
    %37 = vector.load %arg2[%c0_18, %c0_19] : memref<256x16xf32, #tpu.memory_space<vmem>>, vector<256x16xf32>
    %cst_20 = arith.constant 5.000000e-01 : f32
    %38 = vector.broadcast %cst_20 : f32 to vector<256x16xf32>
    %39 = arith.mulf %38, %36 : vector<256x16xf32>
    %40 = math.exp %39 : vector<256x16xf32>
    %41 = arith.mulf %37, %40 : vector<256x16xf32>
    %42 = arith.addf %35, %41 : vector<256x16xf32>
    %c160 = arith.constant 160 : index
    %c0_21 = arith.constant 0 : index
    %43 = vector.load %arg3[%c160, %c0_21] : memref<392x128xf32, #tpu.memory_space<vmem>>, vector<16x64xf32>
    %cst_22 = arith.constant dense<0.000000e+00> : vector<256x64xf32>
    %44 = tpu.matmul %42, %43, %cst_22 {dimension_numbers = #tpu.dot_dimension_numbers<[1], [0], [0], [1], [0, 0, 1, 1], [], []>} : vector<256x16xf32>, vector<16x64xf32>, vector<256x64xf32> -> vector<256x64xf32>
    %c5 = arith.constant 5 : index
    %c0_23 = arith.constant 0 : index
    %45 = vector.load %arg4[%c5, %c0_23] : memref<16x128xf32, #tpu.memory_space<vmem>>, vector<1x64xf32>
    %46 = vector.broadcast %45 : vector<1x64xf32> to vector<256x64xf32>
    %47 = arith.addf %44, %46 : vector<256x64xf32>
    %cst_24 = arith.constant 0.000000e+00 : f32
    %48 = vector.broadcast %cst_24 : f32 to vector<256x64xf32>
    %49 = arith.maximumf %47, %48 : vector<256x64xf32>
    %c176 = arith.constant 176 : index
    %c0_25 = arith.constant 0 : index
    %50 = vector.load %arg3[%c176, %c0_25] : memref<392x128xf32, #tpu.memory_space<vmem>>, vector<64x80xf32>
    %cst_26 = arith.constant dense<0.000000e+00> : vector<256x80xf32>
    %51 = tpu.matmul %49, %50, %cst_26 {dimension_numbers = #tpu.dot_dimension_numbers<[1], [0], [0], [1], [0, 0, 1, 1], [], []>} : vector<256x64xf32>, vector<64x80xf32>, vector<256x80xf32> -> vector<256x80xf32>
    %c6 = arith.constant 6 : index
    %c0_27 = arith.constant 0 : index
    %52 = vector.load %arg4[%c6, %c0_27] : memref<16x128xf32, #tpu.memory_space<vmem>>, vector<1x80xf32>
    %53 = vector.broadcast %52 : vector<1x80xf32> to vector<256x80xf32>
    %54 = arith.addf %51, %53 : vector<256x80xf32>
    %cst_28 = arith.constant 0.000000e+00 : f32
    %55 = vector.broadcast %cst_28 : f32 to vector<256x80xf32>
    %56 = arith.maximumf %54, %55 : vector<256x80xf32>
    %c240 = arith.constant 240 : index
    %c0_29 = arith.constant 0 : index
    %57 = vector.load %arg3[%c240, %c0_29] : memref<392x128xf32, #tpu.memory_space<vmem>>, vector<80x72xf32>
    %cst_30 = arith.constant dense<0.000000e+00> : vector<256x72xf32>
    %58 = tpu.matmul %56, %57, %cst_30 {dimension_numbers = #tpu.dot_dimension_numbers<[1], [0], [0], [1], [0, 0, 1, 1], [], []>} : vector<256x80xf32>, vector<80x72xf32>, vector<256x72xf32> -> vector<256x72xf32>
    %c7 = arith.constant 7 : index
    %c0_31 = arith.constant 0 : index
    %59 = vector.load %arg4[%c7, %c0_31] : memref<16x128xf32, #tpu.memory_space<vmem>>, vector<1x72xf32>
    %60 = vector.broadcast %59 : vector<1x72xf32> to vector<256x72xf32>
    %61 = arith.addf %58, %60 : vector<256x72xf32>
    %cst_32 = arith.constant 0.000000e+00 : f32
    %62 = vector.broadcast %cst_32 : f32 to vector<256x72xf32>
    %63 = arith.maximumf %61, %62 : vector<256x72xf32>
    %c320 = arith.constant 320 : index
    %c0_33 = arith.constant 0 : index
    %64 = vector.load %arg3[%c320, %c0_33] : memref<392x128xf32, #tpu.memory_space<vmem>>, vector<72x21xf32>
    %cst_34 = arith.constant dense<0.000000e+00> : vector<256x21xf32>
    %65 = tpu.matmul %63, %64, %cst_34 {dimension_numbers = #tpu.dot_dimension_numbers<[1], [0], [0], [1], [0, 0, 1, 1], [], []>} : vector<256x72xf32>, vector<72x21xf32>, vector<256x21xf32> -> vector<256x21xf32>
    %c8 = arith.constant 8 : index
    %c0_35 = arith.constant 0 : index
    %66 = vector.load %arg4[%c8, %c0_35] : memref<16x128xf32, #tpu.memory_space<vmem>>, vector<1x21xf32>
    %67 = vector.broadcast %66 : vector<1x21xf32> to vector<256x21xf32>
    %68 = arith.addf %65, %67 : vector<256x21xf32>
    %69 = vector.extract_strided_slice %68 {offsets = [0, 0], sizes = [256, 16], strides = [1, 1]} : vector<256x21xf32> to vector<256x16xf32>
    %cst_36 = arith.constant 0.000000e+00 : f32
    %70 = vector.broadcast %cst_36 : f32 to vector<256x16xf32>
    %71 = arith.subf %70, %69 : vector<256x16xf32>
    %72 = math.exp %71 : vector<256x16xf32>
    %cst_37 = arith.constant 1.000000e+00 : f32
    %73 = vector.broadcast %cst_37 : f32 to vector<256x16xf32>
    %74 = arith.addf %73, %72 : vector<256x16xf32>
    %75 = tpu.reciprocal %74 {approx = true} : vector<256x16xf32> -> vector<256x16xf32>
    %c0_38 = arith.constant 0 : index
    %c32 = arith.constant 32 : index
    %76 = vector.load %arg5[%c0_38, %c32] : memref<256x128xf32, #tpu.memory_space<vmem>>, vector<256x16xf32>
    tpu.vector_store %arg5[%c0_38, %c32], %75 {strides = array<i32>} : memref<256x128xf32, #tpu.memory_space<vmem>>, vector<256x16xf32>,
    %77 = vector.extract_strided_slice %68 {offsets = [0, 16], sizes = [256, 5], strides = [1, 1]} : vector<256x21xf32> to vector<256x5xf32>
    %c0_39 = arith.constant 0 : index
    %c48 = arith.constant 48 : index
    %78 = vector.load %arg5[%c0_39, %c48] : memref<256x128xf32, #tpu.memory_space<vmem>>, vector<256x5xf32>
    tpu.vector_store %arg5[%c0_39, %c48], %77 {strides = array<i32>} : memref<256x128xf32, #tpu.memory_space<vmem>>, vector<256x5xf32>,
    return
  }
  func.func @transform_0(%arg0: i32) -> (i32, i32) {
    %c0_i32 = arith.constant 0 : i32
    %c0_i32_0 = arith.constant 0 : i32
    return %arg0, %c0_i32 : i32, i32
  }
  func.func @transform_1(%arg0: i32) -> (i32, i32) {
    %c0_i32 = arith.constant 0 : i32
    %c0_i32_0 = arith.constant 0 : i32
    return %arg0, %c0_i32 : i32, i32
  }
  func.func @transform_2(%arg0: i32) -> (i32, i32) {
    %c0_i32 = arith.constant 0 : i32
    %c0_i32_0 = arith.constant 0 : i32
    %c0_i32_1 = arith.constant 0 : i32
    return %c0_i32, %c0_i32_0 : i32, i32
  }
  func.func @transform_3(%arg0: i32) -> (i32, i32) {
    %c0_i32 = arith.constant 0 : i32
    %c0_i32_0 = arith.constant 0 : i32
    %c0_i32_1 = arith.constant 0 : i32
    return %c0_i32, %c0_i32_0 : i32, i32
  }
  func.func @transform_4(%arg0: i32) -> (i32, i32) {
    %c0_i32 = arith.constant 0 : i32
    %c0_i32_0 = arith.constant 0 : i32
    return %arg0, %c0_i32 : i32, i32
  }
}

</mosaic_0001>

<bundles_post_ra>
// kernel: tpu_custom_call.1
= control target key start
LH: loop header
LB: loop body
LE: loop exit
PB: predicated region body
PF: predicated region fallthrough
CT: control target
= control target key end

     0   :  { %9 = vsyncpa [#allocation3], 0  ;;  %s5678_s0 = inlined_call_operand.vmem [shape: f32[512,128], index: 0, kind: input, shape index: {}]   ;;  %s5679_s1 = inlined_call_operand.vmem [shape: f32[512,16], index: 1, kind: input, shape index: {}]   ;;  %s5680_s2 = inlined_call_operand.hbm [shape: f32[392,128], index: 2, kind: input, shape index: {}]   ;;  %s5681_s3 = inlined_call_operand.vmem [shape: f32[16,128], index: 3, kind: input, shape index: {}]   ;;  %s5682_s4 = inlined_call_operand.hbm [shape: f32[512,128], index: 4, kind: output, shape index: {}]  }
   0x1   :  { %10 = vsyncpa [#allocation4], 0 }
   0x2   :  { %12 = vsyncpa [#allocation4 + $0x1], 0  ;;  %s3961_s15 = smov 0   ;;  %s3963_s16 = smov 0  }
   0x3   :  { %s3965_s17 = smov 0   ;;  %s3967_s18 = smov 0  }
   0x4 LB: > { %s3982_s19 = sadd.s32 4294967295, %s3926_s18   ;;  %s3317_s20 = sadd.s32 4294967294, %s3926_s18   ;;  %s3926_s18 = sphi %s3967_s18, %s5688_s18   ;;  %s3922_s17 = sphi %s3965_s17, %s5687_s17   ;;  %s3918_s16 = sphi %s3963_s16, %s5686_s16   ;;  %s3914_s15 = sphi %s3961_s15, %s5685_s15  }
   0x5   : > { %s3986_s21 = sadd.s32 1, %s3926_s18   ;;  %s119_s22 = sadd.s32 1, %s3922_s17 }
   0x6   : > { %s116_s23 = ssub.s32 %s3926_s18, %s3986_s21  ;;  %p129_p0 = scmp.ne.s32.totalorder %s3922_s17, %s3918_s16 }
   0x7   : > { %p117_p1 = scmp.eq.s32.totalorder %s116_s23, 0  ;;  %p130_p2 = scmp.eq.s32.totalorder %s3982_s19, 1 }
   0x8   : > { %p135_p3 = scmp.ne.s32.totalorder %s3918_s16, %s3914_s15  ;;  %p136_p4 = scmp.eq.s32.totalorder %s3317_s20, 1 }
   0x9   : > { %s3997_s24 = scalar_select %p117_p1, %s3922_s17, %s119_s22  }
   0xa   : > { %p3999_p5 = por %p130_p2, %p129_p0  ;;  %p4003_p6 = por %p136_p4, %p135_p3 }
   0xb   : > { %p3318_p7 = scmp.ge.s32.totalorder %s3926_s18, 1  ;;  %p143_p8 = scmp.lt.s32.totalorder %s3926_s18, 3 }
   0xc   : > { %p3586_p9 = scmp.eq.s32.totalorder %s3982_s19, 0  ;;  %s154_s29 = sshll.u32 %s5680_s2, 4  ;;  %s155_s29 = int_to_ptr.hbm [resolvable:$true] %s154_s29 }
   0xd   : > { %p144_p10 = pnand %p3318_p7, %p143_p8  ;;  %s3928_s30 = smov [#allocation2]  }
   0xe   : > { %s156_s5 = sshll.u32 %s3928_s30, 4  ;;  %s3929_s6 = smov 128   ;;  %s157_s5 = int_to_ptr.vmem [resolvable:$true] %s156_s5 }
   0xf   : > { %p3578_p11 = pneg %p144_p10  ;;  %s3930_s7 = smov 8  }
  0x10   : > { %193 = sbr.rel (%p144_p10) target bundleno = 1919 (0x77f), region = 36 }
  0x11   : > { %p3579_p12 = pnand %p3586_p9, %p3578_p11 }
  0x13   : > { %3581 = dma.hbm_to_vmem [thread:$0]  (!%p3579_p12), %s155_s29, 6272, %s157_s5, [#allocation3], %s3929_s6, %s3929_s6, %s3930_s7  }
  0x15   : > { %3905 = dma.done.wait (%p3586_p9), [#allocation3], 6272  }
  0x16   : > { %3907 = vsyncadd (%p3586_p9), [#allocation3], 4294961024  ;;  %s3324_s8 = sshll.u32 %s3982_s19, 5  ;;  %v4034_v1 = vld [vmem:[%s5681_s3] ss:$0 sm:$0xff]  ;;  %s3931_s20 = smov 64  }
  0x17   : > { %p226_p13 = scmp.lt.s32.totalorder %s3324_s8, 63  ;;  %v537_v7 = vld [vmem:[#allocation2 + $0x38] sm:$0xff]  ;;  %v536_v10 = vld [vmem:[#allocation2 + $0x30] sm:$0xff]  ;;  %v535_v12 = vld [vmem:[#allocation2 + $0x28] sm:$0xff]  ;;  %vm540_vm0 = vcmask 523264   ;;  %vm1199_vm1 = vcmask 261120  }
  0x18   : > { %645 = vmatpush.msra.mxu0 %v537_v7  ;;  %v534_v13 = vld [vmem:[#allocation2 + $0x20] sm:$0xff]  ;;  %3558 = vmatpush.msra.mxu1 %v537_v7  ;;  %v533_v17 = vld [vmem:[#allocation2 + $0x18] sm:$0xff]  ;;  %v532_v36 = vld [vmem:[#allocation2 + $0x10] sm:$0xff]  ;;  %s222_s5 = sand.u32 1, %s3918_s16   ;;  %vm1765_vm2 = vcmask 130048   ;;  %vm2270_vm3 = vcmask 654336  }
  0x19   : > { %s5690_s8 = smov (!%p226_p13, %s3324_s8), 63  ;;  %v531_v37 = vld [vmem:[#allocation2 + $0x8] sm:$0xff]  ;;  %v530_v38 = vld [vmem:[#allocation2] sm:$0xff]  ;;  %s3323_s6 = sshll.u32 %s222_s5, 8  ;;  %vm2523_vm4 = vcmask 588800   ;;  %vm3021_vm5 = vcmask 392448  }
  0x1a   : > { %s3325_s9 = sshll.u32 %s5690_s8, 3  ;;  %646 = vmatpush.msra.mxu0 %v536_v10  ;;  %3559 = vmatpush.msra.mxu1 %v536_v10  ;;  %v4170_v53 = vld [vmem:[%s5681_s3 + $0x1] ss:$0 sm:$0xff]  ;;  %s4720_s11 = scalar_lea.vmem [#allocation5], %s3323_s6  ;;  %vm3182_vm6 = vcmask 433536  }
  0x1b   : > { %s4028_s12 = scalar_lea.vmem %s5678_s0, %s3325_s9  ;;  %s3933_s6 = smov 32  }
  0x1c   : > { %v238_v0 = vld [vmem:[%s4028_s12] sm:$0xff]  ;;  %v240_v2 = vld [vmem:[%s4028_s12 + $0x10] sm:$0xff]  ;;  %v239_v8 = vld [vmem:[%s4028_s12 + $0x8] sm:$0xff]  ;;  %647 = vmatpush.msra.mxu0 %v535_v12  ;;  %3560 = vmatpush.msra.mxu1 %v535_v12  ;;  %s3557_s7 = sshll.u32 %s3982_s19, 8  ;;  %s3228_s14 = sshll.u32 %s4720_s11, 4  ;;  %s3229_s14 = int_to_ptr.vmem [resolvable:$true] %s3228_s14 }
  0x1d   : > { %v4038_v3 = vmul.f32 %v4034_v1, %v238_v0  ;;  %v4041_v4 = vmul.f32 %v4034_v1, %v240_v2  ;;  %v242_v5 = vld [vmem:[%s4028_s12 + $0x20] sm:$0xff]  ;;  %v241_v9 = vld [vmem:[%s4028_s12 + $0x18] sm:$0xff]  ;;  %v243_v11 = vld [vmem:[%s4028_s12 + $0x28] sm:$0xff]  ;;  %v4057_v14 = vmul.f32 %v4034_v1, %v239_v8  ;;  %s3227_s13 = scalar_lea.hbm %s5682_s4, %s3557_s7  ;;  %s3216_s19 = scalar_lea.sflag [#allocation4], %s222_s5 }
  0x1e   : > { %v4045_v6 = vmul.f32 %v4034_v1, %v242_v5  ;;  %v4060_v15 = vmul.f32 %v4034_v1, %v241_v9  ;;  %v4063_v16 = vmul.f32 %v4034_v1, %v243_v11  ;;  %648 = vmatpush.msra.mxu0 %v534_v13  ;;  %v244_v18 = vld [vmem:[%s4028_s12 + $0x30] sm:$0xff]  ;;  %v245_v19 = vld [vmem:[%s4028_s12 + $0x38] sm:$0xff]  ;;  %v246_v20 = vld [vmem:[%s4028_s12 + $0x40] sm:$0xff]  ;;  %3561 = vmatpush.msra.mxu1 %v534_v13  ;;  %s3880_s27 = scalar_lea.hbm %s5682_s4, 512 }
  0x1f   : > { %336 = vrot.lane.b32.xlu0 %v4038_v3, %s3931_s20  ;;  %340 = vrot.lane.b32.xlu1 %v4041_v4, %s3931_s20  ;;  %v4075_v21 = vmul.f32 %v4034_v1, %v244_v18  ;;  %v4078_v22 = vmul.f32 %v4034_v1, %v245_v19  ;;  %v4081_v23 = vmul.f32 %v4034_v1, %v246_v20  ;;  %v247_v24 = vld [vmem:[%s4028_s12 + $0x48] sm:$0xff]  ;;  %v248_v25 = vld [vmem:[%s4028_s12 + $0x50] sm:$0xff] }
  0x20   : > { %344 = vrot.lane.b32.xlu2 %v4045_v6, %s3931_s20  ;;  %649 = vmatpush.msra.mxu0 %v533_v17  ;;  %v249_v26 = vld [vmem:[%s4028_s12 + $0x58] sm:$0xff]  ;;  %v4093_v27 = vmul.f32 %v4034_v1, %v247_v24  ;;  %v4096_v28 = vmul.f32 %v4034_v1, %v248_v25  ;;  %v250_v30 = vld [vmem:[%s4028_s12 + $0x60] sm:$0xff]  ;;  %v251_v31 = vld [vmem:[%s4028_s12 + $0x68] sm:$0xff] }
  0x21   : > { %3562 = vmatpush.msra.mxu1 %v533_v17  ;;  %v4099_v29 = vmul.f32 %v4034_v1, %v249_v26  ;;  %v4110_v32 = vmul.f32 %v4034_v1, %v250_v30  ;;  %v4113_v33 = vmul.f32 %v4034_v1, %v251_v31  ;;  %v252_v34 = vld [vmem:[%s4028_s12 + $0x70] sm:$0xff]  ;;  %v263_v39 = vld [vmem:[%s4028_s12 + $0xc8] sm:$0xff]  ;;  %v254_v41 = vld [vmem:[%s4028_s12 + $0x80] sm:$0xff] }
  0x22   : > { %v4121_v35 = vmul.f32 %v4034_v1, %v252_v34  ;;  %650 = vmatpush.msra.mxu0 %v532_v36  ;;  %v4127_v40 = vmul.f32 %v4034_v1, %v263_v39  ;;  %v264_v42 = vld [vmem:[%s4028_s12 + $0xd0] sm:$0xff]  ;;  %v4134_v43 = vmul.f32 %v4034_v1, %v254_v41  ;;  %v262_v45 = vld [vmem:[%s4028_s12 + $0xc0] sm:$0xff]  ;;  %v255_v46 = vld [vmem:[%s4028_s12 + $0x88] sm:$0xff] }
  0x23   : > { %3563 = vmatpush.msra.mxu1 %v532_v36  ;;  %v4137_v44 = vmul.f32 %v4034_v1, %v264_v42  ;;  %v4146_v47 = vmul.f32 %v4034_v1, %v262_v45  ;;  %v4151_v48 = vmul.f32 %v4034_v1, %v255_v46  ;;  %v253_v49 = vld [vmem:[%s4028_s12 + $0x78] sm:$0xff]  ;;  %v266_v50 = vld [vmem:[%s4028_s12 + $0xe0] sm:$0xff]  ;;  %v267_v55 = vld [vmem:[%s4028_s12 + $0xe8] sm:$0xff] }
  0x24   : > { %651 = vmatpush.msra.mxu0 %v531_v37  ;;  %v4158_v51 = vmul.f32 %v4034_v1, %v253_v49  ;;  %v4161_v52 = vmul.f32 %v4034_v1, %v266_v50  ;;  %v257_v54 = vld [vmem:[%s4028_s12 + $0x98] sm:$0xff]  ;;  %v4178_v58 = vmul.f32 %v4034_v1, %v267_v55  ;;  %v258_v0 = vld [vmem:[%s4028_s12 + $0xa0] sm:$0xff]  ;;  %v256_v12 = vld [vmem:[%s4028_s12 + $0x90] sm:$0xff] }
  0x25   : > { %3564 = vmatpush.msra.mxu1 %v531_v37  ;;  %v4175_v57 = vmul.f32 %v4034_v1, %v257_v54  ;;  %v265_v63 = vld [vmem:[%s4028_s12 + $0xd8] sm:$0xff]  ;;  %v4193_v5 = vmul.f32 %v4034_v1, %v258_v0  ;;  %v260_v25 = vld [vmem:[%s4028_s12 + $0xb0] sm:$0xff] }
  0x26   : > { %652 = vmatpush.msra.mxu0 %v530_v38  ;;  %v269_v13 = vld [vmem:[%s4028_s12 + $0xf8] sm:$0xff]  ;;  %v4221_v26 = vmul.f32 %v4034_v1, %v260_v25  ;;  %v268_v34 = vld [vmem:[%s4028_s12 + $0xf0] sm:$0xff] }
  0x27   : > { %338 = vrot.lane.b32.xlu0 %v4057_v14, %s3931_s20  ;;  %342 = vrot.lane.b32.xlu1 %v4060_v15, %s3931_s20  ;;  %v4210_v18 = vmul.f32 %v4034_v1, %v269_v13  ;;  %v4230_v37 = vmul.f32 %v4034_v1, %v268_v34 }
  0x28   : > { %346 = vrot.lane.b32.xlu2 %v4063_v16, %s3931_s20  ;;  %3565 = vmatpush.msra.mxu1 %v530_v38 }
  0x2f   : > { %348 = vrot.lane.b32.xlu0 %v4075_v21, %s3931_s20  ;;  %350 = vrot.lane.b32.xlu1 %v4078_v22, %s3931_s20 }
  0x30   : > { %352 = vrot.lane.b32.xlu2 %v4081_v23, %s3931_s20 }
  0x37   : > { %354 = vrot.lane.b32.xlu0 %v4093_v27, %s3931_s20  ;;  %356 = vrot.lane.b32.xlu1 %v4096_v28, %s3931_s20 }
  0x38   : > { %358 = vrot.lane.b32.xlu2 %v4099_v29, %s3931_s20 }
  0x3f   : > { %360 = vrot.lane.b32.xlu0 %v4110_v32, %s3931_s20  ;;  %362 = vrot.lane.b32.xlu1 %v4113_v33, %s3931_s20 }
  0x40   : > { %384 = vrot.lane.b32.xlu2 %v4146_v47, %s3931_s20 }
  0x47   : > { %364 = vrot.lane.b32.xlu0 %v4121_v35, %s3931_s20  ;;  %386 = vrot.lane.b32.xlu1 %v4127_v40, %s3931_s20 }
  0x48   : > { %366 = vrot.lane.b32.xlu2 %v4158_v51, %s3931_s20 }
  0x4f   : > { %368 = vrot.lane.b32.xlu1 %v4134_v43, %s3931_s20  ;;  %388 = vrot.lane.b32.xlu0 %v4137_v44, %s3931_s20 }
  0x57   : > { %370 = vrot.lane.b32.xlu0 %v4151_v48, %s3931_s20  ;;  %392 = vrot.lane.b32.xlu1 %v4161_v52, %s3931_s20 }
  0x5f   : > { %374 = vrot.lane.b32.xlu1 %v4175_v57, %s3931_s20  ;;  %394 = vrot.lane.b32.xlu0 %v4178_v58, %s3931_s20 }
  0x67   : > { %376 = vrot.lane.b32.xlu0 %v4193_v5, %s3931_s20  ;;  %398 = vrot.lane.b32.xlu1 %v4210_v18, %s3931_s20 }
  0x6f   : > { %380 = vrot.lane.b32.xlu1 %v4221_v26, %s3931_s20 }
  0x7a   : > { %v345_v20 = vpop.permute.xlu2 %344 }
  0x7b   : > { %v436_v31 = vmax.f32 %v4045_v6, %v345_v20  ;;  %v259_v6 = vld [vmem:[%s4028_s12 + $0xa8] sm:$0xff] }
  0x7c   : > { %v4239_v45 = vmul.f32 %v4034_v1, %v259_v6 }
  0x82   : > { %v347_v36 = vpop.permute.xlu2 %346 }
  0x83   : > { %v437_v39 = vmax.f32 %v4063_v16, %v347_v36 }
  0x85   : > { %v471_v41 = vadd.f32 %v4170_v53, %v437_v39 }
  0x87   : > { %v503_v46 = vmax.f32 %v471_v41, 0.0 }
  0x91   : > { %v337_v56 = vpop.permute.xlu0 %336  ;;  %v341_v62 = vpop.permute.xlu1 %340 }
  0x92   : > { %v432_v59 = vmax.f32 %v4038_v3, %v337_v56  ;;  %v4190_v3 = vmul.f32 %v4034_v1, %v265_v63  ;;  %v434_v9 = vmax.f32 %v4041_v4, %v341_v62 }
  0x94   : > { %v466_v60 = vadd.f32 %v4170_v53, %v432_v59  ;;  %390 = vrot.lane.b32.xlu2 %v4190_v3, %s3931_s20  ;;  %v468_v11 = vadd.f32 %v4170_v53, %v434_v9  ;;  %v353_v59 = vpop.permute.xlu2 %352 }
  0x96   : > { %v498_v61 = vmax.f32 %v466_v60, 0.0  ;;  %v500_v4 = vmax.f32 %v468_v11, 0.0 }
  0x98   : > { %3328 = vmatmul.msk.f32.vlgmr.msra.gmra.mxu0 %vm540_vm0, %v498_v61  ;;  %v440_v61 = vmax.f32 %v4081_v23, %v353_v59 }
  0x99   : > { %v339_v2 = vpop.permute.xlu0 %338  ;;  %v343_v17 = vpop.permute.xlu1 %342 }
  0x9a   : > { %v433_v7 = vmax.f32 %v4057_v14, %v339_v2  ;;  %v4207_v14 = vmul.f32 %v4034_v1, %v256_v12  ;;  %v435_v19 = vmax.f32 %v4060_v15, %v343_v17  ;;  %v470_v15 = vadd.f32 %v4170_v53, %v436_v31 }
  0x9c   : > { %v467_v8 = vadd.f32 %v4170_v53, %v433_v7  ;;  %372 = vrot.lane.b32.xlu2 %v4207_v14, %s3931_s20  ;;  %v469_v24 = vadd.f32 %v4170_v53, %v435_v19  ;;  %v502_v38 = vmax.f32 %v470_v15, 0.0  ;;  %v359_v2 = vpop.permute.xlu2 %358 }
  0x9e   : > { %v499_v10 = vmax.f32 %v467_v8, 0.0  ;;  %v501_v30 = vmax.f32 %v469_v24, 0.0 }
  0xa0   : > { %3329 = vmatmul.msk.f32.gmra.mxu0 %vm540_vm0, %v499_v10 }
  0xa1   : > { %v349_v42 = vpop.permute.xlu0 %348  ;;  %v351_v16 = vpop.permute.xlu1 %350 }
  0xa2   : > { %v438_v49 = vmax.f32 %v4075_v21, %v349_v42  ;;  %v439_v55 = vmax.f32 %v4078_v22, %v351_v16  ;;  %v474_v21 = vadd.f32 %v4170_v53, %v440_v61 }
  0xa4   : > { %396 = vrot.lane.b32.xlu2 %v4230_v37, %s3931_s20  ;;  %v472_v50 = vadd.f32 %v4170_v53, %v438_v49  ;;  %v473_v56 = vadd.f32 %v4170_v53, %v439_v55  ;;  %v506_v63 = vmax.f32 %v474_v21, 0.0  ;;  %v385_v10 = vpop.permute.xlu2 %384 }
  0xa5   : > { %v456_v13 = vmax.f32 %v4146_v47, %v385_v10 }
  0xa6   : > { %v504_v54 = vmax.f32 %v472_v50, 0.0  ;;  %v505_v60 = vmax.f32 %v473_v56, 0.0 }
  0xa8   : > { %3330 = vmatmul.msk.f32.gmra.mxu0 %vm540_vm0, %v500_v4  ;;  %v443_v4 = vmax.f32 %v4099_v29, %v359_v2 }
  0xa9   : > { %v355_v62 = vpop.permute.xlu0 %354  ;;  %v357_v7 = vpop.permute.xlu1 %356 }
  0xaa   : > { %v441_v0 = vmax.f32 %v4093_v27, %v355_v62  ;;  %v442_v9 = vmax.f32 %v4096_v28, %v357_v7  ;;  %v490_v27 = vadd.f32 %v4170_v53, %v456_v13  ;;  %v477_v28 = vadd.f32 %v4170_v53, %v443_v4 }
  0xac   : > { %378 = vrot.lane.b32.xlu2 %v4239_v45, %s3931_s20  ;;  %v475_v22 = vadd.f32 %v4170_v53, %v441_v0  ;;  %v476_v23 = vadd.f32 %v4170_v53, %v442_v9  ;;  %v522_v19 = vmax.f32 %v490_v27, 0.0  ;;  %v367_v34 = vpop.permute.xlu2 %366 }
  0xae   : > { %v507_v8 = vmax.f32 %v475_v22, 0.0  ;;  %v508_v17 = vmax.f32 %v476_v23, 0.0  ;;  %3352 = vmatmul.msk.f32.vlgmr.msra.gmra.mxu1 %vm540_vm0, %v522_v19 }
  0xb0   : > { %3331 = vmatmul.msk.f32.gmra.mxu0 %vm540_vm0, %v501_v30  ;;  %v509_v30 = vmax.f32 %v477_v28, 0.0 }
  0xb1   : > { %v361_v11 = vpop.permute.xlu0 %360  ;;  %v363_v12 = vpop.permute.xlu1 %362 }
  0xb2   : > { %v444_v31 = vmax.f32 %v4110_v32, %v361_v11  ;;  %v445_v41 = vmax.f32 %v4113_v33, %v363_v12 }
  0xb4   : > { %v478_v29 = vadd.f32 %v4170_v53, %v444_v31  ;;  %v479_v32 = vadd.f32 %v4170_v53, %v445_v41 }
  0xb6   : > { %v510_v39 = vmax.f32 %v478_v29, 0.0  ;;  %v511_v16 = vmax.f32 %v479_v32, 0.0 }
  0xb8   : > { %3332 = vmatmul.msk.f32.gmra.mxu0 %vm540_vm0, %v502_v38 }
  0xb9   : > { %v365_v20 = vpop.permute.xlu0 %364  ;;  %v387_v24 = vpop.permute.xlu1 %386 }
  0xba   : > { %v457_v25 = vmax.f32 %v4127_v40, %v387_v24 }
  0xbc   : > { %v491_v47 = vadd.f32 %v4170_v53, %v457_v25 }
  0xbe   : > { %v523_v15 = vmax.f32 %v491_v47, 0.0 }
  0xc0   : > { %3333 = vmatmul.msk.f32.gmra.mxu0 %vm540_vm0, %v503_v46  ;;  %3353 = vmatmul.msk.f32.gmra.mxu1 %vm540_vm0, %v523_v15 }
  0xc1   : > { %v389_v36 = vpop.permute.xlu0 %388  ;;  %v369_v42 = vpop.permute.xlu1 %368 }
  0xc2   : > { %v458_v38 = vmax.f32 %v4137_v44, %v389_v36  ;;  %v446_v44 = vmax.f32 %v4121_v35, %v365_v20 }
  0xc4   : > { %v492_v40 = vadd.f32 %v4170_v53, %v458_v38  ;;  %v480_v33 = vadd.f32 %v4170_v53, %v446_v44 }
  0xc6   : > { %v524_v6 = vmax.f32 %v492_v40, 0.0  ;;  %v512_v61 = vmax.f32 %v480_v33, 0.0 }
  0xc8   : > { %3334 = vmatmul.msk.f32.gmra.mxu0 %vm540_vm0, %v504_v54  ;;  %3354 = vmatmul.msk.f32.gmra.mxu1 %vm540_vm0, %v524_v6 }
  0xc9   : > { %v371_v55 = vpop.permute.xlu0 %370  ;;  %v393_v56 = vpop.permute.xlu1 %392 }
  0xca   : > { %v460_v59 = vmax.f32 %v4161_v52, %v393_v56  ;;  %v448_v52 = vmax.f32 %v4134_v43, %v369_v42  ;;  %v449_v11 = vmax.f32 %v4151_v48, %v371_v55  ;;  %v261_v48 = vld [vmem:[%s4028_s12 + $0xb8] sm:$0xff]  ;;  %s3932_s12 = smov 112  }
  0xcb   : > { %v4320_v47 = vmul.f32 %v4034_v1, %v261_v48 }
  0xd0   : > { %3335 = vmatmul.msk.f32.gmra.mxu0 %vm540_vm0, %v505_v60  ;;  %v494_v60 = vadd.f32 %v4170_v53, %v460_v59 }
  0xd2   : > { %v526_v21 = vmax.f32 %v494_v60, 0.0 }
  0xd8   : > { %3336 = vmatmul.msk.f32.gmra.mxu0 %vm540_vm0, %v506_v63  ;;  %v395_v63 = vpop.permute.xlu0 %394 }
  0xd9   : > { %v461_v0 = vmax.f32 %v4178_v58, %v395_v63  ;;  %v4298_v58 = vld [vmem:[%s5681_s3 + $0x2] ss:$0 sm:$0xff] }
  0xdb   : > { %v495_v22 = vadd.f32 %v4170_v53, %v461_v0 }
  0xdd   : > { %v527_v7 = vmax.f32 %v495_v22, 0.0 }
  0xe0   : > { %3337 = vmatmul.msk.f32.gmra.mxu0 %vm540_vm0, %v507_v8  ;;  %v375_v8 = vpop.permute.xlu1 %374 }
  0xe1   : > { %v451_v29 = vmax.f32 %v4175_v57, %v375_v8  ;;  %v949_v8 = vld [vmem:[#allocation2 + $0x78] sm:$0xff] }
  0xe2   : > { %1056 = vmatpush.msrb.mxu1 %v949_v8 }
  0xe3   : > { %v485_v38 = vadd.f32 %v4170_v53, %v451_v29 }
  0xe5   : > { %v517_v41 = vmax.f32 %v485_v38, 0.0 }
  0xe8   : > { %3338 = vmatmul.msk.f32.gmra.mxu0 %vm540_vm0, %v508_v17  ;;  %v399_v4 = vpop.permute.xlu1 %398 }
  0xe9   : > { %v463_v19 = vmax.f32 %v4210_v18, %v399_v4  ;;  %v944_v4 = vld [vmem:[#allocation2 + $0x50] sm:$0xff] }
  0xeb   : > { %v497_v28 = vadd.f32 %v4170_v53, %v463_v19  ;;  %v943_v19 = vld [vmem:[#allocation2 + $0x48] sm:$0xff] }
  0xee   : > { %v391_v46 = vpop.permute.xlu2 %390 }
  0xef   : > { %v459_v49 = vmax.f32 %v4190_v3, %v391_v46  ;;  %v447_v3 = vmax.f32 %v4158_v51, %v367_v34  ;;  %v482_v51 = vadd.f32 %v4170_v53, %v448_v52 }
  0xf0   : > { %3339 = vmatmul.msk.f32.gmra.mxu0 %vm540_vm0, %v509_v30  ;;  %v529_v30 = vmax.f32 %v497_v28, 0.0  ;;  %v381_v33 = vpop.permute.xlu1 %380  ;;  %v942_v28 = vld [vmem:[#allocation2 + $0x40] sm:$0xff] }
  0xf1   : > { %v493_v50 = vadd.f32 %v4170_v53, %v459_v49  ;;  %v481_v35 = vadd.f32 %v4170_v53, %v447_v3  ;;  %v514_v43 = vmax.f32 %v482_v51, 0.0  ;;  %v454_v56 = vmax.f32 %v4221_v26, %v381_v33 }
  0xf3   : > { %v525_v54 = vmax.f32 %v493_v50, 0.0  ;;  %v513_v2 = vmax.f32 %v481_v35, 0.0 }
  0xf5   : > { %3355 = vmatmul.msk.f32.gmra.mxu1 %vm540_vm0, %v525_v54 }
  0xf6   : > { %v373_v62 = vpop.permute.xlu2 %372 }
  0xf7   : > { %v450_v24 = vmax.f32 %v4207_v14, %v373_v62 }
  0xf8   : > { %3340 = vmatmul.msk.f32.gmra.mxu0 %vm540_vm0, %v510_v39  ;;  %v377_v39 = vpop.permute.xlu0 %376 }
  0xf9   : > { %v484_v15 = vadd.f32 %v4170_v53, %v450_v24  ;;  %v452_v40 = vmax.f32 %v4193_v5, %v377_v39 }
  0xfb   : > { %v516_v14 = vmax.f32 %v484_v15, 0.0  ;;  %v486_v42 = vadd.f32 %v4170_v53, %v452_v40 }
  0xfd   : > { %3356 = vmatmul.msk.f32.gmra.mxu1 %vm540_vm0, %v526_v21  ;;  %v518_v49 = vmax.f32 %v486_v42, 0.0 }
  0xfe   : > { %v397_v9 = vpop.permute.xlu2 %396 }
  0xff   : > { %v462_v23 = vmax.f32 %v4230_v37, %v397_v9  ;;  %v483_v37 = vadd.f32 %v4170_v53, %v449_v11  ;;  %v946_v11 = vld [vmem:[#allocation2 + $0x60] sm:$0xff] }
 0x100   : > { %3341 = vmatmul.msk.f32.gmra.mxu0 %vm540_vm0, %v511_v16 }
 0x101   : > { %v496_v10 = vadd.f32 %v4170_v53, %v462_v23  ;;  %v515_v20 = vmax.f32 %v483_v37, 0.0  ;;  %v948_v23 = vld [vmem:[#allocation2 + $0x70] sm:$0xff] }
 0x102   : > { %1057 = vmatpush.msrb.mxu1 %v948_v23 }
 0x103   : > { %v528_v13 = vmax.f32 %v496_v10, 0.0  ;;  %v947_v10 = vld [vmem:[#allocation2 + $0x68] sm:$0xff] }
 0x104   : > { %1058 = vmatpush.msrb.mxu1 %v947_v10 }
 0x105   : > { %3357 = vmatmul.msk.f32.gmra.mxu1 %vm540_vm0, %v527_v7 }
 0x106   : > { %v379_v46 = vpop.permute.xlu2 %378  ;;  %1059 = vmatpush.msrb.mxu1 %v946_v11 }
 0x107   : > { %v453_v50 = vmax.f32 %v4239_v45, %v379_v46 }
 0x108   : > { %3342 = vmatmul.msk.f32.gmra.mxu0 %vm540_vm0, %v512_v61  ;;  %v488_v61 = vadd.f32 %v4170_v53, %v454_v56 }
 0x109   : > { %v487_v54 = vadd.f32 %v4170_v53, %v453_v50 }
 0x10a   : > { %v520_v3 = vmax.f32 %v488_v61, 0.0 }
 0x10b   : > { %v519_v55 = vmax.f32 %v487_v54, 0.0 }
 0x10d   : > { %3358 = vmatmul.msk.f32.gmra.mxu1 %vm540_vm0, %v528_v13  ;;  %v945_v13 = vld [vmem:[#allocation2 + $0x58] sm:$0xff] }
 0x10e   : > { %1060 = vmatpush.msrb.mxu1 %v945_v13 }
 0x110   : > { %3343 = vmatmul.msk.f32.gmra.mxu0 %vm540_vm0, %v513_v2  ;;  %1061 = vmatpush.msrb.mxu1 %v944_v4 }
 0x112   : > { %1062 = vmatpush.msrb.mxu1 %v943_v19 }
 0x114   : > { %1063 = vmatpush.msrb.mxu1 %v942_v28 }
 0x115   : > { %v654_v12 = vpop.f32.mrf.mxu0  ;;  %3359 = vmatmul.msk.f32.gmra.mxu1 %vm540_vm0, %v529_v30 }
 0x116   : > { %v4303_v27 = vadd.f32 %v4298_v58, %v654_v12 }
 0x118   : > { %v750_v17 = vmax.f32 %v4303_v27, 0.0  ;;  %3344 = vmatmul.msk.f32.gmra.mxu0 %vm540_vm0, %v514_v43 }
 0x11a   : > { %814 = vrot.lane.b32.xlu0 %v750_v17, %s3931_s20 }
 0x11d   : > { %v657_v25 = vpop.f32.mrf.mxu0 }
 0x11e   : > { %v4317_v31 = vadd.f32 %v4298_v58, %v657_v25 }
 0x120   : > { %v751_v18 = vmax.f32 %v4317_v31, 0.0  ;;  %3345 = vmatmul.msk.f32.gmra.mxu0 %vm540_vm0, %v515_v20 }
 0x122   : > { %382 = vrot.lane.b32.xlu0 %v4320_v47, %s3931_s20  ;;  %816 = vrot.lane.b32.xlu2 %v751_v18, %s3931_s20 }
 0x125   : > { %v660_v1 = vpop.f32.mrf.mxu0 }
 0x126   : > { %v4333_v34 = vadd.f32 %v4298_v58, %v660_v1 }
 0x128   : > { %v752_v36 = vmax.f32 %v4333_v34, 0.0  ;;  %3346 = vmatmul.msk.f32.gmra.mxu0 %vm540_vm0, %v516_v14 }
 0x12a   : > { %818 = vrot.lane.b32.xlu1 %v752_v36, %s3931_s20 }
 0x12b   : > { %v726_v50 = vpop.f32.mrf.mxu1 }
 0x12d   : > { %v663_v6 = vpop.f32.mrf.mxu0 }
 0x12e   : > { %v4343_v57 = vadd.f32 %v4298_v58, %v663_v6 }
 0x130   : > { %v753_v32 = vmax.f32 %v4343_v57, 0.0  ;;  %3347 = vmatmul.msk.f32.gmra.mxu0 %vm540_vm0, %v517_v41 }
 0x132   : > { %820 = vrot.lane.b32.xlu2 %v753_v32, %s3931_s20 }
 0x135   : > { %v666_v16 = vpop.f32.mrf.mxu0 }
 0x136   : > { %v4353_v5 = vadd.f32 %v4298_v58, %v666_v16 }
 0x138   : > { %v754_v44 = vmax.f32 %v4353_v5, 0.0  ;;  %3348 = vmatmul.msk.f32.gmra.mxu0 %vm540_vm0, %v518_v49 }
 0x13a   : > { %822 = vrot.lane.b32.xlu0 %v754_v44, %s3931_s20 }
 0x13d   : > { %v669_v59 = vpop.f32.mrf.mxu0  ;;  %v729_v31 = vpop.f32.mrf.mxu1 }
 0x13e   : > { %v4363_v45 = vadd.f32 %v4298_v58, %v669_v59 }
 0x140   : > { %v755_v60 = vmax.f32 %v4363_v45, 0.0  ;;  %3349 = vmatmul.msk.f32.gmra.mxu0 %vm540_vm0, %v519_v55 }
 0x142   : > { %824 = vrot.lane.b32.xlu1 %v755_v60, %s3931_s20 }
 0x145   : > { %v672_v21 = vpop.f32.mrf.mxu0  ;;  %v4470_v8 = vpop.f32.mrf.mxu1 }
 0x146   : > { %v4372_v35 = vadd.f32 %v4298_v58, %v672_v21 }
 0x148   : > { %v756_v26 = vmax.f32 %v4372_v35, 0.0  ;;  %3350 = vmatmul.msk.f32.gmra.mxu0 %vm540_vm0, %v520_v3 }
 0x14a   : > { %826 = vrot.lane.b32.xlu2 %v756_v26, %s3931_s20 }
 0x14d   : > { %v675_v62 = vpop.f32.mrf.mxu0 }
 0x14e   : > { %v4380_v63 = vadd.f32 %v4298_v58, %v675_v62 }
 0x150   : > { %v757_v0 = vmax.f32 %v4380_v63, 0.0 }
 0x152   : > { %828 = vrot.lane.b32.xlu0 %v757_v0, %s3931_s20 }
 0x155   : > { %v678_v22 = vpop.f32.mrf.mxu0 }
 0x156   : > { %v4387_v2 = vadd.f32 %v4298_v58, %v678_v22 }
 0x158   : > { %v758_v52 = vmax.f32 %v4387_v2, 0.0 }
 0x15a   : > { %830 = vrot.lane.b32.xlu1 %v758_v52, %s3931_s20 }
 0x15d   : > { %v681_v7 = vpop.f32.mrf.mxu0 }
 0x15e   : > { %v4394_v51 = vadd.f32 %v4298_v58, %v681_v7 }
 0x160   : > { %v759_v9 = vmax.f32 %v4394_v51, 0.0 }
 0x162   : > { %832 = vrot.lane.b32.xlu2 %v759_v9, %s3931_s20 }
 0x165   : > { %v684_v43 = vpop.f32.mrf.mxu0 }
 0x166   : > { %v4401_v12 = vadd.f32 %v4298_v58, %v684_v43 }
 0x168   : > { %v760_v37 = vmax.f32 %v4401_v12, 0.0 }
 0x16a   : > { %834 = vrot.lane.b32.xlu0 %v760_v37, %s3931_s20 }
 0x16d   : > { %v687_v48 = vpop.f32.mrf.mxu0 }
 0x16e   : > { %v4408_v20 = vadd.f32 %v4298_v58, %v687_v48 }
 0x170   : > { %v761_v24 = vmax.f32 %v4408_v20, 0.0  ;;  %v1195_v20 = vld [vmem:[#allocation2 + $0x90] sm:$0xff] }
 0x172   : > { %836 = vrot.lane.b32.xlu1 %v761_v24, %s3931_s20  ;;  %v735_v43 = vpop.f32.mrf.mxu1 }
 0x175   : > { %v690_v25 = vpop.f32.mrf.mxu0 }
 0x176   : > { %v4415_v30 = vadd.f32 %v4298_v58, %v690_v25 }
 0x178   : > { %v762_v15 = vmax.f32 %v4415_v30, 0.0 }
 0x17a   : > { %838 = vrot.lane.b32.xlu2 %v762_v15, %s3931_s20  ;;  %v738_v48 = vpop.f32.mrf.mxu1 }
 0x17c   : > { %v817_v16 = vpop.permute.xlu2 %816 }
 0x17d   : > { %v693_v14 = vpop.f32.mrf.mxu0  ;;  %v911_v33 = vmax.f32 %v751_v18, %v817_v16 }
 0x17e   : > { %v4422_v29 = vadd.f32 %v4298_v58, %v693_v14 }
 0x180   : > { %v763_v1 = vmax.f32 %v4422_v29, 0.0 }
 0x182   : > { %840 = vrot.lane.b32.xlu0 %v763_v1, %s3931_s20  ;;  %v4513_v35 = vpop.f32.mrf.mxu1 }
 0x185   : > { %v696_v38 = vpop.f32.mrf.mxu0 }
 0x186   : > { %v4429_v39 = vadd.f32 %v4298_v58, %v696_v38 }
 0x188   : > { %v764_v41 = vmax.f32 %v4429_v39, 0.0 }
 0x18a   : > { %842 = vrot.lane.b32.xlu1 %v764_v41, %s3931_s20 }
 0x18c   : > { %v815_v40 = vpop.permute.xlu0 %814  ;;  %v821_v62 = vpop.permute.xlu2 %820 }
 0x18d   : > { %v910_v6 = vmax.f32 %v750_v17, %v815_v40  ;;  %v699_v42 = vpop.f32.mrf.mxu0  ;;  %v913_v22 = vmax.f32 %v753_v32, %v821_v62  ;;  %v4508_v40 = vadd.f32 %v4298_v58, %v726_v50 }
 0x18e   : > { %v4438_v46 = vadd.f32 %v4298_v58, %v699_v42 }
 0x18f   : > { %3360 = vmatmul.msk.f32.vlgmr.msrb.gmra.mxu1 %vm540_vm0, %v910_v6  ;;  %v774_v16 = vmax.f32 %v4508_v40, 0.0 }
 0x190   : > { %v765_v49 = vmax.f32 %v4438_v46, 0.0 }
 0x192   : > { %844 = vrot.lane.b32.xlu2 %v765_v49, %s3931_s20 }
 0x194   : > { %v383_v54 = vpop.permute.xlu0 %382 }
 0x195   : > { %v455_v27 = vmax.f32 %v4320_v47, %v383_v54  ;;  %v702_v17 = vpop.f32.mrf.mxu0 }
 0x196   : > { %v4449_v55 = vadd.f32 %v4298_v58, %v702_v17  ;;  %v744_v17 = vpop.f32.mrf.mxu1 }
 0x197   : > { %v489_v56 = vadd.f32 %v4170_v53, %v455_v27  ;;  %3361 = vmatmul.msk.f32.gmra.mxu1 %vm540_vm0, %v911_v33  ;;  %v4524_v33 = vadd.f32 %v4298_v58, %v729_v31  ;;  %v4527_v27 = vadd.f32 %v4298_v58, %v735_v43  ;;  %v4550_v2 = vadd.f32 %v4298_v58, %v744_v17 }
 0x198   : > { %v766_v59 = vmax.f32 %v4449_v55, 0.0 }
 0x199   : > { %v521_v61 = vmax.f32 %v489_v56, 0.0  ;;  %v775_v56 = vmax.f32 %v4524_v33, 0.0 }
 0x19a   : > { %846 = vrot.lane.b32.xlu0 %v766_v59, %s3931_s20 }
 0x19b   : > { %3351 = vmatmul.msk.f32.gmra.mxu0 %vm540_vm0, %v521_v61  ;;  %v777_v61 = vmax.f32 %v4527_v27, 0.0 }
 0x19c   : > { %v819_v18 = vpop.permute.xlu1 %818 }
 0x19d   : > { %v912_v47 = vmax.f32 %v752_v36, %v819_v18  ;;  %v705_v3 = vpop.f32.mrf.mxu0  ;;  %v4541_v18 = vadd.f32 %v4298_v58, %v738_v48 }
 0x19e   : > { %v4461_v21 = vadd.f32 %v4298_v58, %v705_v3  ;;  %v780_v3 = vmax.f32 %v4550_v2, 0.0  ;;  %v747_v62 = vpop.f32.mrf.mxu1 }
 0x19f   : > { %3362 = vmatmul.msk.f32.gmra.mxu1 %vm540_vm0, %v912_v47  ;;  %v778_v47 = vmax.f32 %v4541_v18, 0.0 }
 0x1a0   : > { %v767_v53 = vmax.f32 %v4461_v21, 0.0 }
 0x1a2   : > { %848 = vrot.lane.b32.xlu1 %v767_v53, %s3931_s20 }
 0x1a4   : > { %v827_v28 = vpop.permute.xlu2 %826 }
 0x1a5   : > { %v708_v7 = vpop.f32.mrf.mxu0  ;;  %v916_v25 = vmax.f32 %v756_v26, %v827_v28 }
 0x1a6   : > { %v4473_v34 = vadd.f32 %v4298_v58, %v708_v7 }
 0x1a7   : > { %3363 = vmatmul.msk.f32.gmra.mxu1 %vm540_vm0, %v913_v22  ;;  %v4564_v22 = vadd.f32 %v4298_v58, %v747_v62 }
 0x1a8   : > { %v768_v36 = vmax.f32 %v4473_v34, 0.0 }
 0x1a9   : > { %v781_v7 = vmax.f32 %v4564_v22, 0.0 }
 0x1aa   : > { %850 = vrot.lane.b32.xlu2 %v768_v36, %s3931_s20 }
 0x1ac   : > { %v823_v23 = vpop.permute.xlu0 %822 }
 0x1ad   : > { %v914_v10 = vmax.f32 %v754_v44, %v823_v23  ;;  %v711_v57 = vpop.f32.mrf.mxu0 }
 0x1ae   : > { %v4483_v32 = vadd.f32 %v4298_v58, %v711_v57 }
 0x1af   : > { %3364 = vmatmul.msk.f32.gmra.mxu1 %vm540_vm0, %v914_v10 }
 0x1b0   : > { %v769_v11 = vmax.f32 %v4483_v32, 0.0 }
 0x1b2   : > { %852 = vrot.lane.b32.xlu0 %v769_v11, %s3931_s20 }
 0x1b4   : > { %v825_v13 = vpop.permute.xlu1 %824 }
 0x1b5   : > { %v915_v4 = vmax.f32 %v755_v60, %v825_v13  ;;  %v714_v19 = vpop.f32.mrf.mxu0  ;;  %v1196_v60 = vld [vmem:[#allocation2 + $0x98] sm:$0xff] }
 0x1b6   : > { %v4493_v5 = vadd.f32 %v4298_v58, %v714_v19  ;;  %1308 = vmatpush.msra.mxu1 %v1196_v60  ;;  %3566 = vmatpush.msra.mxu2 %v1196_v60  ;;  %v4624_v60 = vadd.f32 %v4298_v58, %v4513_v35 }
 0x1b7   : > { %3365 = vmatmul.msk.f32.gmra.mxu1 %vm540_vm0, %v915_v4 }
 0x1b8   : > { %v770_v44 = vmax.f32 %v4493_v5, 0.0  ;;  %1309 = vmatpush.msra.mxu1 %v1195_v20  ;;  %3567 = vmatpush.msra.mxu2 %v1195_v20 }
 0x1ba   : > { %854 = vrot.lane.b32.xlu1 %v770_v44, %s3931_s20 }
 0x1bc   : > { %v833_v31 = vpop.permute.xlu2 %832 }
 0x1bd   : > { %v717_v14 = vpop.f32.mrf.mxu0 }
 0x1be   : > { %v4503_v45 = vadd.f32 %v4298_v58, %v717_v14 }
 0x1bf   : > { %3366 = vmatmul.msk.f32.gmra.mxu1 %vm540_vm0, %v916_v25 }
 0x1c0   : > { %v771_v38 = vmax.f32 %v4503_v45, 0.0 }
 0x1c2   : > { %856 = vrot.lane.b32.xlu2 %v771_v38, %s3931_s20 }
 0x1c4   : > { %v829_v26 = vpop.permute.xlu0 %828 }
 0x1c5   : > { %v917_v6 = vmax.f32 %v757_v0, %v829_v26  ;;  %v720_v42 = vpop.f32.mrf.mxu0  ;;  %v779_v26 = vmax.f32 %v4624_v60, 0.0 }
 0x1c6   : > { %v4519_v54 = vadd.f32 %v4298_v58, %v720_v42 }
 0x1c7   : > { %3367 = vmatmul.msk.f32.gmra.mxu1 %vm540_vm0, %v917_v6 }
 0x1c8   : > { %v772_v50 = vmax.f32 %v4519_v54, 0.0 }
 0x1ca   : > { %858 = vrot.lane.b32.xlu0 %v772_v50, %s3931_s20  ;;  %862 = vrot.lane.b32.xlu2 %v774_v16, %s3931_s20 }
 0x1cc   : > { %v831_v63 = vpop.permute.xlu1 %830 }
 0x1cd   : > { %v918_v0 = vmax.f32 %v758_v52, %v831_v63  ;;  %v919_v52 = vmax.f32 %v759_v9, %v833_v31 }
 0x1cf   : > { %3368 = vmatmul.msk.f32.gmra.mxu1 %vm540_vm0, %v918_v0 }
 0x1d2   : > { %864 = vrot.lane.b32.xlu0 %v775_v56, %s3931_s20  ;;  %868 = vrot.lane.b32.xlu2 %v777_v61, %s3931_s20 }
 0x1d4   : > { %v839_v57 = vpop.permute.xlu2 %838 }
 0x1d5   : > { %v922_v43 = vmax.f32 %v762_v15, %v839_v57 }
 0x1d7   : > { %3369 = vmatmul.msk.f32.gmra.mxu1 %vm540_vm0, %v919_v52 }
 0x1da   : > { %870 = vrot.lane.b32.xlu0 %v778_v47, %s3931_s20  ;;  %874 = vrot.lane.b32.xlu2 %v780_v3, %s3931_s20 }
 0x1dc   : > { %v835_v51 = vpop.permute.xlu0 %834 }
 0x1dd   : > { %v920_v9 = vmax.f32 %v760_v37, %v835_v51 }
 0x1df   : > { %3370 = vmatmul.msk.f32.gmra.mxu1 %vm540_vm0, %v920_v9 }
 0x1e2   : > { %876 = vrot.lane.b32.xlu0 %v781_v7, %s3931_s20 }
 0x1e4   : > { %v837_v23 = vpop.permute.xlu1 %836 }
 0x1e5   : > { %v921_v10 = vmax.f32 %v761_v24, %v837_v23 }
 0x1e7   : > { %3371 = vmatmul.msk.f32.gmra.mxu1 %vm540_vm0, %v921_v10 }
 0x1ec   : > { %v845_v24 = vpop.permute.xlu2 %844 }
 0x1ed   : > { %v925_v30 = vmax.f32 %v765_v49, %v845_v24 }
 0x1ef   : > { %3372 = vmatmul.msk.f32.gmra.mxu1 %vm540_vm0, %v922_v43 }
 0x1f4   : > { %v841_v12 = vpop.permute.xlu0 %840 }
 0x1f5   : > { %v923_v37 = vmax.f32 %v763_v1, %v841_v12 }
 0x1f7   : > { %3373 = vmatmul.msk.f32.gmra.mxu1 %vm540_vm0, %v923_v37 }
 0x1fc   : > { %v843_v13 = vpop.permute.xlu1 %842 }
 0x1fd   : > { %v924_v4 = vmax.f32 %v764_v41, %v843_v13 }
 0x1ff   : > { %3374 = vmatmul.msk.f32.gmra.mxu1 %vm540_vm0, %v924_v4 }
 0x204   : > { %v851_v48 = vpop.permute.xlu2 %850 }
 0x205   : > { %v928_v55 = vmax.f32 %v768_v36, %v851_v48  ;;  %v1194_v36 = vld [vmem:[#allocation2 + $0x88] sm:$0xff] }
 0x206   : > { %3568 = vmatpush.msra.mxu2 %v1194_v36  ;;  %1310 = vmatpush.msra.mxu1 %v1194_v36 }
 0x207   : > { %3375 = vmatmul.msk.f32.gmra.mxu1 %vm540_vm0, %v925_v30 }
 0x20c   : > { %v4588_v15 = vpop.f32.mrf.mxu1  ;;  %v847_v29 = vpop.permute.xlu0 %846 }
 0x20d   : > { %v926_v1 = vmax.f32 %v766_v59, %v847_v29  ;;  %v4611_v59 = vadd.f32 %v4298_v58, %v4470_v8  ;;  %v1193_v8 = vld [vmem:[#allocation2 + $0x80] sm:$0xff] }
 0x20e   : > { %3569 = vmatpush.msra.mxu2 %v1193_v8  ;;  %1311 = vmatpush.msra.mxu1 %v1193_v8 }
 0x20f   : > { %3376 = vmatmul.msk.f32.gmra.mxu1 %vm540_vm0, %v926_v1  ;;  %v776_v21 = vmax.f32 %v4611_v59, 0.0 }
 0x214   : > { %v849_v39 = vpop.permute.xlu1 %848  ;;  %v4593_v41 = vpop.f32.mrf.mxu1 }
 0x215   : > { %v927_v19 = vmax.f32 %v767_v53, %v849_v39 }
 0x217   : > { %3377 = vmatmul.msk.f32.gmra.mxu1 %vm540_vm0, %v927_v19 }
 0x218   : > { %v723_v46 = vpop.f32.mrf.mxu0 }
 0x219   : > { %v4599_v49 = vadd.f32 %v4298_v58, %v723_v46 }
 0x21b   : > { %v773_v28 = vmax.f32 %v4599_v49, 0.0 }
 0x21c   : > { %v4602_v25 = vpop.f32.mrf.mxu1  ;;  %v857_v58 = vpop.permute.xlu2 %856 }
 0x21d   : > { %860 = vrot.lane.b32.xlu1 %v773_v28, %s3931_s20  ;;  %v931_v35 = vmax.f32 %v771_v38, %v857_v58 }
 0x21f   : > { %3378 = vmatmul.msk.f32.gmra.mxu1 %vm540_vm0, %v928_v55 }
 0x224   : > { %v4615_v53 = vpop.f32.mrf.mxu1  ;;  %v853_v14 = vpop.permute.xlu0 %852 }
 0x225   : > { %866 = vrot.lane.b32.xlu1 %v776_v21, %s3931_s20  ;;  %v929_v34 = vmax.f32 %v769_v11, %v853_v14 }
 0x227   : > { %3379 = vmatmul.msk.f32.gmra.mxu1 %vm540_vm0, %v929_v34 }
 0x22c   : > { %v855_v6 = vpop.permute.xlu1 %854  ;;  %v4630_v32 = vpop.f32.mrf.mxu1 }
 0x22d   : > { %v930_v42 = vmax.f32 %v770_v44, %v855_v6  ;;  %872 = vrot.lane.b32.xlu1 %v779_v26, %s3931_s20  ;;  %v4649_v44 = vld [vmem:[%s5681_s3 + $0x3] ss:$0 sm:$0xff]  ;;  %v863_v6 = vpop.permute.xlu2 %862  ;;  %s4877_s20 = scalar_lea.vmem %s5679_s1, %s3325_s9 }
 0x22f   : > { %3380 = vmatmul.msk.f32.gmra.mxu1 %vm540_vm0, %v930_v42 }
 0x234   : > { %v4636_v11 = vpop.f32.mrf.mxu1 }
 0x237   : > { %3381 = vmatmul.msk.f32.gmra.mxu1 %vm540_vm0, %v931_v35  ;;  %v934_v35 = vmax.f32 %v774_v16, %v863_v6 }
 0x23c   : > { %v859_v63 = vpop.permute.xlu0 %858  ;;  %v4641_v0 = vpop.f32.mrf.mxu1 }
 0x23d   : > { %v932_v5 = vmax.f32 %v772_v50, %v859_v63 }
 0x23f   : > { %3382 = vmatmul.msk.f32.gmra.mxu1 %vm540_vm0, %v932_v5 }
 0x244   : > { %v1086_v17 = vpop.f32.mrf.mxu1  ;;  %v865_v5 = vpop.permute.xlu0 %864 }
 0x245   : > { %v1087_v31 = vadd.f32 %v4649_v44, %v1086_v17 }
 0x247   : > { %v1168_v45 = vmax.f32 %v1087_v31, 0.0 }
 0x249   : > { %3399 = vmatmul.msk.f32.vlgmr.msra.gmra.mxu2 %vm1199_vm1, %v1168_v45 }
 0x24c   : > { %v1089_v38 = vpop.f32.mrf.mxu1  ;;  %v871_v59 = vpop.permute.xlu0 %870 }
 0x24d   : > { %v1090_v52 = vadd.f32 %v4649_v44, %v1089_v38 }
 0x24f   : > { %v1169_v62 = vmax.f32 %v1090_v52, 0.0 }
 0x251   : > { %3400 = vmatmul.msk.f32.gmra.mxu2 %vm1199_vm1, %v1169_v62  ;;  %v869_v62 = vpop.permute.xlu2 %868 }
 0x254   : > { %v1092_v54 = vpop.f32.mrf.mxu1  ;;  %v877_v60 = vpop.permute.xlu0 %876 }
 0x255   : > { %v1093_v50 = vadd.f32 %v4649_v44, %v1092_v54  ;;  %v937_v54 = vmax.f32 %v777_v61, %v869_v62 }
 0x257   : > { %v1170_v51 = vmax.f32 %v1093_v50, 0.0 }
 0x259   : > { %3401 = vmatmul.msk.f32.gmra.mxu2 %vm1199_vm1, %v1170_v51  ;;  %v875_v18 = vpop.permute.xlu2 %874 }
 0x25c   : > { %v1095_v9 = vpop.f32.mrf.mxu1 }
 0x25d   : > { %v1096_v23 = vadd.f32 %v4649_v44, %v1095_v9  ;;  %v938_v9 = vmax.f32 %v778_v47, %v871_v59  ;;  %v940_v47 = vmax.f32 %v780_v3, %v875_v18 }
 0x25f   : > { %v1171_v10 = vmax.f32 %v1096_v23, 0.0 }
 0x261   : > { %3402 = vmatmul.msk.f32.gmra.mxu2 %vm1199_vm1, %v1171_v10 }
 0x264   : > { %v1098_v57 = vpop.f32.mrf.mxu1 }
 0x265   : > { %v1099_v43 = vadd.f32 %v4649_v44, %v1098_v57 }
 0x267   : > { %v1172_v12 = vmax.f32 %v1099_v43, 0.0 }
 0x269   : > { %3403 = vmatmul.msk.f32.gmra.mxu2 %vm1199_vm1, %v1172_v12  ;;  %v4713_v12 = vld [vmem:[%s5681_s3 + $0x4] ss:$0 sm:$0xff] }
 0x26c   : > { %v1101_v37 = vpop.f32.mrf.mxu1 }
 0x26d   : > { %v1102_v13 = vadd.f32 %v4649_v44, %v1101_v37 }
 0x26f   : > { %v1173_v4 = vmax.f32 %v1102_v13, 0.0  ;;  %v941_v13 = vmax.f32 %v781_v7, %v877_v60 }
 0x271   : > { %3404 = vmatmul.msk.f32.gmra.mxu2 %vm1199_vm1, %v1173_v4  ;;  %v1066_v4 = vadd.f32 %v4649_v44, %v4588_v15  ;;  %v1069_v15 = vadd.f32 %v4649_v44, %v4593_v41  ;;  %v1072_v41 = vadd.f32 %v4649_v44, %v4602_v25  ;;  %v1075_v25 = vadd.f32 %v4649_v44, %v4615_v53 }
 0x272   : > { %v1078_v53 = vadd.f32 %v4649_v44, %v4630_v32  ;;  %v1081_v32 = vadd.f32 %v4649_v44, %v4636_v11  ;;  %v1084_v11 = vadd.f32 %v4649_v44, %v4641_v0 }
 0x273   : > { %v1161_v7 = vmax.f32 %v1066_v4, 0.0 }
 0x274   : > { %v1104_v20 = vpop.f32.mrf.mxu1 }
 0x275   : > { %v1105_v24 = vadd.f32 %v4649_v44, %v1104_v20 }
 0x277   : > { %v1174_v30 = vmax.f32 %v1105_v24, 0.0 }
 0x279   : > { %3405 = vmatmul.msk.f32.gmra.mxu2 %vm1199_vm1, %v1174_v30 }
 0x27c   : > { %v1107_v29 = vpop.f32.mrf.mxu1 }
 0x27d   : > { %v1108_v1 = vadd.f32 %v4649_v44, %v1107_v29 }
 0x27f   : > { %v1175_v39 = vmax.f32 %v1108_v1, 0.0 }
 0x281   : > { %3406 = vmatmul.msk.f32.gmra.mxu2 %vm1199_vm1, %v1175_v39 }
 0x284   : > { %v1110_v19 = vpop.f32.mrf.mxu1 }
 0x285   : > { %v1111_v46 = vadd.f32 %v4649_v44, %v1110_v19  ;;  %v1162_v19 = vmax.f32 %v1069_v15, 0.0 }
 0x287   : > { %v1176_v48 = vmax.f32 %v1111_v46, 0.0 }
 0x289   : > { %3407 = vmatmul.msk.f32.gmra.mxu2 %vm1199_vm1, %v1176_v48 }
 0x28c   : > { %v1113_v55 = vpop.f32.mrf.mxu1 }
 0x28d   : > { %v1114_v14 = vadd.f32 %v4649_v44, %v1113_v55 }
 0x28f   : > { %v861_v34 = vpop.permute.xlu1 %860  ;;  %v1177_v36 = vmax.f32 %v1114_v14, 0.0 }
 0x290   : > { %v933_v8 = vmax.f32 %v773_v28, %v861_v34  ;;  %v935_v28 = vmax.f32 %v775_v56, %v865_v5 }
 0x291   : > { %3408 = vmatmul.msk.f32.gmra.mxu2 %vm1199_vm1, %v1177_v36  ;;  %v1163_v36 = vmax.f32 %v1072_v41, 0.0 }
 0x292   : > { %3383 = vmatmul.msk.f32.gmra.mxu1 %vm540_vm0, %v933_v8 }
 0x294   : > { %v1116_v42 = vpop.f32.mrf.mxu1 }
 0x295   : > { %v1117_v58 = vadd.f32 %v4649_v44, %v1116_v42 }
 0x297   : > { %v1178_v63 = vmax.f32 %v1117_v58, 0.0  ;;  %v867_v45 = vpop.permute.xlu1 %866 }
 0x298   : > { %v936_v38 = vmax.f32 %v776_v21, %v867_v45  ;;  %v1165_v45 = vmax.f32 %v1078_v53, 0.0 }
 0x299   : > { %3409 = vmatmul.msk.f32.gmra.mxu2 %vm1199_vm1, %v1178_v63  ;;  %v1164_v63 = vmax.f32 %v1075_v25, 0.0 }
 0x29a   : > { %3384 = vmatmul.msk.f32.gmra.mxu1 %vm540_vm0, %v934_v35 }
 0x29c   : > { %v1119_v17 = vpop.f32.mrf.mxu1 }
 0x29d   : > { %v1120_v49 = vadd.f32 %v4649_v44, %v1119_v17 }
 0x29f   : > { %v1179_v31 = vmax.f32 %v1120_v49, 0.0  ;;  %v873_v27 = vpop.permute.xlu1 %872 }
 0x2a0   : > { %v939_v57 = vmax.f32 %v779_v26, %v873_v27 }
 0x2a1   : > { %3410 = vmatmul.msk.f32.gmra.mxu2 %vm1199_vm1, %v1179_v31 }
 0x2a2   : > { %3385 = vmatmul.msk.f32.gmra.mxu1 %vm540_vm0, %v935_v28 }
 0x2a4   : > { %v1122_v40 = vpop.f32.mrf.mxu1 }
 0x2a5   : > { %v1123_v16 = vadd.f32 %v4649_v44, %v1122_v40 }
 0x2a7   : > { %v1180_v52 = vmax.f32 %v1123_v16, 0.0 }
 0x2a9   : > { %3411 = vmatmul.msk.f32.gmra.mxu2 %vm1199_vm1, %v1180_v52 }
 0x2aa   : > { %3386 = vmatmul.msk.f32.gmra.mxu1 %vm540_vm0, %v936_v38 }
 0x2ac   : > { %v1125_v33 = vpop.f32.mrf.mxu1 }
 0x2ad   : > { %v1126_v56 = vadd.f32 %v4649_v44, %v1125_v33  ;;  %v1166_v33 = vmax.f32 %v1081_v32, 0.0 }
 0x2af   : > { %v1181_v50 = vmax.f32 %v1126_v56, 0.0 }
 0x2b1   : > { %3412 = vmatmul.msk.f32.gmra.mxu2 %vm1199_vm1, %v1181_v50 }
 0x2b2   : > { %3387 = vmatmul.msk.f32.gmra.mxu1 %vm540_vm0, %v937_v54 }
 0x2b4   : > { %v1128_v21 = vpop.f32.mrf.mxu1 }
 0x2b5   : > { %v1129_v51 = vadd.f32 %v4649_v44, %v1128_v21 }
 0x2b7   : > { %v1182_v23 = vmax.f32 %v1129_v51, 0.0  ;;  %v1167_v51 = vmax.f32 %v1084_v11, 0.0 }
 0x2b9   : > { %3413 = vmatmul.msk.f32.gmra.mxu2 %vm1199_vm1, %v1182_v23 }
 0x2ba   : > { %3388 = vmatmul.msk.f32.gmra.mxu1 %vm540_vm0, %v938_v9 }
 0x2bc   : > { %v1131_v61 = vpop.f32.mrf.mxu1 }
 0x2bd   : > { %v1132_v10 = vadd.f32 %v4649_v44, %v1131_v61 }
 0x2bf   : > { %v1183_v43 = vmax.f32 %v1132_v10, 0.0 }
 0x2c1   : > { %3414 = vmatmul.msk.f32.gmra.mxu2 %vm1199_vm1, %v1183_v43 }
 0x2c2   : > { %3389 = vmatmul.msk.f32.gmra.mxu1 %vm540_vm0, %v939_v57 }
 0x2ca   : > { %3390 = vmatmul.msk.f32.gmra.mxu1 %vm540_vm0, %v940_v47 }
 0x2cc   : > { %v1334_v26 = vpop.f32.mrf.mxu2 }
 0x2cd   : > { %v4716_v37 = vadd.f32 %v4713_v12, %v1334_v26 }
 0x2cf   : > { %1416 = vst.msk [vmem:[%s4720_s11 + $0x38] sm:$0xff] %vm1199_vm1, %v4716_v37  ;;  %v1480_v2 = vmul.f32 0.5, %v4716_v37 }
 0x2d1   : > { %v1519_v3 = vmul.f32 1.442695, %v1480_v2 }
 0x2d2   : > { %3391 = vmatmul.msk.f32.gmra.mxu1 %vm540_vm0, %v941_v13 }
 0x2d3   : > { %3638 = vpow2.f32 %v1519_v3 }
 0x2d4   : > { %v1337_v20 = vpop.f32.mrf.mxu2 }
 0x2d5   : > { %v4730_v22 = vadd.f32 %v4713_v12, %v1337_v20 }
 0x2d7   : > { %1417 = vst.msk [vmem:[%s4720_s11 + $0x40] sm:$0xff] %vm1199_vm1, %v4730_v22  ;;  %v1481_v24 = vmul.f32 0.5, %v4730_v22 }
 0x2d9   : > { %v3639_v30 = vpop.eup %3638  ;;  %v1521_v29 = vmul.f32 1.442695, %v1481_v24 }
 0x2da   : > { %3392 = vmatmul.msk.f32.vlgmr.msra.gmra.mxu1 %vm1199_vm1, %v1161_v7  ;;  %1615 = vrot.lane.b32.xlu1 %v3639_v30, %s3932_s12 }
 0x2db   : > { %3640 = vpow2.f32 %v1521_v29 }
 0x2dc   : > { %v1340_v1 = vpop.f32.mrf.mxu2 }
 0x2dd   : > { %v4741_v39 = vadd.f32 %v4713_v12, %v1340_v1 }
 0x2df   : > { %1418 = vst.msk [vmem:[%s4720_s11 + $0x48] sm:$0xff] %vm1199_vm1, %v4741_v39  ;;  %v1482_v46 = vmul.f32 0.5, %v4741_v39 }
 0x2e1   : > { %v3641_v48 = vpop.eup %3640  ;;  %v1523_v55 = vmul.f32 1.442695, %v1482_v46 }
 0x2e2   : > { %3393 = vmatmul.msk.f32.gmra.mxu1 %vm1199_vm1, %v1162_v19  ;;  %1617 = vrot.lane.b32.xlu2 %v3641_v48, %s3932_s12 }
 0x2e3   : > { %3642 = vpow2.f32 %v1523_v55 }
 0x2e4   : > { %v1343_v14 = vpop.f32.mrf.mxu2 }
 0x2e5   : > { %v4752_v34 = vadd.f32 %v4713_v12, %v1343_v14 }
 0x2e7   : > { %1419 = vst.msk [vmem:[%s4720_s11 + $0x50] sm:$0xff] %vm1199_vm1, %v4752_v34  ;;  %v1483_v8 = vmul.f32 0.5, %v4752_v34 }
 0x2e9   : > { %v3643_v6 = vpop.eup %3642  ;;  %v1525_v42 = vmul.f32 1.442695, %v1483_v8 }
 0x2ea   : > { %3394 = vmatmul.msk.f32.gmra.mxu1 %vm1199_vm1, %v1163_v36  ;;  %1619 = vrot.lane.b32.xlu0 %v3643_v6, %s3932_s12 }
 0x2eb   : > { %3644 = vpow2.f32 %v1525_v42  ;;  %v1762_v42 = vld [vmem:[#allocation2 + $0xa8] sm:$0xff] }
 0x2ec   : > { %v1346_v58 = vpop.f32.mrf.mxu2  ;;  %3570 = vmatpush.msra.mxu3 %v1762_v42  ;;  %1876 = vmatpush.msrb.mxu1 %v1762_v42 }
 0x2ed   : > { %v4763_v35 = vadd.f32 %v4713_v12, %v1346_v58 }
 0x2ef   : > { %1420 = vst.msk [vmem:[%s4720_s11 + $0x58] sm:$0xff] %vm1199_vm1, %v4763_v35  ;;  %v1484_v5 = vmul.f32 0.5, %v4763_v35 }
 0x2f1   : > { %v3645_v17 = vpop.eup %3644  ;;  %v1527_v49 = vmul.f32 1.442695, %v1484_v5 }
 0x2f2   : > { %3395 = vmatmul.msk.f32.gmra.mxu1 %vm1199_vm1, %v1164_v63  ;;  %1621 = vrot.lane.b32.xlu1 %v3645_v17, %s3932_s12  ;;  %v1761_v63 = vld [vmem:[#allocation2 + $0xa0] sm:$0xff] }
 0x2f3   : > { %3646 = vpow2.f32 %v1527_v49  ;;  %3571 = vmatpush.msra.mxu3 %v1761_v63  ;;  %1877 = vmatpush.msrb.mxu1 %v1761_v63 }
 0x2f4   : > { %v1349_v28 = vpop.f32.mrf.mxu2 }
 0x2f5   : > { %v4774_v31 = vadd.f32 %v4713_v12, %v1349_v28 }
 0x2f7   : > { %1421 = vst.msk [vmem:[%s4720_s11 + $0x60] sm:$0xff] %vm1199_vm1, %v4774_v31  ;;  %v1485_v40 = vmul.f32 0.5, %v4774_v31 }
 0x2f9   : > { %v3647_v16 = vpop.eup %3646  ;;  %v1529_v38 = vmul.f32 1.442695, %v1485_v40 }
 0x2fa   : > { %3396 = vmatmul.msk.f32.gmra.mxu1 %vm1199_vm1, %v1165_v45  ;;  %1623 = vrot.lane.b32.xlu2 %v3647_v16, %s3932_s12 }
 0x2fb   : > { %3648 = vpow2.f32 %v1529_v38 }
 0x2fc   : > { %v1352_v52 = vpop.f32.mrf.mxu2 }
 0x2fd   : > { %v4785_v62 = vadd.f32 %v4713_v12, %v1352_v52 }
 0x2ff   : > { %1422 = vst.msk [vmem:[%s4720_s11 + $0x68] sm:$0xff] %vm1199_vm1, %v4785_v62  ;;  %v1486_v56 = vmul.f32 0.5, %v4785_v62 }
 0x301   : > { %v3649_v54 = vpop.eup %3648  ;;  %v1531_v50 = vmul.f32 1.442695, %v1486_v56 }
 0x302   : > { %3397 = vmatmul.msk.f32.gmra.mxu1 %vm1199_vm1, %v1166_v33  ;;  %1625 = vrot.lane.b32.xlu0 %v3649_v54, %s3932_s12 }
 0x303   : > { %3650 = vpow2.f32 %v1531_v50 }
 0x304   : > { %v1355_v59 = vpop.f32.mrf.mxu2 }
 0x305   : > { %v4796_v21 = vadd.f32 %v4713_v12, %v1355_v59  ;;  %v1448_v59 = vld [vmem:[%s4877_s20 + $0x38] sm:$0xff] }
 0x307   : > { %1423 = vst.msk [vmem:[%s4720_s11 + $0x70] sm:$0xff] %vm1199_vm1, %v4796_v21  ;;  %v1487_v9 = vmul.f32 0.5, %v4796_v21 }
 0x309   : > { %v3651_v23 = vpop.eup %3650  ;;  %v1533_v27 = vmul.f32 1.442695, %v1487_v9 }
 0x30a   : > { %3398 = vmatmul.msk.f32.gmra.mxu1 %vm1199_vm1, %v1167_v51  ;;  %1627 = vrot.lane.b32.xlu1 %v3651_v23, %s3932_s12 }
 0x30b   : > { %3652 = vpow2.f32 %v1533_v27 }
 0x30c   : > { %v1358_v0 = vpop.f32.mrf.mxu2 }
 0x30d   : > { %v4805_v61 = vadd.f32 %v4713_v12, %v1358_v0 }
 0x30f   : > { %v1134_v10 = vpop.f32.mrf.mxu1  ;;  %1424 = vst.msk [vmem:[%s4720_s11 + $0x78] sm:$0xff] %vm1199_vm1, %v4805_v61  ;;  %v1488_v57 = vmul.f32 0.5, %v4805_v61 }
 0x310   : > { %v1135_v43 = vadd.f32 %v4649_v44, %v1134_v10  ;;  %v1449_v10 = vld [vmem:[%s4877_s20 + $0x40] sm:$0xff] }
 0x311   : > { %v3653_v18 = vpop.eup %3652  ;;  %v1535_v47 = vmul.f32 1.442695, %v1488_v57 }
 0x312   : > { %v1184_v60 = vmax.f32 %v1135_v43, 0.0  ;;  %1629 = vrot.lane.b32.xlu2 %v3653_v18, %s3932_s12 }
 0x313   : > { %3654 = vpow2.f32 %v1535_v47 }
 0x314   : > { %3415 = vmatmul.msk.f32.gmra.mxu2 %vm1199_vm1, %v1184_v60  ;;  %v1361_v26 = vpop.f32.mrf.mxu2 }
 0x315   : > { %v4815_v13 = vadd.f32 %v4713_v12, %v1361_v26 }
 0x317   : > { %v1137_v2 = vpop.f32.mrf.mxu1  ;;  %1425 = vst.msk [vmem:[%s4720_s11 + $0x80] sm:$0xff] %vm1199_vm1, %v4815_v13  ;;  %v1489_v3 = vmul.f32 0.5, %v4815_v13 }
 0x318   : > { %v1138_v4 = vadd.f32 %v4649_v44, %v1137_v2 }
 0x319   : > { %v3655_v20 = vpop.eup %3654  ;;  %v1537_v7 = vmul.f32 1.442695, %v1489_v3 }
 0x31a   : > { %v1185_v24 = vmax.f32 %v1138_v4, 0.0  ;;  %1631 = vrot.lane.b32.xlu0 %v3655_v20, %s3932_s12 }
 0x31b   : > { %3656 = vpow2.f32 %v1537_v7 }
 0x31c   : > { %3416 = vmatmul.msk.f32.gmra.mxu2 %vm1199_vm1, %v1185_v24  ;;  %v1364_v30 = vpop.f32.mrf.mxu2 }
 0x31d   : > { %v4825_v29 = vadd.f32 %v4713_v12, %v1364_v30 }
 0x31f   : > { %v1140_v15 = vpop.f32.mrf.mxu1  ;;  %1426 = vst.msk [vmem:[%s4720_s11 + $0x88] sm:$0xff] %vm1199_vm1, %v4825_v29  ;;  %v1490_v3 = vmul.f32 0.5, %v4825_v29 }
 0x320   : > { %v1141_v1 = vadd.f32 %v4649_v44, %v1140_v15 }
 0x321   : > { %v3657_v19 = vpop.eup %3656  ;;  %v1539_v30 = vmul.f32 1.442695, %v1490_v3 }
 0x322   : > { %v1186_v46 = vmax.f32 %v1141_v1, 0.0  ;;  %1633 = vrot.lane.b32.xlu2 %v3657_v19, %s3932_s12  ;;  %v1451_v1 = vld [vmem:[%s4877_s20 + $0x50] sm:$0xff] }
 0x324   : > { %3417 = vmatmul.msk.f32.gmra.mxu2 %vm1199_vm1, %v1186_v46  ;;  %v1367_v48 = vpop.f32.mrf.mxu2 }
 0x325   : > { %v4834_v55 = vadd.f32 %v4713_v12, %v1367_v48 }
 0x327   : > { %v1143_v41 = vpop.f32.mrf.mxu1  ;;  %1427 = vst.msk [vmem:[%s4720_s11 + $0x90] sm:$0xff] %vm1199_vm1, %v4834_v55  ;;  %v1491_v48 = vmul.f32 0.5, %v4834_v55 }
 0x328   : > { %v1144_v14 = vadd.f32 %v4649_v44, %v1143_v41 }
 0x329   : > { %v1541_v42 = vmul.f32 1.442695, %v1491_v48 }
 0x32a   : > { %v1187_v36 = vmax.f32 %v1144_v14, 0.0 }
 0x32c   : > { %3418 = vmatmul.msk.f32.gmra.mxu2 %vm1199_vm1, %v1187_v36  ;;  %v1370_v8 = vpop.f32.mrf.mxu2 }
 0x32d   : > { %v4842_v6 = vadd.f32 %v4713_v12, %v1370_v8 }
 0x32f   : > { %v1146_v25 = vpop.f32.mrf.mxu1  ;;  %1428 = vst.msk [vmem:[%s4720_s11 + $0x98] sm:$0xff] %vm1199_vm1, %v4842_v6 }
 0x330   : > { %v1147_v58 = vadd.f32 %v4649_v44, %v1146_v25  ;;  %v1452_v25 = vld [vmem:[%s4877_s20 + $0x58] sm:$0xff] }
 0x332   : > { %v1188_v5 = vmax.f32 %v1147_v58, 0.0 }
 0x334   : > { %3419 = vmatmul.msk.f32.gmra.mxu2 %vm1199_vm1, %v1188_v5  ;;  %v1373_v17 = vpop.f32.mrf.mxu2 }
 0x335   : > { %v4850_v49 = vadd.f32 %v4713_v12, %v1373_v17 }
 0x337   : > { %v1149_v53 = vpop.f32.mrf.mxu1  ;;  %1429 = vst.msk [vmem:[%s4720_s11 + $0xa0] sm:$0xff] %vm1199_vm1, %v4850_v49 }
 0x338   : > { %v1150_v28 = vadd.f32 %v4649_v44, %v1149_v53 }
 0x33a   : > { %v1189_v45 = vmax.f32 %v1150_v28, 0.0 }
 0x33c   : > { %3420 = vmatmul.msk.f32.gmra.mxu2 %vm1199_vm1, %v1189_v45  ;;  %v1376_v40 = vpop.f32.mrf.mxu2  ;;  %v1618_v57 = vpop.permute.xlu2 %1617 }
 0x33d   : > { %v4858_v16 = vadd.f32 %v4713_v12, %v1376_v40  ;;  %v1705_v18 = vmul.f32 %v1618_v57, %v1449_v10 }
 0x33f   : > { %v1152_v38 = vpop.f32.mrf.mxu1  ;;  %1430 = vst.msk [vmem:[%s4720_s11 + $0xa8] sm:$0xff] %vm1199_vm1, %v4858_v16  ;;  %v1737_v60 = vadd.f32 %v1705_v18, %v4730_v22 }
 0x340   : > { %v1153_v32 = vadd.f32 %v4649_v44, %v1152_v38 }
 0x342   : > { %v1190_v52 = vmax.f32 %v1153_v32, 0.0 }
 0x344   : > { %3421 = vmatmul.msk.f32.gmra.mxu2 %vm1199_vm1, %v1190_v52  ;;  %v1379_v33 = vpop.f32.mrf.mxu2 }
 0x345   : > { %v4866_v56 = vadd.f32 %v4713_v12, %v1379_v33 }
 0x347   : > { %v1155_v54 = vpop.f32.mrf.mxu1  ;;  %1431 = vst.msk [vmem:[%s4720_s11 + $0xb0] sm:$0xff] %vm1199_vm1, %v4866_v56 }
 0x348   : > { %v1156_v50 = vadd.f32 %v4649_v44, %v1155_v54  ;;  %v1453_v54 = vld [vmem:[%s4877_s20 + $0x60] sm:$0xff] }
 0x34a   : > { %v1191_v11 = vmax.f32 %v1156_v50, 0.0 }
 0x34c   : > { %3422 = vmatmul.msk.f32.gmra.mxu2 %vm1199_vm1, %v1191_v11  ;;  %v1616_v51 = vpop.permute.xlu1 %1615 }
 0x34d   : > { %v1704_v9 = vmul.f32 %v1616_v51, %v1448_v59 }
 0x34f   : > { %v1158_v23 = vpop.f32.mrf.mxu1  ;;  %v1736_v27 = vadd.f32 %v1704_v9, %v4716_v37  ;;  %v1450_v37 = vld [vmem:[%s4877_s20 + $0x48] sm:$0xff] }
 0x350   : > { %v1159_v0 = vadd.f32 %v4649_v44, %v1158_v23 }
 0x351   : > { %3431 = vmatmul.msk.f32.vlgmr.msra.gmra.mxu3 %vm1765_vm2, %v1736_v27 }
 0x352   : > { %v1192_v43 = vmax.f32 %v1159_v0, 0.0 }
 0x354   : > { %3423 = vmatmul.msk.f32.gmra.mxu2 %vm1199_vm1, %v1192_v43  ;;  %v1624_v58 = vpop.permute.xlu2 %1623  ;;  %v1454_v43 = vld [vmem:[%s4877_s20 + $0x68] sm:$0xff] }
 0x355   : > { %v1708_v53 = vmul.f32 %v1624_v58, %v1452_v25  ;;  %v1456_v25 = vld [vmem:[%s4877_s20 + $0x78] sm:$0xff] }
 0x357   : > { %v1313_v47 = vpop.f32.mrf.mxu1  ;;  %v1740_v40 = vadd.f32 %v1708_v53, %v4763_v35  ;;  %v1493_v35 = vmul.f32 0.5, %v4850_v49  ;;  %v1457_v53 = vld [vmem:[%s4877_s20 + $0x80] sm:$0xff] }
 0x358   : > { %v4888_v26 = vadd.f32 %v4713_v12, %v1313_v47 }
 0x359   : > { %3432 = vmatmul.msk.f32.gmra.mxu3 %vm1765_vm2, %v1737_v60  ;;  %v1545_v0 = vmul.f32 1.442695, %v1493_v35 }
 0x35a   : > { %1409 = vst.msk [vmem:[%s4720_s11] sm:$0xff] %vm1199_vm1, %v4888_v26  ;;  %v1473_v44 = vmul.f32 0.5, %v4888_v26 }
 0x35c   : > { %v1505_v2 = vmul.f32 1.442695, %v1473_v44  ;;  %v1620_v4 = vpop.permute.xlu0 %1619 }
 0x35d   : > { %v1706_v20 = vmul.f32 %v1620_v4, %v1450_v37  ;;  %v2014_v37 = vld [vmem:[#allocation2 + $0xe8] sm:$0xff] }
 0x35e   : > { %3658 = vpow2.f32 %v1505_v2  ;;  %2121 = vmatpush.msrb.mxu3 %v2014_v37 }
 0x35f   : > { %v1316_v7 = vpop.f32.mrf.mxu1  ;;  %v1738_v22 = vadd.f32 %v1706_v20, %v4741_v39  ;;  %3660 = vpow2.f32 %v1539_v30 }
 0x360   : > { %v4899_v24 = vadd.f32 %v4713_v12, %v1316_v7  ;;  %v1455_v7 = vld [vmem:[%s4877_s20 + $0x70] sm:$0xff] }
 0x361   : > { %3433 = vmatmul.msk.f32.gmra.mxu3 %vm1765_vm2, %v1738_v22 }
 0x362   : > { %1410 = vst.msk [vmem:[%s4720_s11 + $0x8] sm:$0xff] %vm1199_vm1, %v4899_v24  ;;  %v1474_v15 = vmul.f32 0.5, %v4899_v24 }
 0x364   : > { %v3659_v19 = vpop.eup %3658  ;;  %v1507_v46 = vmul.f32 1.442695, %v1474_v15  ;;  %v1622_v39 = vpop.permute.xlu1 %1621 }
 0x365   : > { %1601 = vrot.lane.b32.xlu1 %v3659_v19, %s3932_s12  ;;  %v1707_v41 = vmul.f32 %v1622_v39, %v1451_v1  ;;  %v3661_v5 = vpop.eup %3660 }
 0x366   : > { %3662 = vpow2.f32 %v1507_v46 }
 0x367   : > { %v1319_v14 = vpop.f32.mrf.mxu1  ;;  %v1739_v36 = vadd.f32 %v1707_v41, %v4752_v34  ;;  %3664 = vpow2.f32 %v1541_v42  ;;  %v1492_v34 = vmul.f32 0.5, %v4842_v6 }
 0x368   : > { %v4911_v8 = vadd.f32 %v4713_v12, %v1319_v14 }
 0x369   : > { %3434 = vmatmul.msk.f32.gmra.mxu3 %vm1765_vm2, %v1739_v36  ;;  %v1543_v32 = vmul.f32 1.442695, %v1492_v34 }
 0x36a   : > { %1411 = vst.msk [vmem:[%s4720_s11 + $0x10] sm:$0xff] %vm1199_vm1, %v4911_v8  ;;  %v1475_v63 = vmul.f32 0.5, %v4911_v8 }
 0x36c   : > { %v3663_v17 = vpop.eup %3662  ;;  %v1509_v28 = vmul.f32 1.442695, %v1475_v63  ;;  %v1630_v22 = vpop.permute.xlu2 %1629 }
 0x36d   : > { %1603 = vrot.lane.b32.xlu0 %v3663_v17, %s3932_s12  ;;  %1635 = vrot.lane.b32.xlu1 %v3661_v5, %s3932_s12  ;;  %v3665_v33 = vpop.eup %3664  ;;  %v1711_v19 = vmul.f32 %v1630_v22, %v1455_v7 }
 0x36e   : > { %3666 = vpow2.f32 %v1509_v28 }
 0x36f   : > { %v1322_v45 = vpop.f32.mrf.mxu1  ;;  %3668 = vpow2.f32 %v1543_v32  ;;  %v1743_v39 = vadd.f32 %v1711_v19, %v4796_v21  ;;  %v2013_v32 = vld [vmem:[#allocation2 + $0xe0] sm:$0xff] }
 0x370   : > { %v4924_v38 = vadd.f32 %v4713_v12, %v1322_v45  ;;  %2122 = vmatpush.msrb.mxu3 %v2013_v32 }
 0x371   : > { %3435 = vmatmul.msk.f32.gmra.mxu3 %vm1765_vm2, %v1740_v40 }
 0x372   : > { %1412 = vst.msk [vmem:[%s4720_s11 + $0x18] sm:$0xff] %vm1199_vm1, %v4924_v38  ;;  %v1476_v52 = vmul.f32 0.5, %v4924_v38 }
 0x374   : > { %v3667_v50 = vpop.eup %3666  ;;  %v1511_v11 = vmul.f32 1.442695, %v1476_v52  ;;  %v1626_v59 = vpop.permute.xlu0 %1625 }
 0x375   : > { %1605 = vrot.lane.b32.xlu2 %v3667_v50, %s3932_s12  ;;  %1637 = vrot.lane.b32.xlu0 %v3665_v33, %s3932_s12  ;;  %v1709_v51 = vmul.f32 %v1626_v59, %v1453_v54  ;;  %v3669_v57 = vpop.eup %3668 }
 0x376   : > { %3670 = vpow2.f32 %v1511_v11 }
 0x377   : > { %v1325_v9 = vpop.f32.mrf.mxu1  ;;  %v1741_v23 = vadd.f32 %v1709_v51, %v4774_v31  ;;  %3672 = vpow2.f32 %v1545_v0  ;;  %v1494_v31 = vmul.f32 0.5, %v4858_v16 }
 0x378   : > { %v4937_v27 = vadd.f32 %v4713_v12, %v1325_v9 }
 0x379   : > { %3436 = vmatmul.msk.f32.gmra.mxu3 %vm1765_vm2, %v1741_v23  ;;  %v1547_v20 = vmul.f32 1.442695, %v1494_v31 }
 0x37a   : > { %1413 = vst.msk [vmem:[%s4720_s11 + $0x20] sm:$0xff] %vm1199_vm1, %v4937_v27  ;;  %v1477_v10 = vmul.f32 0.5, %v4937_v27 }
 0x37c   : > { %v3671_v18 = vpop.eup %3670  ;;  %v1513_v47 = vmul.f32 1.442695, %v1477_v10  ;;  %v1628_v60 = vpop.permute.xlu1 %1627 }
 0x37d   : > { %1639 = vrot.lane.b32.xlu2 %v3669_v57, %s3932_s12  ;;  %1607 = vrot.lane.b32.xlu1 %v3671_v18, %s3932_s12  ;;  %v1710_v44 = vmul.f32 %v1628_v60, %v1454_v43  ;;  %v3673_v15 = vpop.eup %3672  ;;  %v1634_v28 = vpop.permute.xlu2 %1633  ;;  %v2012_v43 = vld [vmem:[#allocation2 + $0xd8] sm:$0xff] }
 0x37e   : > { %3674 = vpow2.f32 %v1513_v47  ;;  %v1713_v40 = vmul.f32 %v1634_v28, %v1457_v53  ;;  %2123 = vmatpush.msrb.mxu3 %v2012_v43 }
 0x37f   : > { %v1328_v2 = vpop.f32.mrf.mxu1  ;;  %v1742_v3 = vadd.f32 %v1710_v44, %v4785_v62  ;;  %3676 = vpow2.f32 %v1547_v20  ;;  %v1495_v62 = vmul.f32 0.5, %v4866_v56 }
 0x380   : > { %v4950_v4 = vadd.f32 %v4713_v12, %v1328_v2  ;;  %v1745_v33 = vadd.f32 %v1713_v40, %v4815_v13 }
 0x381   : > { %3437 = vmatmul.msk.f32.gmra.mxu3 %vm1765_vm2, %v1742_v3  ;;  %v1549_v14 = vmul.f32 1.442695, %v1495_v62 }
 0x382   : > { %1414 = vst.msk [vmem:[%s4720_s11 + $0x28] sm:$0xff] %vm1199_vm1, %v4950_v4  ;;  %v1478_v30 = vmul.f32 0.5, %v4950_v4 }
 0x384   : > { %v3675_v1 = vpop.eup %3674  ;;  %v1515_v46 = vmul.f32 1.442695, %v1478_v30 }
 0x385   : > { %1609 = vrot.lane.b32.xlu0 %v3675_v1, %s3932_s12  ;;  %1641 = vrot.lane.b32.xlu1 %v3673_v15, %s3932_s12  ;;  %v3677_v42 = vpop.eup %3676 }
 0x386   : > { %3678 = vpow2.f32 %v1515_v46 }
 0x387   : > { %v1331_v48 = vpop.f32.mrf.mxu1  ;;  %3680 = vpow2.f32 %v1549_v14 }
 0x388   : > { %v4963_v41 = vadd.f32 %v4713_v12, %v1331_v48  ;;  %v2011_v48 = vld [vmem:[#allocation2 + $0xd0] sm:$0xff] }
 0x389   : > { %3438 = vmatmul.msk.f32.gmra.mxu3 %vm1765_vm2, %v1743_v39 }
 0x38a   : > { %1415 = vst.msk [vmem:[%s4720_s11 + $0x30] sm:$0xff] %vm1199_vm1, %v4963_v41  ;;  %v1479_v36 = vmul.f32 0.5, %v4963_v41  ;;  %2124 = vmatpush.msrb.mxu3 %v2011_v48 }
 0x38c   : > { %v3679_v58 = vpop.eup %3678  ;;  %v1517_v63 = vmul.f32 1.442695, %v1479_v36  ;;  %v1632_v5 = vpop.permute.xlu0 %1631 }
 0x38d   : > { %1611 = vrot.lane.b32.xlu2 %v3679_v58, %s3932_s12  ;;  %1643 = vrot.lane.b32.xlu0 %v3677_v42, %s3932_s12  ;;  %v1712_v21 = vmul.f32 %v1632_v5, %v1456_v25  ;;  %v3681_v34 = vpop.eup %3680 }
 0x38e   : > { %3682 = vpow2.f32 %v1517_v63 }
 0x38f   : > { %v1744_v17 = vadd.f32 %v1712_v21, %v4805_v61  ;;  %v1441_v21 = vld [vmem:[%s4877_s20] sm:$0xff] }
 0x391   : > { %3439 = vmatmul.msk.f32.gmra.mxu3 %vm1765_vm2, %v1744_v17 }
 0x394   : > { %v3683_v45 = vpop.eup %3682 }
 0x395   : > { %1645 = vrot.lane.b32.xlu2 %v3681_v34, %s3932_s12  ;;  %1613 = vrot.lane.b32.xlu1 %v3683_v45, %s3932_s12 }
 0x397   : > { %v1382_v52 = vpop.f32.mrf.mxu2 }
 0x398   : > { %v4980_v54 = vadd.f32 %v4713_v12, %v1382_v52 }
 0x399   : > { %3440 = vmatmul.msk.f32.gmra.mxu3 %vm1765_vm2, %v1745_v33  ;;  %v1458_v33 = vld [vmem:[%s4877_s20 + $0x88] sm:$0xff] }
 0x39a   : > { %1432 = vst.msk [vmem:[%s4720_s11 + $0xb8] sm:$0xff] %vm1199_vm1, %v4980_v54  ;;  %v1496_v61 = vmul.f32 0.5, %v4980_v54 }
 0x39c   : > { %v1551_v50 = vmul.f32 1.442695, %v1496_v61  ;;  %v1442_v61 = vld [vmem:[%s4877_s20 + $0x8] sm:$0xff] }
 0x39e   : > { %3684 = vpow2.f32 %v1551_v50 }
 0x39f   : > { %v1385_v11 = vpop.f32.mrf.mxu2 }
 0x3a0   : > { %v4988_v35 = vadd.f32 %v4713_v12, %v1385_v11 }
 0x3a2   : > { %1433 = vst.msk [vmem:[%s4720_s11 + $0xc0] sm:$0xff] %vm1199_vm1, %v4988_v35  ;;  %v1497_v13 = vmul.f32 0.5, %v4988_v35 }
 0x3a4   : > { %v3685_v59 = vpop.eup %3684  ;;  %v1553_v51 = vmul.f32 1.442695, %v1497_v13 }
 0x3a5   : > { %1647 = vrot.lane.b32.xlu0 %v3685_v59, %s3932_s12 }
 0x3a6   : > { %3686 = vpow2.f32 %v1553_v51 }
 0x3a7   : > { %v1388_v9 = vpop.f32.mrf.mxu2 }
 0x3a8   : > { %v4996_v23 = vadd.f32 %v4713_v12, %v1388_v9  ;;  %v2010_v9 = vld [vmem:[#allocation2 + $0xc8] sm:$0xff] }
 0x3a9   : > { %2125 = vmatpush.msrb.mxu3 %v2010_v9 }
 0x3aa   : > { %1434 = vst.msk [vmem:[%s4720_s11 + $0xc8] sm:$0xff] %vm1199_vm1, %v4996_v23  ;;  %v1498_v0 = vmul.f32 0.5, %v4996_v23 }
 0x3ac   : > { %v3687_v10 = vpop.eup %3686  ;;  %v1555_v57 = vmul.f32 1.442695, %v1498_v0  ;;  %v1443_v0 = vld [vmem:[%s4877_s20 + $0x10] sm:$0xff] }
 0x3ad   : > { %1649 = vrot.lane.b32.xlu1 %v3687_v10, %s3932_s12 }
 0x3ae   : > { %3688 = vpow2.f32 %v1555_v57  ;;  %v1459_v57 = vld [vmem:[%s4877_s20 + $0x90] sm:$0xff] }
 0x3af   : > { %v1391_v18 = vpop.f32.mrf.mxu2 }
 0x3b0   : > { %v5004_v47 = vadd.f32 %v4713_v12, %v1391_v18 }
 0x3b2   : > { %1435 = vst.msk [vmem:[%s4720_s11 + $0xd0] sm:$0xff] %vm1199_vm1, %v5004_v47  ;;  %v1499_v31 = vmul.f32 0.5, %v5004_v47 }
 0x3b4   : > { %v3689_v60 = vpop.eup %3688  ;;  %v1557_v44 = vmul.f32 1.442695, %v1499_v31 }
 0x3b5   : > { %1651 = vrot.lane.b32.xlu2 %v3689_v60, %s3932_s12  ;;  %v1460_v60 = vld [vmem:[%s4877_s20 + $0x98] sm:$0xff] }
 0x3b6   : > { %3690 = vpow2.f32 %v1557_v44 }
 0x3b7   : > { %v1394_v37 = vpop.f32.mrf.mxu2 }
 0x3b8   : > { %v5012_v2 = vadd.f32 %v4713_v12, %v1394_v37  ;;  %v1444_v37 = vld [vmem:[%s4877_s20 + $0x18] sm:$0xff] }
 0x3ba   : > { %1436 = vst.msk [vmem:[%s4720_s11 + $0xd8] sm:$0xff] %vm1199_vm1, %v5012_v2  ;;  %v1500_v3 = vmul.f32 0.5, %v5012_v2 }
 0x3bc   : > { %v3691_v20 = vpop.eup %3690  ;;  %v1559_v7 = vmul.f32 1.442695, %v1500_v3 }
 0x3bd   : > { %1653 = vrot.lane.b32.xlu0 %v3691_v20, %s3932_s12 }
 0x3be   : > { %3692 = vpow2.f32 %v1559_v7 }
 0x3bf   : > { %v1397_v22 = vpop.f32.mrf.mxu2 }
 0x3c0   : > { %v5020_v30 = vadd.f32 %v4713_v12, %v1397_v22 }
 0x3c2   : > { %1437 = vst.msk [vmem:[%s4720_s11 + $0xe0] sm:$0xff] %vm1199_vm1, %v5020_v30  ;;  %v1501_v15 = vmul.f32 0.5, %v5020_v30 }
 0x3c4   : > { %v3693_v1 = vpop.eup %3692  ;;  %v1561_v19 = vmul.f32 1.442695, %v1501_v15 }
 0x3c5   : > { %1655 = vrot.lane.b32.xlu1 %v3693_v1, %s3932_s12 }
 0x3c6   : > { %3694 = vpow2.f32 %v1561_v19 }
 0x3c7   : > { %v1400_v46 = vpop.f32.mrf.mxu2 }
 0x3c8   : > { %v5028_v62 = vadd.f32 %v4713_v12, %v1400_v46 }
 0x3ca   : > { %1438 = vst.msk [vmem:[%s4720_s11 + $0xe8] sm:$0xff] %vm1199_vm1, %v5028_v62  ;;  %v1502_v39 = vmul.f32 0.5, %v5028_v62 }
 0x3cc   : > { %v3695_v14 = vpop.eup %3694  ;;  %v1563_v36 = vmul.f32 1.442695, %v1502_v39 }
 0x3cd   : > { %1657 = vrot.lane.b32.xlu2 %v3695_v14, %s3932_s12 }
 0x3ce   : > { %3696 = vpow2.f32 %v1563_v36 }
 0x3cf   : > { %v1403_v42 = vpop.f32.mrf.mxu2  ;;  %v1606_v13 = vpop.permute.xlu2 %1605 }
 0x3d0   : > { %v5036_v25 = vadd.f32 %v4713_v12, %v1403_v42  ;;  %v1699_v43 = vmul.f32 %v1606_v13, %v1443_v0  ;;  %v1446_v42 = vld [vmem:[%s4877_s20 + $0x28] sm:$0xff] }
 0x3d2   : > { %1439 = vst.msk [vmem:[%s4720_s11 + $0xf0] sm:$0xff] %vm1199_vm1, %v5036_v25  ;;  %v1503_v58 = vmul.f32 0.5, %v5036_v25 }
 0x3d4   : > { %v3697_v63 = vpop.eup %3696  ;;  %v1565_v5 = vmul.f32 1.442695, %v1503_v58 }
 0x3d5   : > { %1659 = vrot.lane.b32.xlu0 %v3697_v63, %s3932_s12 }
 0x3d6   : > { %3698 = vpow2.f32 %v1565_v5 }
 0x3d7   : > { %v1602_v17 = vpop.permute.xlu1 %1601  ;;  %v1406_v28 = vpop.f32.mrf.mxu2 }
 0x3d8   : > { %v1697_v53 = vmul.f32 %v1602_v17, %v1441_v21  ;;  %v5045_v34 = vadd.f32 %v4713_v12, %v1406_v28  ;;  %v1640_v44 = vpop.permute.xlu2 %1639  ;;  %v5086_v28 = vpop.f32.mrf.mxu3 }
 0x3d9   : > { %v1716_v3 = vmul.f32 %v1640_v44, %v1460_v60 }
 0x3da   : > { %v1729_v45 = vadd.f32 %v1697_v53, %v4888_v26  ;;  %1440 = vst.msk [vmem:[%s4720_s11 + $0xf8] sm:$0xff] %vm1199_vm1, %v5045_v34  ;;  %v1504_v40 = vmul.f32 0.5, %v5045_v34  ;;  %v1463_v53 = vld [vmem:[%s4877_s20 + $0xb0] sm:$0xff] }
 0x3db   : > { %v1748_v22 = vadd.f32 %v1716_v3, %v4842_v6  ;;  %v2009_v6 = vld [vmem:[#allocation2 + $0xc0] sm:$0xff] }
 0x3dc   : > { %v3699_v32 = vpop.eup %3698  ;;  %3424 = vmatmul.msk.f32.vlgmr.msrb.gmra.mxu1 %vm1765_vm2, %v1729_v45  ;;  %v1567_v52 = vmul.f32 1.442695, %v1504_v40  ;;  %2126 = vmatpush.msrb.mxu3 %v2009_v6  ;;  %v1447_v45 = vld [vmem:[%s4877_s20 + $0x30] sm:$0xff] }
 0x3dd   : > { %1661 = vrot.lane.b32.xlu1 %v3699_v32, %s3932_s12 }
 0x3de   : > { %3700 = vpow2.f32 %v1567_v52 }
 0x3df   : > { %v1636_v12 = vpop.permute.xlu1 %1635  ;;  %v1604_v50 = vpop.permute.xlu0 %1603 }
 0x3e0   : > { %v1714_v11 = vmul.f32 %v1636_v12, %v1458_v33  ;;  %v1698_v26 = vmul.f32 %v1604_v50, %v1442_v61  ;;  %v5093_v33 = vpop.f32.mrf.mxu3  ;;  %v2008_v61 = vld [vmem:[#allocation2 + $0xb8] sm:$0xff] }
 0x3e1   : > { %2127 = vmatpush.msrb.mxu3 %v2008_v61  ;;  %v1464_v12 = vld [vmem:[%s4877_s20 + $0xb8] sm:$0xff] }
 0x3e2   : > { %v1746_v59 = vadd.f32 %v1714_v11, %v4825_v29  ;;  %v1730_v51 = vadd.f32 %v1698_v26, %v4899_v24  ;;  %v1731_v29 = vadd.f32 %v1699_v43, %v4911_v8  ;;  %v1445_v8 = vld [vmem:[%s4877_s20 + $0x20] sm:$0xff] }
 0x3e4   : > { %3425 = vmatmul.msk.f32.gmra.mxu1 %vm1765_vm2, %v1730_v51  ;;  %3441 = vmatmul.msk.f32.gmra.mxu3 %vm1765_vm2, %v1746_v59  ;;  %v3701_v10 = vpop.eup %3700  ;;  %v2266_v59 = vld [vmem:[#allocation2 + $0x130] sm:$0xff] }
 0x3e5   : > { %1663 = vrot.lane.b32.xlu2 %v3701_v10, %s3932_s12  ;;  %v1466_v10 = vld [vmem:[%s4877_s20 + $0xc8] sm:$0xff] }
 0x3e7   : > { %v1638_v18 = vpop.permute.xlu0 %1637  ;;  %v1612_v39 = vpop.permute.xlu2 %1611 }
 0x3e8   : > { %v1715_v31 = vmul.f32 %v1638_v18, %v1459_v57  ;;  %v1702_v58 = vmul.f32 %v1612_v39, %v1446_v42  ;;  %v5096_v26 = vpop.f32.mrf.mxu3  ;;  %v2007_v18 = vld [vmem:[#allocation2 + $0xb0] sm:$0xff] }
 0x3e9   : > { %2128 = vmatpush.msrb.mxu3 %v2007_v18 }
 0x3ea   : > { %v1747_v24 = vadd.f32 %v1715_v31, %v4834_v55  ;;  %v1461_v55 = vld [vmem:[%s4877_s20 + $0xa0] sm:$0xff]  ;;  %v1734_v21 = vadd.f32 %v1702_v58, %v4950_v4  ;;  %v2265_v31 = vld [vmem:[#allocation2 + $0x128] sm:$0xff] }
 0x3ec   : > { %3426 = vmatmul.msk.f32.gmra.mxu1 %vm1765_vm2, %v1731_v29  ;;  %3442 = vmatmul.msk.f32.gmra.mxu3 %vm1765_vm2, %v1747_v24  ;;  %v1467_v24 = vld [vmem:[%s4877_s20 + $0xd0] sm:$0xff] }
 0x3ef   : > { %v1608_v20 = vpop.permute.xlu1 %1607 }
 0x3f0   : > { %v1700_v7 = vmul.f32 %v1608_v20, %v1444_v37  ;;  %v5102_v0 = vpop.f32.mrf.mxu3  ;;  %v1468_v37 = vld [vmem:[%s4877_s20 + $0xd8] sm:$0xff] }
 0x3f2   : > { %v1732_v15 = vadd.f32 %v1700_v7, %v4924_v38  ;;  %v1462_v38 = vld [vmem:[%s4877_s20 + $0xa8] sm:$0xff] }
 0x3f4   : > { %3427 = vmatmul.msk.f32.gmra.mxu1 %vm1765_vm2, %v1732_v15  ;;  %3443 = vmatmul.msk.f32.gmra.mxu3 %vm1765_vm2, %v1748_v22  ;;  %v1469_v22 = vld [vmem:[%s4877_s20 + $0xe0] sm:$0xff] }
 0x3f7   : > { %v1642_v1 = vpop.permute.xlu1 %1641  ;;  %v1610_v19 = vpop.permute.xlu0 %1609 }
 0x3f8   : > { %v1717_v46 = vmul.f32 %v1642_v1, %v1461_v55  ;;  %v1701_v48 = vmul.f32 %v1610_v19, %v1445_v8  ;;  %v5108_v29 = vpop.f32.mrf.mxu3  ;;  %v2264_v55 = vld [vmem:[#allocation2 + $0x120] sm:$0xff]  ;;  %v1470_v19 = vld [vmem:[%s4877_s20 + $0xe8] sm:$0xff] }
 0x3fa   : > { %v1749_v14 = vadd.f32 %v1717_v46, %v4850_v49  ;;  %v1733_v36 = vadd.f32 %v1701_v48, %v4937_v27  ;;  %v1646_v49 = vpop.permute.xlu2 %1645  ;;  %v2267_v27 = vld [vmem:[#allocation2 + $0x138] sm:$0xff] }
 0x3fb   : > { %2373 = vmatpush.msrb.mxu2 %v2267_v27  ;;  %v1719_v40 = vmul.f32 %v1646_v49, %v1463_v53 }
 0x3fc   : > { %3428 = vmatmul.msk.f32.gmra.mxu1 %vm1765_vm2, %v1733_v36  ;;  %3444 = vmatmul.msk.f32.gmra.mxu3 %vm1765_vm2, %v1749_v14  ;;  %v1471_v14 = vld [vmem:[%s4877_s20 + $0xf0] sm:$0xff] }
 0x3fd   : > { %v1751_v4 = vadd.f32 %v1719_v40, %v4866_v56  ;;  %2374 = vmatpush.msrb.mxu2 %v2266_v59  ;;  %v1465_v56 = vld [vmem:[%s4877_s20 + $0xc0] sm:$0xff] }
 0x3ff   : > { %v1644_v63 = vpop.permute.xlu0 %1643  ;;  %2375 = vmatpush.msrb.mxu2 %v2265_v31 }
 0x400   : > { %v1718_v5 = vmul.f32 %v1644_v63, %v1462_v38  ;;  %v5114_v3 = vpop.f32.mrf.mxu3  ;;  %v1472_v38 = vld [vmem:[%s4877_s20 + $0xf8] sm:$0xff]  ;;  %s3230_s20 = sshll.u32 %s3227_s13, 4  ;;  %s3231_s20 = int_to_ptr.hbm [resolvable:$true] %s3230_s20 }
 0x401   : > { %2376 = vmatpush.msrb.mxu2 %v2264_v55  ;;  %s3874_s8 = sshra.s32 %s3231_s20, 4  ;;  %s3875_s8 = int_to_ptr.hbm [resolvable:$true] %s3874_s8 }
 0x402   : > { %v1750_v17 = vadd.f32 %v1718_v5, %v4858_v16  ;;  %s3876_s9 = scalar_lea.hbm %s3875_s8, 256  ;;  %p3881_p3 = scmp.lt.s32.totalorder %s3875_s8, %s5682_s4 }
 0x403   : > { %p3877_p0 = scmp.ne.s32.totalorder %s3875_s8, %s3876_s9  ;;  %p3882_p4 = scmp.lt.s32.totalorder %s3880_s27, %s3876_s9 }
 0x404   : > { %3429 = vmatmul.msk.f32.gmra.mxu1 %vm1765_vm2, %v1734_v21  ;;  %3445 = vmatmul.msk.f32.gmra.mxu3 %vm1765_vm2, %v1750_v17  ;;  %v5138_v17 = vld [vmem:[%s5681_s3 + $0x5] ss:$0 sm:$0xff] }
 0x405   : > { %v1907_v55 = vadd.f32 %v5138_v17, %v5096_v26  ;;  %p3878_p1 = pnand %p3877_p0, %p3999_p5  ;;  %p3883_p7 = por %p3882_p4, %p3881_p3 }
 0x407   : > { %v1614_v32 = vpop.permute.xlu1 %1613  ;;  %p3879_p2 = pneg %p3878_p1 }
 0x408   : > { %v1703_v52 = vmul.f32 %v1614_v32, %v1447_v45 }
 0x409   : > { %p3884_p8 = pnand %p3883_p7, %p3879_p2 }
 0x40a   : > { %v1735_v16 = vadd.f32 %v1703_v52, %v4963_v41  ;;  %v2262_v52 = vld [vmem:[#allocation2 + $0x110] sm:$0xff] }
 0x40c   : > { %3430 = vmatmul.msk.f32.gmra.mxu1 %vm1765_vm2, %v1735_v16  ;;  %3446 = vmatmul.msk.f32.gmra.mxu3 %vm1765_vm2, %v1751_v4 }
 0x40f   : > { %v1652_v57 = vpop.permute.xlu2 %1651 }
 0x410   : > { %v1722_v43 = vmul.f32 %v1652_v57, %v1466_v10 }
 0x417   : > { %v1648_v50 = vpop.permute.xlu0 %1647 }
 0x418   : > { %v1720_v11 = vmul.f32 %v1648_v50, %v1464_v12 }
 0x41a   : > { %v1752_v13 = vadd.f32 %v1720_v11, %v4980_v54  ;;  %v1754_v54 = vadd.f32 %v1722_v43, %v4996_v23 }
 0x41c   : > { %3447 = vmatmul.msk.f32.gmra.mxu3 %vm1765_vm2, %v1752_v13 }
 0x41f   : > { %v1650_v41 = vpop.permute.xlu1 %1649 }
 0x420   : > { %v1721_v51 = vmul.f32 %v1650_v41, %v1465_v56  ;;  %v2261_v56 = vld [vmem:[#allocation2 + $0x108] sm:$0xff] }
 0x422   : > { %v1753_v9 = vadd.f32 %v1721_v51, %v4988_v35 }
 0x424   : > { %3448 = vmatmul.msk.f32.gmra.mxu3 %vm1765_vm2, %v1753_v9 }
 0x427   : > { %v1658_v15 = vpop.permute.xlu2 %1657 }
 0x428   : > { %v1725_v8 = vmul.f32 %v1658_v15, %v1469_v22  ;;  %v2259_v15 = vld [vmem:[#allocation2 + $0xf8] sm:$0xff] }
 0x42a   : > { %v1757_v1 = vadd.f32 %v1725_v8, %v5020_v30  ;;  %v2263_v30 = vld [vmem:[#allocation2 + $0x118] sm:$0xff] }
 0x42b   : > { %2377 = vmatpush.msrb.mxu2 %v2263_v30 }
 0x42c   : > { %3449 = vmatmul.msk.f32.gmra.mxu3 %vm1765_vm2, %v1754_v54 }
 0x42d   : > { %2378 = vmatpush.msrb.mxu2 %v2262_v52 }
 0x42f   : > { %v1654_v35 = vpop.permute.xlu0 %1653  ;;  %2379 = vmatpush.msrb.mxu2 %v2261_v56 }
 0x430   : > { %v1723_v60 = vmul.f32 %v1654_v35, %v1467_v24  ;;  %v2260_v35 = vld [vmem:[#allocation2 + $0x100] sm:$0xff] }
 0x431   : > { %2380 = vmatpush.msrb.mxu2 %v2260_v35 }
 0x432   : > { %v1755_v44 = vadd.f32 %v1723_v60, %v5004_v47  ;;  %v5119_v47 = vpop.f32.mrf.mxu3  ;;  %v2520_v60 = vld [vmem:[#allocation2 + $0x180] sm:$0xff] }
 0x433   : > { %2627 = vmatpush.msrb.mxu0 %v2520_v60  ;;  %2381 = vmatpush.msrb.mxu2 %v2259_v15 }
 0x434   : > { %3450 = vmatmul.msk.f32.gmra.mxu3 %vm1765_vm2, %v1755_v44  ;;  %v1901_v44 = vadd.f32 %v5138_v17, %v5086_v28  ;;  %v1984_v28 = vmax.f32 %v1907_v55, 0.0 }
 0x437   : > { %v1656_v23 = vpop.permute.xlu1 %1655 }
 0x438   : > { %v1724_v20 = vmul.f32 %v1656_v23, %v1468_v37  ;;  %v1982_v23 = vmax.f32 %v1901_v44, 0.0 }
 0x43a   : > { %v1756_v7 = vadd.f32 %v1724_v20, %v5012_v2  ;;  %v5125_v39 = vpop.f32.mrf.mxu3  ;;  %v1904_v20 = vadd.f32 %v5138_v17, %v5093_v33  ;;  %v1910_v33 = vadd.f32 %v5138_v17, %v5102_v0 }
 0x43b   : > { %v1922_v30 = vadd.f32 %v5138_v17, %v5125_v39 }
 0x43c   : > { %3451 = vmatmul.msk.f32.gmra.mxu3 %vm1765_vm2, %v1756_v7  ;;  %v1983_v22 = vmax.f32 %v1904_v20, 0.0 }
 0x43f   : > { %v1664_v58 = vpop.permute.xlu2 %1663 }
 0x440   : > { %v1728_v5 = vmul.f32 %v1664_v58, %v1472_v38 }
 0x442   : > { %v5132_v63 = vpop.f32.mrf.mxu3 }
 0x444   : > { %3452 = vmatmul.msk.f32.gmra.mxu3 %vm1765_vm2, %v1757_v1  ;;  %v2519_v1 = vld [vmem:[#allocation2 + $0x178] sm:$0xff] }
 0x445   : > { %2628 = vmatpush.msrb.mxu0 %v2519_v1 }
 0x447   : > { %v1660_v46 = vpop.permute.xlu0 %1659 }
 0x448   : > { %v1726_v48 = vmul.f32 %v1660_v46, %v1470_v19  ;;  %v1985_v46 = vmax.f32 %v1910_v33, 0.0 }
 0x44a   : > { %v1758_v2 = vadd.f32 %v1726_v48, %v5028_v62  ;;  %v1760_v62 = vadd.f32 %v1728_v5, %v5045_v34  ;;  %v5142_v53 = vpop.f32.mrf.mxu3  ;;  %v1913_v48 = vadd.f32 %v5138_v17, %v5108_v29  ;;  %v1919_v29 = vadd.f32 %v5138_v17, %v5119_v47 }
 0x44c   : > { %3453 = vmatmul.msk.f32.gmra.mxu3 %vm1765_vm2, %v1758_v2  ;;  %v1986_v26 = vmax.f32 %v1913_v48, 0.0  ;;  %v1988_v58 = vmax.f32 %v1919_v29, 0.0 }
 0x44f   : > { %v1662_v36 = vpop.permute.xlu1 %1661 }
 0x450   : > { %v1727_v6 = vmul.f32 %v1662_v36, %v1471_v14  ;;  %v2258_v14 = vld [vmem:[#allocation2 + $0xf0] sm:$0xff]  ;;  %v1916_v36 = vadd.f32 %v5138_v17, %v5114_v3  ;;  %v1989_v3 = vmax.f32 %v1922_v30, 0.0 }
 0x451   : > { %2382 = vmatpush.msrb.mxu2 %v2258_v14 }
 0x452   : > { %v1759_v42 = vadd.f32 %v1727_v6, %v5036_v25  ;;  %v1987_v0 = vmax.f32 %v1916_v36, 0.0 }
 0x454   : > { %3454 = vmatmul.msk.f32.gmra.mxu3 %vm1765_vm2, %v1759_v42  ;;  %v2518_v42 = vld [vmem:[#allocation2 + $0x170] sm:$0xff] }
 0x455   : > { %2629 = vmatpush.msrb.mxu0 %v2518_v42 }
 0x459   : > { %v1879_v21 = vpop.f32.mrf.mxu1 }
 0x45a   : > { %v1880_v25 = vadd.f32 %v5138_v17, %v1879_v21  ;;  %v2517_v21 = vld [vmem:[#allocation2 + $0x168] sm:$0xff] }
 0x45b   : > { %2630 = vmatpush.msrb.mxu0 %v2517_v21 }
 0x45c   : > { %3455 = vmatmul.msk.f32.gmra.mxu3 %vm1765_vm2, %v1760_v62  ;;  %v1975_v27 = vmax.f32 %v1880_v25, 0.0  ;;  %v1925_v62 = vadd.f32 %v5138_v17, %v5132_v63 }
 0x45e   : > { %v1990_v47 = vmax.f32 %v1925_v62, 0.0 }
 0x461   : > { %v1882_v49 = vpop.f32.mrf.mxu1 }
 0x462   : > { %v1883_v45 = vadd.f32 %v5138_v17, %v1882_v49  ;;  %v1928_v49 = vadd.f32 %v5138_v17, %v5142_v53  ;;  %v2516_v53 = vld [vmem:[#allocation2 + $0x160] sm:$0xff] }
 0x463   : > { %2631 = vmatpush.msrb.mxu0 %v2516_v53 }
 0x464   : > { %3456 = vmatmul.msk.f32.vlgmr.msrb.gmra.mxu3 %vm540_vm0, %v1975_v27  ;;  %v1976_v32 = vmax.f32 %v1883_v45, 0.0  ;;  %v1991_v39 = vmax.f32 %v1928_v49, 0.0  ;;  %v5220_v45 = vld [vmem:[%s5681_s3 + $0x6] ss:$0 sm:$0xff] }
 0x467   : > { %v5146_v40 = vpop.f32.mrf.mxu3 }
 0x468   : > { %v1931_v63 = vadd.f32 %v5138_v17, %v5146_v40 }
 0x469   : > { %v1885_v34 = vpop.f32.mrf.mxu1 }
 0x46a   : > { %v1886_v4 = vadd.f32 %v5138_v17, %v1885_v34  ;;  %v1992_v52 = vmax.f32 %v1931_v63, 0.0 }
 0x46c   : > { %3457 = vmatmul.msk.f32.gmra.mxu3 %vm540_vm0, %v1976_v32  ;;  %v1977_v12 = vmax.f32 %v1886_v4, 0.0 }
 0x46f   : > { %v5150_v16 = vpop.f32.mrf.mxu3 }
 0x471   : > { %v1888_v61 = vpop.f32.mrf.mxu1 }
 0x472   : > { %v1889_v50 = vadd.f32 %v5138_v17, %v1888_v61  ;;  %v1934_v61 = vadd.f32 %v5138_v17, %v5150_v16 }
 0x474   : > { %3458 = vmatmul.msk.f32.gmra.mxu3 %vm540_vm0, %v1977_v12  ;;  %v1978_v59 = vmax.f32 %v1889_v50, 0.0 }
 0x477   : > { %v5154_v11 = vpop.f32.mrf.mxu3 }
 0x479   : > { %v1891_v13 = vpop.f32.mrf.mxu1 }
 0x47a   : > { %v1892_v41 = vadd.f32 %v5138_v17, %v1891_v13  ;;  %v1993_v13 = vmax.f32 %v1934_v61, 0.0 }
 0x47c   : > { %3459 = vmatmul.msk.f32.gmra.mxu3 %vm540_vm0, %v1978_v59  ;;  %v1979_v9 = vmax.f32 %v1892_v41, 0.0  ;;  %v1937_v59 = vadd.f32 %v5138_v17, %v5154_v11 }
 0x47f   : > { %v5158_v10 = vpop.f32.mrf.mxu3 }
 0x480   : > { %v1940_v16 = vadd.f32 %v5138_v17, %v5158_v10 }
 0x481   : > { %v1894_v51 = vpop.f32.mrf.mxu1 }
 0x482   : > { %v1895_v57 = vadd.f32 %v5138_v17, %v1894_v51  ;;  %v1994_v51 = vmax.f32 %v1937_v59, 0.0 }
 0x484   : > { %3460 = vmatmul.msk.f32.gmra.mxu3 %vm540_vm0, %v1979_v9  ;;  %v1980_v43 = vmax.f32 %v1895_v57, 0.0 }
 0x487   : > { %v5163_v18 = vpop.f32.mrf.mxu3 }
 0x488   : > { %v1943_v11 = vadd.f32 %v5138_v17, %v5163_v18  ;;  %v2514_v18 = vld [vmem:[#allocation2 + $0x150] sm:$0xff] }
 0x489   : > { %v1897_v54 = vpop.f32.mrf.mxu1 }
 0x48a   : > { %v1898_v31 = vadd.f32 %v5138_v17, %v1897_v54  ;;  %v1995_v54 = vmax.f32 %v1940_v16, 0.0  ;;  %v1996_v44 = vmax.f32 %v1943_v11, 0.0 }
 0x48c   : > { %3461 = vmatmul.msk.f32.gmra.mxu3 %vm540_vm0, %v1980_v43  ;;  %v1981_v24 = vmax.f32 %v1898_v31, 0.0 }
 0x48f   : > { %v5169_v37 = vpop.f32.mrf.mxu3 }
 0x490   : > { %v1946_v10 = vadd.f32 %v5138_v17, %v5169_v37 }
 0x492   : > { %v1997_v15 = vmax.f32 %v1946_v10, 0.0 }
 0x494   : > { %3462 = vmatmul.msk.f32.gmra.mxu3 %vm540_vm0, %v1981_v24  ;;  %v2515_v24 = vld [vmem:[#allocation2 + $0x158] sm:$0xff] }
 0x495   : > { %2632 = vmatpush.msrb.mxu0 %v2515_v24 }
 0x497   : > { %2633 = vmatpush.msrb.mxu0 %v2514_v18 }
 0x49c   : > { %3463 = vmatmul.msk.f32.gmra.mxu3 %vm540_vm0, %v1982_v23 }
 0x49f   : > { %v5174_v7 = vpop.f32.mrf.mxu3 }
 0x4a4   : > { %3464 = vmatmul.msk.f32.gmra.mxu3 %vm540_vm0, %v1983_v22 }
 0x4a7   : > { %v5179_v8 = vpop.f32.mrf.mxu3 }
 0x4a8   : > { %v1952_v37 = vadd.f32 %v5138_v17, %v5179_v8 }
 0x4aa   : > { %v1999_v36 = vmax.f32 %v1952_v37, 0.0 }
 0x4ac   : > { %3465 = vmatmul.msk.f32.gmra.mxu3 %vm540_vm0, %v1984_v28  ;;  %v1949_v28 = vadd.f32 %v5138_v17, %v5174_v7 }
 0x4af   : > { %v5184_v19 = vpop.f32.mrf.mxu3 }
 0x4b0   : > { %v1955_v7 = vadd.f32 %v5138_v17, %v5184_v19 }
 0x4b4   : > { %3466 = vmatmul.msk.f32.gmra.mxu3 %vm540_vm0, %v1985_v46  ;;  %v1998_v46 = vmax.f32 %v1949_v28, 0.0 }
 0x4b7   : > { %v5189_v2 = vpop.f32.mrf.mxu3 }
 0x4b8   : > { %v1958_v8 = vadd.f32 %v5138_v17, %v5189_v2 }
 0x4bc   : > { %3467 = vmatmul.msk.f32.gmra.mxu3 %vm540_vm0, %v1986_v26 }
 0x4bf   : > { %v5194_v6 = vpop.f32.mrf.mxu3 }
 0x4c0   : > { %v1961_v19 = vadd.f32 %v5138_v17, %v5194_v6 }
 0x4c4   : > { %3468 = vmatmul.msk.f32.gmra.mxu3 %vm540_vm0, %v1987_v0 }
 0x4c7   : > { %v5199_v38 = vpop.f32.mrf.mxu3 }
 0x4c8   : > { %v1964_v2 = vadd.f32 %v5138_v17, %v5199_v38 }
 0x4ca   : > { %v2003_v53 = vmax.f32 %v1964_v2, 0.0 }
 0x4cc   : > { %3469 = vmatmul.msk.f32.gmra.mxu3 %vm540_vm0, %v1988_v58  ;;  %v2000_v58 = vmax.f32 %v1955_v7, 0.0 }
 0x4cf   : > { %v5204_v5 = vpop.f32.mrf.mxu3 }
 0x4d0   : > { %v1967_v6 = vadd.f32 %v5138_v17, %v5204_v5 }
 0x4d4   : > { %3470 = vmatmul.msk.f32.gmra.mxu3 %vm540_vm0, %v1989_v3  ;;  %v2513_v3 = vld [vmem:[#allocation2 + $0x148] sm:$0xff] }
 0x4d5   : > { %2634 = vmatpush.msrb.mxu0 %v2513_v3 }
 0x4d7   : > { %v5209_v25 = vpop.f32.mrf.mxu3 }
 0x4d8   : > { %v1970_v38 = vadd.f32 %v5138_v17, %v5209_v25 }
 0x4dc   : > { %3471 = vmatmul.msk.f32.gmra.mxu3 %vm540_vm0, %v1990_v47  ;;  %v2001_v47 = vmax.f32 %v1958_v8, 0.0 }
 0x4df   : > { %v5214_v27 = vpop.f32.mrf.mxu3 }
 0x4e0   : > { %v1973_v5 = vadd.f32 %v5138_v17, %v5214_v27  ;;  %v5304_v17 = vld [vmem:[%s5681_s3 + $0x7] ss:$0 sm:$0xff] }
 0x4e4   : > { %3472 = vmatmul.msk.f32.gmra.mxu3 %vm540_vm0, %v1991_v39 }
 0x4e7   : > { %v2130_v34 = vpop.f32.mrf.mxu3 }
 0x4e8   : > { %v2131_v32 = vadd.f32 %v5220_v45, %v2130_v34  ;;  %v2002_v34 = vmax.f32 %v1961_v19, 0.0 }
 0x4ea   : > { %v2226_v4 = vmax.f32 %v2131_v32, 0.0 }
 0x4ec   : > { %3473 = vmatmul.msk.f32.gmra.mxu3 %vm540_vm0, %v1992_v52  ;;  %3488 = vmatmul.msk.f32.vlgmr.msrb.gmra.mxu2 %vm2270_vm3, %v2226_v4 }
 0x4ef   : > { %v2133_v12 = vpop.f32.mrf.mxu3 }
 0x4f0   : > { %v2134_v50 = vadd.f32 %v5220_v45, %v2133_v12  ;;  %v2512_v12 = vld [vmem:[#allocation2 + $0x140] sm:$0xff] }
 0x4f1   : > { %2635 = vmatpush.msrb.mxu0 %v2512_v12 }
 0x4f2   : > { %v2227_v40 = vmax.f32 %v2134_v50, 0.0 }
 0x4f4   : > { %3474 = vmatmul.msk.f32.gmra.mxu3 %vm540_vm0, %v1993_v13  ;;  %3489 = vmatmul.msk.f32.gmra.mxu2 %vm2270_vm3, %v2227_v40  ;;  %v2004_v40 = vmax.f32 %v1967_v6, 0.0 }
 0x4f7   : > { %v2136_v56 = vpop.f32.mrf.mxu3 }
 0x4f8   : > { %v2137_v41 = vadd.f32 %v5220_v45, %v2136_v56 }
 0x4fa   : > { %v2228_v9 = vmax.f32 %v2137_v41, 0.0 }
 0x4fc   : > { %3475 = vmatmul.msk.f32.gmra.mxu3 %vm540_vm0, %v1994_v51  ;;  %3490 = vmatmul.msk.f32.gmra.mxu2 %vm2270_vm3, %v2228_v9  ;;  %v2005_v51 = vmax.f32 %v1970_v38, 0.0 }
 0x4ff   : > { %v2139_v57 = vpop.f32.mrf.mxu3 }
 0x500   : > { %v2140_v43 = vadd.f32 %v5220_v45, %v2139_v57 }
 0x502   : > { %v2229_v31 = vmax.f32 %v2140_v43, 0.0  ;;  %v2006_v43 = vmax.f32 %v1973_v5, 0.0 }
 0x504   : > { %3476 = vmatmul.msk.f32.gmra.mxu3 %vm540_vm0, %v1995_v54  ;;  %3491 = vmatmul.msk.f32.gmra.mxu2 %vm2270_vm3, %v2229_v31 }
 0x507   : > { %v2142_v35 = vpop.f32.mrf.mxu3 }
 0x508   : > { %v2143_v60 = vadd.f32 %v5220_v45, %v2142_v35 }
 0x50a   : > { %v2230_v23 = vmax.f32 %v2143_v60, 0.0 }
 0x50c   : > { %3477 = vmatmul.msk.f32.gmra.mxu3 %vm540_vm0, %v1996_v44  ;;  %3492 = vmatmul.msk.f32.gmra.mxu2 %vm2270_vm3, %v2230_v23 }
 0x50f   : > { %v2145_v20 = vpop.f32.mrf.mxu3 }
 0x510   : > { %v2146_v22 = vadd.f32 %v5220_v45, %v2145_v20 }
 0x512   : > { %v2231_v55 = vmax.f32 %v2146_v22, 0.0 }
 0x514   : > { %3478 = vmatmul.msk.f32.gmra.mxu3 %vm540_vm0, %v1997_v15  ;;  %3493 = vmatmul.msk.f32.gmra.mxu2 %vm2270_vm3, %v2231_v55 }
 0x517   : > { %v2148_v1 = vpop.f32.mrf.mxu3 }
 0x518   : > { %v2149_v33 = vadd.f32 %v5220_v45, %v2148_v1 }
 0x51a   : > { %v2232_v48 = vmax.f32 %v2149_v33, 0.0 }
 0x51c   : > { %3479 = vmatmul.msk.f32.gmra.mxu3 %vm540_vm0, %v1998_v46  ;;  %3494 = vmatmul.msk.f32.gmra.mxu2 %vm2270_vm3, %v2232_v48 }
 0x51f   : > { %v2151_v26 = vpop.f32.mrf.mxu3 }
 0x520   : > { %v2152_v14 = vadd.f32 %v5220_v45, %v2151_v26 }
 0x522   : > { %v2233_v0 = vmax.f32 %v2152_v14, 0.0 }
 0x524   : > { %3480 = vmatmul.msk.f32.gmra.mxu3 %vm540_vm0, %v1999_v36  ;;  %3495 = vmatmul.msk.f32.gmra.mxu2 %vm2270_vm3, %v2233_v0 }
 0x527   : > { %v2154_v42 = vpop.f32.mrf.mxu3 }
 0x528   : > { %v2155_v29 = vadd.f32 %v5220_v45, %v2154_v42 }
 0x52a   : > { %v2234_v30 = vmax.f32 %v2155_v29, 0.0 }
 0x52c   : > { %3481 = vmatmul.msk.f32.gmra.mxu3 %vm540_vm0, %v2000_v58  ;;  %3496 = vmatmul.msk.f32.gmra.mxu2 %vm2270_vm3, %v2234_v30 }
 0x52f   : > { %v2157_v21 = vpop.f32.mrf.mxu3 }
 0x530   : > { %v2158_v62 = vadd.f32 %v5220_v45, %v2157_v21 }
 0x532   : > { %v2235_v49 = vmax.f32 %v2158_v62, 0.0 }
 0x534   : > { %3482 = vmatmul.msk.f32.gmra.mxu3 %vm540_vm0, %v2001_v47  ;;  %3497 = vmatmul.msk.f32.gmra.mxu2 %vm2270_vm3, %v2235_v49 }
 0x537   : > { %v2160_v39 = vpop.f32.mrf.mxu3 }
 0x538   : > { %v2161_v63 = vadd.f32 %v5220_v45, %v2160_v39 }
 0x53a   : > { %v2236_v32 = vmax.f32 %v2161_v63, 0.0 }
 0x53c   : > { %3483 = vmatmul.msk.f32.gmra.mxu3 %vm540_vm0, %v2002_v34  ;;  %3498 = vmatmul.msk.f32.gmra.mxu2 %vm2270_vm3, %v2236_v32 }
 0x53f   : > { %v2163_v52 = vpop.f32.mrf.mxu3 }
 0x540   : > { %v2164_v4 = vadd.f32 %v5220_v45, %v2163_v52 }
 0x542   : > { %v2237_v61 = vmax.f32 %v2164_v4, 0.0 }
 0x544   : > { %3484 = vmatmul.msk.f32.gmra.mxu3 %vm540_vm0, %v2003_v53  ;;  %3499 = vmatmul.msk.f32.gmra.mxu2 %vm2270_vm3, %v2237_v61 }
 0x547   : > { %v2166_v50 = vpop.f32.mrf.mxu3 }
 0x548   : > { %v2167_v13 = vadd.f32 %v5220_v45, %v2166_v50 }
 0x54a   : > { %v2238_v59 = vmax.f32 %v2167_v13, 0.0 }
 0x54c   : > { %3485 = vmatmul.msk.f32.gmra.mxu3 %vm540_vm0, %v2004_v40  ;;  %3500 = vmatmul.msk.f32.gmra.mxu2 %vm2270_vm3, %v2238_v59 }
 0x54f   : > { %v2169_v56 = vpop.f32.mrf.mxu3 }
 0x550   : > { %v2170_v41 = vadd.f32 %v5220_v45, %v2169_v56 }
 0x552   : > { %v2239_v9 = vmax.f32 %v2170_v41, 0.0 }
 0x554   : > { %3486 = vmatmul.msk.f32.gmra.mxu3 %vm540_vm0, %v2005_v51  ;;  %3501 = vmatmul.msk.f32.gmra.mxu2 %vm2270_vm3, %v2239_v9 }
 0x557   : > { %v2172_v16 = vpop.f32.mrf.mxu3 }
 0x558   : > { %v2173_v57 = vadd.f32 %v5220_v45, %v2172_v16 }
 0x55a   : > { %v2240_v54 = vmax.f32 %v2173_v57, 0.0 }
 0x55c   : > { %3487 = vmatmul.msk.f32.gmra.mxu3 %vm540_vm0, %v2006_v43  ;;  %3502 = vmatmul.msk.f32.gmra.mxu2 %vm2270_vm3, %v2240_v54 }
 0x55f   : > { %v2175_v25 = vpop.f32.mrf.mxu3 }
 0x560   : > { %v2176_v31 = vadd.f32 %v5220_v45, %v2175_v25 }
 0x562   : > { %v2241_v24 = vmax.f32 %v2176_v31, 0.0 }
 0x564   : > { %3503 = vmatmul.msk.f32.gmra.mxu2 %vm2270_vm3, %v2241_v24 }
 0x567   : > { %v2178_v11 = vpop.f32.mrf.mxu3 }
 0x568   : > { %v2179_v35 = vadd.f32 %v5220_v45, %v2178_v11 }
 0x56a   : > { %v2242_v60 = vmax.f32 %v2179_v35, 0.0 }
 0x56c   : > { %3504 = vmatmul.msk.f32.gmra.mxu2 %vm2270_vm3, %v2242_v60 }
 0x56f   : > { %v2181_v27 = vpop.f32.mrf.mxu3  ;;  %v2384_v44 = vpop.f32.mrf.mxu2 }
 0x570   : > { %v2182_v23 = vadd.f32 %v5220_v45, %v2181_v27  ;;  %v2385_v10 = vadd.f32 %v5304_v17, %v2384_v44 }
 0x572   : > { %v2243_v20 = vmax.f32 %v2182_v23, 0.0  ;;  %v2480_v22 = vmax.f32 %v2385_v10, 0.0 }
 0x574   : > { %3505 = vmatmul.msk.f32.gmra.mxu2 %vm2270_vm3, %v2243_v20  ;;  %3520 = vmatmul.msk.f32.vlgmr.msrb.gmra.mxu0 %vm2523_vm4, %v2480_v22 }
 0x577   : > { %v2184_v15 = vpop.f32.mrf.mxu3  ;;  %v2387_v55 = vpop.f32.mrf.mxu2 }
 0x578   : > { %v2185_v18 = vadd.f32 %v5220_v45, %v2184_v15  ;;  %v2388_v28 = vadd.f32 %v5304_v17, %v2387_v55 }
 0x57a   : > { %v2244_v1 = vmax.f32 %v2185_v18, 0.0  ;;  %v2481_v33 = vmax.f32 %v2388_v28, 0.0 }
 0x57c   : > { %3506 = vmatmul.msk.f32.gmra.mxu2 %vm2270_vm3, %v2244_v1  ;;  %3521 = vmatmul.msk.f32.gmra.mxu0 %vm2523_vm4, %v2481_v33 }
 0x57f   : > { %v2187_v46 = vpop.f32.mrf.mxu3  ;;  %v2390_v48 = vpop.f32.mrf.mxu2 }
 0x580   : > { %v2188_v37 = vadd.f32 %v5220_v45, %v2187_v46  ;;  %v2391_v26 = vadd.f32 %v5304_v17, %v2390_v48 }
 0x582   : > { %v2245_v14 = vmax.f32 %v2188_v37, 0.0  ;;  %v2482_v36 = vmax.f32 %v2391_v26, 0.0 }
 0x584   : > { %3507 = vmatmul.msk.f32.gmra.mxu2 %vm2270_vm3, %v2245_v14  ;;  %3522 = vmatmul.msk.f32.gmra.mxu0 %vm2523_vm4, %v2482_v36 }
 0x587   : > { %v2190_v0 = vpop.f32.mrf.mxu3  ;;  %v2393_v7 = vpop.f32.mrf.mxu2 }
 0x588   : > { %v2191_v42 = vadd.f32 %v5220_v45, %v2190_v0  ;;  %v2394_v29 = vadd.f32 %v5304_v17, %v2393_v7 }
 0x58a   : > { %v2246_v58 = vmax.f32 %v2191_v42, 0.0  ;;  %v2483_v30 = vmax.f32 %v2394_v29, 0.0 }
 0x58c   : > { %3508 = vmatmul.msk.f32.gmra.mxu2 %vm2270_vm3, %v2246_v58  ;;  %3523 = vmatmul.msk.f32.gmra.mxu0 %vm2523_vm4, %v2483_v30 }
 0x58f   : > { %v2193_v3 = vpop.f32.mrf.mxu3  ;;  %v2396_v8 = vpop.f32.mrf.mxu2 }
 0x590   : > { %v2194_v21 = vadd.f32 %v5220_v45, %v2193_v3  ;;  %v2397_v62 = vadd.f32 %v5304_v17, %v2396_v8 }
 0x592   : > { %v2247_v47 = vmax.f32 %v2194_v21, 0.0  ;;  %v2484_v49 = vmax.f32 %v2397_v62, 0.0 }
 0x594   : > { %3509 = vmatmul.msk.f32.gmra.mxu2 %vm2270_vm3, %v2247_v47  ;;  %3524 = vmatmul.msk.f32.gmra.mxu0 %vm2523_vm4, %v2484_v49 }
 0x597   : > { %v2196_v19 = vpop.f32.mrf.mxu3  ;;  %v2399_v39 = vpop.f32.mrf.mxu2 }
 0x598   : > { %v2197_v63 = vadd.f32 %v5220_v45, %v2196_v19  ;;  %v2400_v34 = vadd.f32 %v5304_v17, %v2399_v39  ;;  %v5371_v39 = vld [vmem:[%s5681_s3 + $0x8] ss:$0 sm:$0xff] }
 0x59a   : > { %v2248_v32 = vmax.f32 %v2197_v63, 0.0  ;;  %v2485_v2 = vmax.f32 %v2400_v34, 0.0 }
 0x59c   : > { %3510 = vmatmul.msk.f32.gmra.mxu2 %vm2270_vm3, %v2248_v32  ;;  %3525 = vmatmul.msk.f32.gmra.mxu0 %vm2523_vm4, %v2485_v2 }
 0x59f   : > { %v2199_v52 = vpop.f32.mrf.mxu3  ;;  %v2402_v4 = vpop.f32.mrf.mxu2 }
 0x5a0   : > { %v2200_v53 = vadd.f32 %v5220_v45, %v2199_v52  ;;  %v2403_v61 = vadd.f32 %v5304_v17, %v2402_v4 }
 0x5a2   : > { %v2249_v12 = vmax.f32 %v2200_v53, 0.0  ;;  %v2486_v6 = vmax.f32 %v2403_v61, 0.0 }
 0x5a4   : > { %3511 = vmatmul.msk.f32.gmra.mxu2 %vm2270_vm3, %v2249_v12  ;;  %3526 = vmatmul.msk.f32.gmra.mxu0 %vm2523_vm4, %v2486_v6 }
 0x5a7   : > { %v2202_v50 = vpop.f32.mrf.mxu3  ;;  %v2405_v13 = vpop.f32.mrf.mxu2 }
 0x5a8   : > { %v2203_v40 = vadd.f32 %v5220_v45, %v2202_v50  ;;  %v2406_v59 = vadd.f32 %v5304_v17, %v2405_v13 }
 0x5aa   : > { %v2250_v38 = vmax.f32 %v2203_v40, 0.0  ;;  %v2487_v56 = vmax.f32 %v2406_v59, 0.0 }
 0x5ac   : > { %3512 = vmatmul.msk.f32.gmra.mxu2 %vm2270_vm3, %v2250_v38  ;;  %3527 = vmatmul.msk.f32.gmra.mxu0 %vm2523_vm4, %v2487_v56 }
 0x5af   : > { %v2205_v41 = vpop.f32.mrf.mxu3  ;;  %v2408_v51 = vpop.f32.mrf.mxu2 }
 0x5b0   : > { %v2206_v9 = vadd.f32 %v5220_v45, %v2205_v41  ;;  %v2409_v5 = vadd.f32 %v5304_v17, %v2408_v51 }
 0x5b2   : > { %v2251_v16 = vmax.f32 %v2206_v9, 0.0  ;;  %v2488_v57 = vmax.f32 %v2409_v5, 0.0 }
 0x5b4   : > { %3513 = vmatmul.msk.f32.gmra.mxu2 %vm2270_vm3, %v2251_v16  ;;  %3528 = vmatmul.msk.f32.gmra.mxu0 %vm2523_vm4, %v2488_v57 }
 0x5b7   : > { %v2208_v43 = vpop.f32.mrf.mxu3  ;;  %v2411_v54 = vpop.f32.mrf.mxu2 }
 0x5b8   : > { %v2209_v25 = vadd.f32 %v5220_v45, %v2208_v43  ;;  %v2412_v31 = vadd.f32 %v5304_v17, %v2411_v54 }
 0x5ba   : > { %v2252_v24 = vmax.f32 %v2209_v25, 0.0  ;;  %v2489_v11 = vmax.f32 %v2412_v31, 0.0 }
 0x5bc   : > { %3514 = vmatmul.msk.f32.gmra.mxu2 %vm2270_vm3, %v2252_v24  ;;  %3529 = vmatmul.msk.f32.gmra.mxu0 %vm2523_vm4, %v2489_v11 }
 0x5bf   : > { %v2211_v35 = vpop.f32.mrf.mxu3  ;;  %v2414_v60 = vpop.f32.mrf.mxu2 }
 0x5c0   : > { %v2212_v27 = vadd.f32 %v5220_v45, %v2211_v35  ;;  %v2415_v44 = vadd.f32 %v5304_v17, %v2414_v60 }
 0x5c2   : > { %v2253_v23 = vmax.f32 %v2212_v27, 0.0  ;;  %v2490_v10 = vmax.f32 %v2415_v44, 0.0 }
 0x5c4   : > { %3515 = vmatmul.msk.f32.gmra.mxu2 %vm2270_vm3, %v2253_v23  ;;  %3530 = vmatmul.msk.f32.gmra.mxu0 %vm2523_vm4, %v2490_v10 }
 0x5c7   : > { %v2214_v20 = vpop.f32.mrf.mxu3  ;;  %v2417_v22 = vpop.f32.mrf.mxu2 }
 0x5c8   : > { %v2215_v15 = vadd.f32 %v5220_v45, %v2214_v20  ;;  %v2418_v55 = vadd.f32 %v5304_v17, %v2417_v22 }
 0x5ca   : > { %v2254_v18 = vmax.f32 %v2215_v15, 0.0  ;;  %v2491_v28 = vmax.f32 %v2418_v55, 0.0 }
 0x5cc   : > { %3516 = vmatmul.msk.f32.gmra.mxu2 %vm2270_vm3, %v2254_v18  ;;  %3531 = vmatmul.msk.f32.gmra.mxu0 %vm2523_vm4, %v2491_v28 }
 0x5cf   : > { %v2217_v1 = vpop.f32.mrf.mxu3  ;;  %v2420_v33 = vpop.f32.mrf.mxu2 }
 0x5d0   : > { %v2218_v46 = vadd.f32 %v5220_v45, %v2217_v1  ;;  %v2421_v48 = vadd.f32 %v5304_v17, %v2420_v33 }
 0x5d2   : > { %v2255_v37 = vmax.f32 %v2218_v46, 0.0  ;;  %v2492_v26 = vmax.f32 %v2421_v48, 0.0 }
 0x5d4   : > { %3517 = vmatmul.msk.f32.gmra.mxu2 %vm2270_vm3, %v2255_v37  ;;  %3532 = vmatmul.msk.f32.gmra.mxu0 %vm2523_vm4, %v2492_v26 }
 0x5d7   : > { %v2220_v14 = vpop.f32.mrf.mxu3  ;;  %v2423_v36 = vpop.f32.mrf.mxu2 }
 0x5d8   : > { %v2221_v0 = vadd.f32 %v5220_v45, %v2220_v14  ;;  %v2424_v7 = vadd.f32 %v5304_v17, %v2423_v36 }
 0x5da   : > { %v2256_v42 = vmax.f32 %v2221_v0, 0.0  ;;  %v2493_v29 = vmax.f32 %v2424_v7, 0.0 }
 0x5dc   : > { %3518 = vmatmul.msk.f32.gmra.mxu2 %vm2270_vm3, %v2256_v42  ;;  %3533 = vmatmul.msk.f32.gmra.mxu0 %vm2523_vm4, %v2493_v29 }
 0x5df   : > { %v2223_v58 = vpop.f32.mrf.mxu3  ;;  %v2426_v30 = vpop.f32.mrf.mxu2 }
 0x5e0   : > { %v2224_v3 = vadd.f32 %v5220_v45, %v2223_v58  ;;  %v2427_v8 = vadd.f32 %v5304_v17, %v2426_v30 }
 0x5e2   : > { %v2257_v21 = vmax.f32 %v2224_v3, 0.0  ;;  %v2494_v62 = vmax.f32 %v2427_v8, 0.0 }
 0x5e4   : > { %3519 = vmatmul.msk.f32.gmra.mxu2 %vm2270_vm3, %v2257_v21  ;;  %3534 = vmatmul.msk.f32.gmra.mxu0 %vm2523_vm4, %v2494_v62 }
 0x5e7   : > { %v2429_v47 = vpop.f32.mrf.mxu2 }
 0x5e8   : > { %v2430_v49 = vadd.f32 %v5304_v17, %v2429_v47 }
 0x5ea   : > { %v2495_v19 = vmax.f32 %v2430_v49, 0.0 }
 0x5ec   : > { %3535 = vmatmul.msk.f32.gmra.mxu0 %vm2523_vm4, %v2495_v19 }
 0x5ef   : > { %v2432_v45 = vpop.f32.mrf.mxu2 }
 0x5f0   : > { %v2433_v63 = vadd.f32 %v5304_v17, %v2432_v45 }
 0x5f1   : > { %v2637_v34 = vpop.f32.mrf.mxu0 }
 0x5f2   : > { %v2496_v32 = vmax.f32 %v2433_v63, 0.0  ;;  %v2638_v2 = vadd.f32 %v5371_v39, %v2637_v34 }
 0x5f4   : > { %v2733_v52 = vsub.f32 0.0, %v2638_v2  ;;  %3536 = vmatmul.msk.f32.gmra.mxu0 %vm2523_vm4, %v2496_v32  ;;  %3086 = vrot.lane.b32.xlu2 %v2638_v2, %s3933_s6 }
 0x5f6   : > { %v2765_v4 = vmul.f32 1.442695, %v2733_v52 }
 0x5f7   : > { %v2435_v53 = vpop.f32.mrf.mxu2 }
 0x5f8   : > { %3702 = vpow2.f32 %v2765_v4  ;;  %v2436_v61 = vadd.f32 %v5304_v17, %v2435_v53 }
 0x5f9   : > { %v2640_v12 = vpop.f32.mrf.mxu0 }
 0x5fa   : > { %v2497_v6 = vmax.f32 %v2436_v61, 0.0  ;;  %v2641_v50 = vadd.f32 %v5371_v39, %v2640_v12 }
 0x5fc   : > { %v2734_v13 = vsub.f32 0.0, %v2641_v50  ;;  %3537 = vmatmul.msk.f32.gmra.mxu0 %vm2523_vm4, %v2497_v6  ;;  %3088 = vrot.lane.b32.xlu0 %v2641_v50, %s3933_s6 }
 0x5fe   : > { %v3703_v40 = vpop.eup %3702  ;;  %v2767_v59 = vmul.f32 1.442695, %v2734_v13 }
 0x5ff   : > { %v2829_v38 = vadd.f32 1.0, %v3703_v40  ;;  %v2438_v56 = vpop.f32.mrf.mxu2 }
 0x600   : > { %3704 = vpow2.f32 %v2767_v59  ;;  %v2439_v41 = vadd.f32 %v5304_v17, %v2438_v56 }
 0x601   : > { %3706 = vrcp.f32 %v2829_v38  ;;  %v2643_v51 = vpop.f32.mrf.mxu0 }
 0x602   : > { %v2498_v9 = vmax.f32 %v2439_v41, 0.0  ;;  %v2644_v5 = vadd.f32 %v5371_v39, %v2643_v51 }
 0x604   : > { %v2735_v16 = vsub.f32 0.0, %v2644_v5  ;;  %3538 = vmatmul.msk.f32.gmra.mxu0 %vm2523_vm4, %v2498_v9  ;;  %3090 = vrot.lane.b32.xlu1 %v2644_v5, %s3933_s6 }
 0x606   : > { %v3705_v57 = vpop.eup %3704  ;;  %v2769_v43 = vmul.f32 1.442695, %v2735_v16 }
 0x607   : > { %v3707_v54 = vpop.eup %3706  ;;  %v2830_v25 = vadd.f32 1.0, %v3705_v57  ;;  %v2441_v31 = vpop.f32.mrf.mxu2 }
 0x608   : > { %3708 = vpow2.f32 %v2769_v43  ;;  %v2442_v24 = vadd.f32 %v5304_v17, %v2441_v31  ;;  %2925 = vrot.lane.b32.xlu0 %v3707_v54, %s3933_s6 }
 0x609   : > { %3710 = vrcp.f32 %v2830_v25  ;;  %v2646_v11 = vpop.f32.mrf.mxu0 }
 0x60a   : > { %v2499_v35 = vmax.f32 %v2442_v24, 0.0  ;;  %v2647_v60 = vadd.f32 %v5371_v39, %v2646_v11 }
 0x60c   : > { %v2736_v27 = vsub.f32 0.0, %v2647_v60  ;;  %3539 = vmatmul.msk.f32.gmra.mxu0 %vm2523_vm4, %v2499_v35  ;;  %3092 = vrot.lane.b32.xlu2 %v2647_v60, %s3933_s6 }
 0x60e   : > { %v3709_v44 = vpop.eup %3708  ;;  %v2771_v23 = vmul.f32 1.442695, %v2736_v27 }
 0x60f   : > { %v3711_v10 = vpop.eup %3710  ;;  %v2831_v20 = vadd.f32 1.0, %v3709_v44  ;;  %v2444_v22 = vpop.f32.mrf.mxu2 }
 0x610   : > { %3712 = vpow2.f32 %v2771_v23  ;;  %v2445_v15 = vadd.f32 %v5304_v17, %v2444_v22  ;;  %2927 = vrot.lane.b32.xlu1 %v3711_v10, %s3933_s6 }
 0x611   : > { %3714 = vrcp.f32 %v2831_v20  ;;  %v2649_v55 = vpop.f32.mrf.mxu0 }
 0x612   : > { %v2500_v18 = vmax.f32 %v2445_v15, 0.0  ;;  %v2650_v28 = vadd.f32 %v5371_v39, %v2649_v55 }
 0x614   : > { %v2737_v1 = vsub.f32 0.0, %v2650_v28  ;;  %3540 = vmatmul.msk.f32.gmra.mxu0 %vm2523_vm4, %v2500_v18  ;;  %3094 = vrot.lane.b32.xlu0 %v2650_v28, %s3933_s6 }
 0x616   : > { %v3713_v33 = vpop.eup %3712  ;;  %v2773_v46 = vmul.f32 1.442695, %v2737_v1 }
 0x617   : > { %v3715_v48 = vpop.eup %3714  ;;  %v2832_v37 = vadd.f32 1.0, %v3713_v33  ;;  %v2447_v26 = vpop.f32.mrf.mxu2 }
 0x618   : > { %3716 = vpow2.f32 %v2773_v46  ;;  %v2448_v14 = vadd.f32 %v5304_v17, %v2447_v26  ;;  %2929 = vrot.lane.b32.xlu2 %v3715_v48, %s3933_s6 }
 0x619   : > { %3718 = vrcp.f32 %v2832_v37  ;;  %v2652_v36 = vpop.f32.mrf.mxu0 }
 0x61a   : > { %v2501_v0 = vmax.f32 %v2448_v14, 0.0  ;;  %v2653_v7 = vadd.f32 %v5371_v39, %v2652_v36 }
 0x61c   : > { %v2738_v42 = vsub.f32 0.0, %v2653_v7  ;;  %3541 = vmatmul.msk.f32.gmra.mxu0 %vm2523_vm4, %v2501_v0  ;;  %3096 = vrot.lane.b32.xlu1 %v2653_v7, %s3933_s6 }
 0x61e   : > { %v3717_v29 = vpop.eup %3716  ;;  %v2775_v58 = vmul.f32 1.442695, %v2738_v42 }
 0x61f   : > { %v3719_v30 = vpop.eup %3718  ;;  %v2833_v3 = vadd.f32 1.0, %v3717_v29  ;;  %v2450_v8 = vpop.f32.mrf.mxu2 }
 0x620   : > { %3720 = vpow2.f32 %v2775_v58  ;;  %v2451_v21 = vadd.f32 %v5304_v17, %v2450_v8  ;;  %2931 = vrot.lane.b32.xlu0 %v3719_v30, %s3933_s6 }
 0x621   : > { %3722 = vrcp.f32 %v2833_v3  ;;  %v2655_v62 = vpop.f32.mrf.mxu0 }
 0x622   : > { %v2502_v47 = vmax.f32 %v2451_v21, 0.0  ;;  %v2656_v49 = vadd.f32 %v5371_v39, %v2655_v62 }
 0x624   : > { %v2739_v19 = vsub.f32 0.0, %v2656_v49  ;;  %3542 = vmatmul.msk.f32.gmra.mxu0 %vm2523_vm4, %v2502_v47  ;;  %3098 = vrot.lane.b32.xlu2 %v2656_v49, %s3933_s6 }
 0x626   : > { %v3721_v45 = vpop.eup %3720  ;;  %v2777_v63 = vmul.f32 1.442695, %v2739_v19 }
 0x627   : > { %v3723_v34 = vpop.eup %3722  ;;  %v2834_v32 = vadd.f32 1.0, %v3721_v45  ;;  %v2453_v2 = vpop.f32.mrf.mxu2 }
 0x628   : > { %3724 = vpow2.f32 %v2777_v63  ;;  %v2454_v52 = vadd.f32 %v5304_v17, %v2453_v2  ;;  %2933 = vrot.lane.b32.xlu1 %v3723_v34, %s3933_s6 }
 0x629   : > { %3726 = vrcp.f32 %v2834_v32  ;;  %v2658_v4 = vpop.f32.mrf.mxu0 }
 0x62a   : > { %v2503_v53 = vmax.f32 %v2454_v52, 0.0  ;;  %v2659_v61 = vadd.f32 %v5371_v39, %v2658_v4 }
 0x62c   : > { %v2740_v12 = vsub.f32 0.0, %v2659_v61  ;;  %3543 = vmatmul.msk.f32.gmra.mxu0 %vm2523_vm4, %v2503_v53  ;;  %3100 = vrot.lane.b32.xlu0 %v2659_v61, %s3933_s6 }
 0x62e   : > { %v3725_v6 = vpop.eup %3724  ;;  %v2779_v50 = vmul.f32 1.442695, %v2740_v12 }
 0x62f   : > { %v3727_v13 = vpop.eup %3726  ;;  %v2835_v40 = vadd.f32 1.0, %v3725_v6  ;;  %v2456_v59 = vpop.f32.mrf.mxu2 }
 0x630   : > { %3728 = vpow2.f32 %v2779_v50  ;;  %v2457_v38 = vadd.f32 %v5304_v17, %v2456_v59  ;;  %2935 = vrot.lane.b32.xlu2 %v3727_v13, %s3933_s6 }
 0x631   : > { %3730 = vrcp.f32 %v2835_v40  ;;  %v2661_v56 = vpop.f32.mrf.mxu0 }
 0x632   : > { %v2504_v41 = vmax.f32 %v2457_v38, 0.0  ;;  %v2662_v51 = vadd.f32 %v5371_v39, %v2661_v56 }
 0x634   : > { %v2741_v9 = vsub.f32 0.0, %v2662_v51  ;;  %3544 = vmatmul.msk.f32.gmra.mxu0 %vm2523_vm4, %v2504_v41  ;;  %3102 = vrot.lane.b32.xlu1 %v2662_v51, %s3933_s6 }
 0x636   : > { %v3729_v5 = vpop.eup %3728  ;;  %v2781_v16 = vmul.f32 1.442695, %v2741_v9 }
 0x637   : > { %v3731_v57 = vpop.eup %3730  ;;  %v2836_v43 = vadd.f32 1.0, %v3729_v5  ;;  %v2459_v54 = vpop.f32.mrf.mxu2 }
 0x638   : > { %3732 = vpow2.f32 %v2781_v16  ;;  %v2460_v25 = vadd.f32 %v5304_v17, %v2459_v54  ;;  %2937 = vrot.lane.b32.xlu0 %v3731_v57, %s3933_s6 }
 0x639   : > { %3734 = vrcp.f32 %v2836_v43  ;;  %v2664_v31 = vpop.f32.mrf.mxu0 }
 0x63a   : > { %v2505_v24 = vmax.f32 %v2460_v25, 0.0  ;;  %v2665_v11 = vadd.f32 %v5371_v39, %v2664_v31 }
 0x63c   : > { %v2742_v35 = vsub.f32 0.0, %v2665_v11  ;;  %3545 = vmatmul.msk.f32.gmra.mxu0 %vm2523_vm4, %v2505_v24  ;;  %3104 = vrot.lane.b32.xlu2 %v2665_v11, %s3933_s6 }
 0x63e   : > { %v3733_v60 = vpop.eup %3732  ;;  %v2783_v27 = vmul.f32 1.442695, %v2742_v35 }
 0x63f   : > { %v3735_v44 = vpop.eup %3734  ;;  %v2837_v23 = vadd.f32 1.0, %v3733_v60  ;;  %v2462_v10 = vpop.f32.mrf.mxu2 }
 0x640   : > { %3736 = vpow2.f32 %v2783_v27  ;;  %v2463_v20 = vadd.f32 %v5304_v17, %v2462_v10  ;;  %2939 = vrot.lane.b32.xlu1 %v3735_v44, %s3933_s6 }
 0x641   : > { %3738 = vrcp.f32 %v2837_v23  ;;  %v2667_v22 = vpop.f32.mrf.mxu0 }
 0x642   : > { %v2506_v15 = vmax.f32 %v2463_v20, 0.0  ;;  %v2668_v55 = vadd.f32 %v5371_v39, %v2667_v22 }
 0x644   : > { %v2743_v18 = vsub.f32 0.0, %v2668_v55  ;;  %3546 = vmatmul.msk.f32.gmra.mxu0 %vm2523_vm4, %v2506_v15  ;;  %3106 = vrot.lane.b32.xlu0 %v2668_v55, %s3933_s6 }
 0x646   : > { %v3737_v28 = vpop.eup %3736  ;;  %v2785_v1 = vmul.f32 1.442695, %v2743_v18 }
 0x647   : > { %v3739_v33 = vpop.eup %3738  ;;  %v2838_v46 = vadd.f32 1.0, %v3737_v28  ;;  %v2465_v48 = vpop.f32.mrf.mxu2 }
 0x648   : > { %3740 = vpow2.f32 %v2785_v1  ;;  %v2466_v37 = vadd.f32 %v5304_v17, %v2465_v48  ;;  %2941 = vrot.lane.b32.xlu2 %v3739_v33, %s3933_s6 }
 0x649   : > { %3742 = vrcp.f32 %v2838_v46  ;;  %v2670_v26 = vpop.f32.mrf.mxu0 }
 0x64a   : > { %v2507_v14 = vmax.f32 %v2466_v37, 0.0  ;;  %v2671_v36 = vadd.f32 %v5371_v39, %v2670_v26 }
 0x64c   : > { %v2744_v0 = vsub.f32 0.0, %v2671_v36  ;;  %3547 = vmatmul.msk.f32.gmra.mxu0 %vm2523_vm4, %v2507_v14  ;;  %3108 = vrot.lane.b32.xlu1 %v2671_v36, %s3933_s6 }
 0x64e   : > { %v3741_v7 = vpop.eup %3740  ;;  %v2787_v42 = vmul.f32 1.442695, %v2744_v0  ;;  %v3087_v38 = vpop.permute.xlu2 %3086 }
 0x64f   : > { %v3743_v29 = vpop.eup %3742  ;;  %v2839_v58 = vadd.f32 1.0, %v3741_v7  ;;  %v2468_v30 = vpop.f32.mrf.mxu2 }
 0x650   : > { %3744 = vpow2.f32 %v2787_v42  ;;  %v2469_v3 = vadd.f32 %v5304_v17, %v2468_v30  ;;  %2943 = vrot.lane.b32.xlu0 %v3743_v29, %s3933_s6 }
 0x651   : > { %3746 = vrcp.f32 %v2839_v58  ;;  %v2673_v8 = vpop.f32.mrf.mxu0 }
 0x652   : > { %v2508_v21 = vmax.f32 %v2469_v3, 0.0  ;;  %v2674_v62 = vadd.f32 %v5371_v39, %v2673_v8 }
 0x654   : > { %v2745_v47 = vsub.f32 0.0, %v2674_v62  ;;  %3548 = vmatmul.msk.f32.gmra.mxu0 %vm2523_vm4, %v2508_v21  ;;  %3110 = vrot.lane.b32.xlu2 %v2674_v62, %s3933_s6 }
 0x656   : > { %v3745_v49 = vpop.eup %3744  ;;  %v2789_v19 = vmul.f32 1.442695, %v2745_v47 }
 0x657   : > { %v3747_v45 = vpop.eup %3746  ;;  %v2840_v63 = vadd.f32 1.0, %v3745_v49  ;;  %v2471_v34 = vpop.f32.mrf.mxu2 }
 0x658   : > { %3748 = vpow2.f32 %v2789_v19  ;;  %v2472_v32 = vadd.f32 %v5304_v17, %v2471_v34  ;;  %2945 = vrot.lane.b32.xlu1 %v3747_v45, %s3933_s6 }
 0x659   : > { %3750 = vrcp.f32 %v2840_v63  ;;  %v2676_v2 = vpop.f32.mrf.mxu0 }
 0x65a   : > { %v2509_v52 = vmax.f32 %v2472_v32, 0.0  ;;  %v2677_v4 = vadd.f32 %v5371_v39, %v2676_v2 }
 0x65c   : > { %v2746_v53 = vsub.f32 0.0, %v2677_v4  ;;  %3112 = vrot.lane.b32.xlu0 %v2677_v4, %s3933_s6  ;;  %3549 = vmatmul.msk.f32.gmra.mxu0 %vm2523_vm4, %v2509_v52 }
 0x65e   : > { %v3749_v61 = vpop.eup %3748  ;;  %v2791_v12 = vmul.f32 1.442695, %v2746_v53 }
 0x65f   : > { %v3751_v6 = vpop.eup %3750  ;;  %v2841_v50 = vadd.f32 1.0, %v3749_v61  ;;  %v2474_v13 = vpop.f32.mrf.mxu2 }
 0x660   : > { %3752 = vpow2.f32 %v2791_v12  ;;  %v2475_v40 = vadd.f32 %v5304_v17, %v2474_v13  ;;  %2947 = vrot.lane.b32.xlu2 %v3751_v6, %s3933_s6 }
 0x661   : > { %3754 = vrcp.f32 %v2841_v50  ;;  %v2679_v59 = vpop.f32.mrf.mxu0 }
 0x662   : > { %v2510_v56 = vmax.f32 %v2475_v40, 0.0  ;;  %v2680_v41 = vadd.f32 %v5371_v39, %v2679_v59 }
 0x664   : > { %v2747_v51 = vsub.f32 0.0, %v2680_v41  ;;  %3114 = vrot.lane.b32.xlu1 %v2680_v41, %s3933_s6  ;;  %3550 = vmatmul.msk.f32.gmra.mxu0 %vm2523_vm4, %v2510_v56 }
 0x666   : > { %v3753_v9 = vpop.eup %3752  ;;  %v2793_v5 = vmul.f32 1.442695, %v2747_v51  ;;  %v5447_v31 = vpop.permute.xlu2 %3092 }
 0x667   : > { %v3755_v16 = vpop.eup %3754  ;;  %v2842_v57 = vadd.f32 1.0, %v3753_v9  ;;  %v2477_v43 = vpop.f32.mrf.mxu2 }
 0x668   : > { %3756 = vpow2.f32 %v2793_v5  ;;  %v2478_v54 = vadd.f32 %v5304_v17, %v2477_v43  ;;  %2949 = vrot.lane.b32.xlu0 %v3755_v16, %s3933_s6 }
 0x669   : > { %3758 = vrcp.f32 %v2842_v57  ;;  %v2682_v25 = vpop.f32.mrf.mxu0 }
 0x66a   : > { %v2511_v24 = vmax.f32 %v2478_v54, 0.0  ;;  %v2683_v11 = vadd.f32 %v5371_v39, %v2682_v25 }
 0x66c   : > { %v2748_v35 = vsub.f32 0.0, %v2683_v11  ;;  %3116 = vrot.lane.b32.xlu2 %v2683_v11, %s3933_s6  ;;  %3551 = vmatmul.msk.f32.gmra.mxu0 %vm2523_vm4, %v2511_v24 }
 0x66e   : > { %v3757_v60 = vpop.eup %3756  ;;  %v2795_v27 = vmul.f32 1.442695, %v2748_v35  ;;  %v3089_v10 = vpop.permute.xlu0 %3088 }
 0x66f   : > { %v3759_v44 = vpop.eup %3758  ;;  %v2843_v23 = vadd.f32 1.0, %v3757_v60 }
 0x670   : > { %3760 = vpow2.f32 %v2795_v27  ;;  %2951 = vrot.lane.b32.xlu1 %v3759_v44, %s3933_s6 }
 0x671   : > { %3762 = vrcp.f32 %v2843_v23  ;;  %v2685_v17 = vpop.f32.mrf.mxu0 }
 0x672   : > { %v2686_v20 = vadd.f32 %v5371_v39, %v2685_v17  ;;  %v2930_v22 = vpop.permute.xlu2 %2929 }
 0x673   : > { %3024 = vst.msk [vmem:[%s4720_s11 + $0x10] sm:$0xff] %vm3021_vm5, %v2930_v22 }
 0x674   : > { %v2749_v15 = vsub.f32 0.0, %v2686_v20  ;;  %3118 = vrot.lane.b32.xlu0 %v2686_v20, %s3933_s6 }
 0x676   : > { %v3761_v55 = vpop.eup %3760  ;;  %v2797_v18 = vmul.f32 1.442695, %v2749_v15  ;;  %v3091_v28 = vpop.permute.xlu1 %3090 }
 0x677   : > { %v3763_v1 = vpop.eup %3762  ;;  %v2844_v33 = vadd.f32 1.0, %v3761_v55  ;;  %3185 = vst.msk [vmem:[%s4720_s11 + $0x10] sm:$0xff] %vm3182_vm6, %v3091_v28 }
 0x678   : > { %3764 = vpow2.f32 %v2797_v18  ;;  %2953 = vrot.lane.b32.xlu2 %v3763_v1, %s3933_s6 }
 0x679   : > { %3766 = vrcp.f32 %v2844_v33  ;;  %v2688_v46 = vpop.f32.mrf.mxu0 }
 0x67a   : > { %v2689_v48 = vadd.f32 %v5371_v39, %v2688_v46  ;;  %v2926_v37 = vpop.permute.xlu0 %2925 }
 0x67b   : > { %3022 = vst.msk [vmem:[%s4720_s11] sm:$0xff] %vm3021_vm5, %v2926_v37 }
 0x67c   : > { %v2750_v26 = vsub.f32 0.0, %v2689_v48  ;;  %3183 = vst.msk [vmem:[%s4720_s11] sm:$0xff] %vm3182_vm6, %v3087_v38  ;;  %3120 = vrot.lane.b32.xlu1 %v2689_v48, %s3933_s6 }
 0x67e   : > { %v3765_v14 = vpop.eup %3764  ;;  %v2799_v36 = vmul.f32 1.442695, %v2750_v26  ;;  %v5467_v29 = vpop.permute.xlu2 %3098 }
 0x67f   : > { %v3767_v0 = vpop.eup %3766  ;;  %v2845_v7 = vadd.f32 1.0, %v3765_v14 }
 0x680   : > { %3768 = vpow2.f32 %v2799_v36  ;;  %2955 = vrot.lane.b32.xlu0 %v3767_v0, %s3933_s6 }
 0x681   : > { %3770 = vrcp.f32 %v2845_v7  ;;  %v2691_v42 = vpop.f32.mrf.mxu0 }
 0x682   : > { %v2692_v58 = vadd.f32 %v5371_v39, %v2691_v42  ;;  %v2928_v30 = vpop.permute.xlu1 %2927 }
 0x683   : > { %3023 = vst.msk [vmem:[%s4720_s11 + $0x8] sm:$0xff] %vm3021_vm5, %v2928_v30 }
 0x684   : > { %v2751_v3 = vsub.f32 0.0, %v2692_v58  ;;  %3184 = vst.msk [vmem:[%s4720_s11 + $0x8] sm:$0xff] %vm3182_vm6, %v3089_v10  ;;  %3122 = vrot.lane.b32.xlu2 %v2692_v58, %s3933_s6 }
 0x686   : > { %v3769_v8 = vpop.eup %3768  ;;  %v2801_v21 = vmul.f32 1.442695, %v2751_v3  ;;  %v3095_v19 = vpop.permute.xlu0 %3094 }
 0x687   : > { %v3771_v62 = vpop.eup %3770  ;;  %v2846_v47 = vadd.f32 1.0, %v3769_v8 }
 0x688   : > { %3772 = vpow2.f32 %v2801_v21  ;;  %2957 = vrot.lane.b32.xlu1 %v3771_v62, %s3933_s6 }
 0x689   : > { %3774 = vrcp.f32 %v2846_v47  ;;  %v2694_v49 = vpop.f32.mrf.mxu0 }
 0x68a   : > { %v2695_v45 = vadd.f32 %v5371_v39, %v2694_v49  ;;  %v2936_v63 = vpop.permute.xlu2 %2935 }
 0x68b   : > { %3027 = vst.msk [vmem:[%s4720_s11 + $0x28] sm:$0xff] %vm3021_vm5, %v2936_v63 }
 0x68c   : > { %v2752_v34 = vsub.f32 0.0, %v2695_v45  ;;  %3124 = vrot.lane.b32.xlu0 %v2695_v45, %s3933_s6 }
 0x68e   : > { %v3773_v32 = vpop.eup %3772  ;;  %v2803_v2 = vmul.f32 1.442695, %v2752_v34  ;;  %v3097_v52 = vpop.permute.xlu1 %3096 }
 0x68f   : > { %v3775_v4 = vpop.eup %3774  ;;  %v2847_v53 = vadd.f32 1.0, %v3773_v32  ;;  %3188 = vst.msk [vmem:[%s4720_s11 + $0x28] sm:$0xff] %vm3182_vm6, %v3097_v52 }
 0x690   : > { %3776 = vpow2.f32 %v2803_v2  ;;  %2959 = vrot.lane.b32.xlu2 %v3775_v4, %s3933_s6 }
 0x691   : > { %3778 = vrcp.f32 %v2847_v53  ;;  %v2697_v61 = vpop.f32.mrf.mxu0 }
 0x692   : > { %v2698_v12 = vadd.f32 %v5371_v39, %v2697_v61  ;;  %v2932_v6 = vpop.permute.xlu0 %2931 }
 0x693   : > { %3025 = vst.msk [vmem:[%s4720_s11 + $0x18] sm:$0xff] %vm3021_vm5, %v2932_v6 }
 0x694   : > { %v2753_v50 = vsub.f32 0.0, %v2698_v12  ;;  %3186 = vst.msk [vmem:[%s4720_s11 + $0x18] sm:$0xff] %vm3182_vm6, %v5447_v31  ;;  %3126 = vrot.lane.b32.xlu1 %v2698_v12, %s3933_s6 }
 0x696   : > { %v3777_v13 = vpop.eup %3776  ;;  %v2805_v40 = vmul.f32 1.442695, %v2753_v50  ;;  %v5491_v41 = vpop.permute.xlu2 %3104 }
 0x697   : > { %v3779_v59 = vpop.eup %3778  ;;  %v2848_v38 = vadd.f32 1.0, %v3777_v13 }
 0x698   : > { %3780 = vpow2.f32 %v2805_v40  ;;  %2961 = vrot.lane.b32.xlu0 %v3779_v59, %s3933_s6 }
 0x699   : > { %3782 = vrcp.f32 %v2848_v38  ;;  %v2700_v56 = vpop.f32.mrf.mxu0 }
 0x69a   : > { %v2701_v51 = vadd.f32 %v5371_v39, %v2700_v56  ;;  %v2934_v9 = vpop.permute.xlu1 %2933 }
 0x69b   : > { %3026 = vst.msk [vmem:[%s4720_s11 + $0x20] sm:$0xff] %vm3021_vm5, %v2934_v9 }
 0x69c   : > { %v2754_v5 = vsub.f32 0.0, %v2701_v51  ;;  %3187 = vst.msk [vmem:[%s4720_s11 + $0x20] sm:$0xff] %vm3182_vm6, %v3095_v19  ;;  %3128 = vrot.lane.b32.xlu2 %v2701_v51, %s3933_s6 }
 0x69e   : > { %v3781_v16 = vpop.eup %3780  ;;  %v2807_v57 = vmul.f32 1.442695, %v2754_v5  ;;  %v3101_v31 = vpop.permute.xlu0 %3100 }
 0x69f   : > { %v3783_v43 = vpop.eup %3782  ;;  %v2849_v54 = vadd.f32 1.0, %v3781_v16 }
 0x6a0   : > { %3784 = vpow2.f32 %v2807_v57  ;;  %2963 = vrot.lane.b32.xlu1 %v3783_v43, %s3933_s6 }
 0x6a1   : > { %3786 = vrcp.f32 %v2849_v54  ;;  %v2703_v25 = vpop.f32.mrf.mxu0 }
 0x6a2   : > { %v2704_v24 = vadd.f32 %v5371_v39, %v2703_v25  ;;  %v2942_v11 = vpop.permute.xlu2 %2941 }
 0x6a3   : > { %3030 = vst.msk [vmem:[%s4720_s11 + $0x40] sm:$0xff] %vm3021_vm5, %v2942_v11 }
 0x6a4   : > { %v2755_v35 = vsub.f32 0.0, %v2704_v24  ;;  %3130 = vrot.lane.b32.xlu0 %v2704_v24, %s3933_s6 }
 0x6a6   : > { %v3785_v60 = vpop.eup %3784  ;;  %v2809_v27 = vmul.f32 1.442695, %v2755_v35  ;;  %v3103_v44 = vpop.permute.xlu1 %3102 }
 0x6a7   : > { %v3787_v23 = vpop.eup %3786  ;;  %v2850_v17 = vadd.f32 1.0, %v3785_v60  ;;  %3191 = vst.msk [vmem:[%s4720_s11 + $0x40] sm:$0xff] %vm3182_vm6, %v3103_v44 }
 0x6a8   : > { %3788 = vpow2.f32 %v2809_v27  ;;  %2965 = vrot.lane.b32.xlu2 %v3787_v23, %s3933_s6 }
 0x6a9   : > { %3790 = vrcp.f32 %v2850_v17  ;;  %v2706_v10 = vpop.f32.mrf.mxu0 }
 0x6aa   : > { %v2707_v20 = vadd.f32 %v5371_v39, %v2706_v10  ;;  %v2938_v22 = vpop.permute.xlu0 %2937 }
 0x6ab   : > { %3028 = vst.msk [vmem:[%s4720_s11 + $0x30] sm:$0xff] %vm3021_vm5, %v2938_v22 }
 0x6ac   : > { %v2756_v15 = vsub.f32 0.0, %v2707_v20  ;;  %3189 = vst.msk [vmem:[%s4720_s11 + $0x30] sm:$0xff] %vm3182_vm6, %v5467_v29  ;;  %3132 = vrot.lane.b32.xlu1 %v2707_v20, %s3933_s6 }
 0x6ae   : > { %v3789_v55 = vpop.eup %3788  ;;  %v2811_v18 = vmul.f32 1.442695, %v2756_v15  ;;  %v5515_v46 = vpop.permute.xlu2 %3110 }
 0x6af   : > { %v3791_v28 = vpop.eup %3790  ;;  %v2851_v1 = vadd.f32 1.0, %v3789_v55 }
 0x6b0   : > { %3792 = vpow2.f32 %v2811_v18  ;;  %2967 = vrot.lane.b32.xlu0 %v3791_v28, %s3933_s6 }
 0x6b1   : > { %3794 = vrcp.f32 %v2851_v1  ;;  %v2709_v33 = vpop.f32.mrf.mxu0 }
 0x6b2   : > { %v2710_v48 = vadd.f32 %v5371_v39, %v2709_v33  ;;  %v2940_v37 = vpop.permute.xlu1 %2939 }
 0x6b3   : > { %3029 = vst.msk [vmem:[%s4720_s11 + $0x38] sm:$0xff] %vm3021_vm5, %v2940_v37 }
 0x6b4   : > { %v2757_v26 = vsub.f32 0.0, %v2710_v48  ;;  %3190 = vst.msk [vmem:[%s4720_s11 + $0x38] sm:$0xff] %vm3182_vm6, %v3101_v31  ;;  %3134 = vrot.lane.b32.xlu2 %v2710_v48, %s3933_s6 }
 0x6b6   : > { %v3793_v14 = vpop.eup %3792  ;;  %v2813_v36 = vmul.f32 1.442695, %v2757_v26  ;;  %v3107_v29 = vpop.permute.xlu0 %3106 }
 0x6b7   : > { %v3795_v0 = vpop.eup %3794  ;;  %v2852_v7 = vadd.f32 1.0, %v3793_v14 }
 0x6b8   : > { %3796 = vpow2.f32 %v2813_v36  ;;  %2969 = vrot.lane.b32.xlu1 %v3795_v0, %s3933_s6 }
 0x6b9   : > { %3798 = vrcp.f32 %v2852_v7  ;;  %v2712_v42 = vpop.f32.mrf.mxu0 }
 0x6ba   : > { %v2713_v58 = vadd.f32 %v5371_v39, %v2712_v42  ;;  %v2948_v30 = vpop.permute.xlu2 %2947 }
 0x6bb   : > { %3033 = vst.msk [vmem:[%s4720_s11 + $0x58] sm:$0xff] %vm3021_vm5, %v2948_v30 }
 0x6bc   : > { %v2758_v3 = vsub.f32 0.0, %v2713_v58  ;;  %3136 = vrot.lane.b32.xlu0 %v2713_v58, %s3933_s6 }
 0x6be   : > { %v3797_v8 = vpop.eup %3796  ;;  %v2815_v21 = vmul.f32 1.442695, %v2758_v3  ;;  %v3109_v62 = vpop.permute.xlu1 %3108 }
 0x6bf   : > { %v3799_v47 = vpop.eup %3798  ;;  %v2853_v49 = vadd.f32 1.0, %v3797_v8  ;;  %3194 = vst.msk [vmem:[%s4720_s11 + $0x58] sm:$0xff] %vm3182_vm6, %v3109_v62 }
 0x6c0   : > { %3800 = vpow2.f32 %v2815_v21  ;;  %2971 = vrot.lane.b32.xlu2 %v3799_v47, %s3933_s6 }
 0x6c1   : > { %3802 = vrcp.f32 %v2853_v49  ;;  %v2715_v19 = vpop.f32.mrf.mxu0 }
 0x6c2   : > { %v2716_v45 = vadd.f32 %v5371_v39, %v2715_v19  ;;  %v2944_v63 = vpop.permute.xlu0 %2943 }
 0x6c3   : > { %3031 = vst.msk [vmem:[%s4720_s11 + $0x48] sm:$0xff] %vm3021_vm5, %v2944_v63 }
 0x6c4   : > { %v2759_v34 = vsub.f32 0.0, %v2716_v45  ;;  %3192 = vst.msk [vmem:[%s4720_s11 + $0x48] sm:$0xff] %vm3182_vm6, %v5491_v41  ;;  %3138 = vrot.lane.b32.xlu1 %v2716_v45, %s3933_s6 }
 0x6c6   : > { %v3801_v32 = vpop.eup %3800  ;;  %v2817_v2 = vmul.f32 1.442695, %v2759_v34  ;;  %v5539_v61 = vpop.permute.xlu2 %3116 }
 0x6c7   : > { %v3803_v52 = vpop.eup %3802  ;;  %v2854_v4 = vadd.f32 1.0, %v3801_v32 }
 0x6c8   : > { %3804 = vpow2.f32 %v2817_v2  ;;  %2973 = vrot.lane.b32.xlu0 %v3803_v52, %s3933_s6 }
 0x6c9   : > { %3806 = vrcp.f32 %v2854_v4  ;;  %v2718_v53 = vpop.f32.mrf.mxu0 }
 0x6ca   : > { %v2719_v12 = vadd.f32 %v5371_v39, %v2718_v53  ;;  %v2946_v6 = vpop.permute.xlu1 %2945 }
 0x6cb   : > { %3032 = vst.msk [vmem:[%s4720_s11 + $0x50] sm:$0xff] %vm3021_vm5, %v2946_v6 }
 0x6cc   : > { %v2760_v50 = vsub.f32 0.0, %v2719_v12  ;;  %3193 = vst.msk [vmem:[%s4720_s11 + $0x50] sm:$0xff] %vm3182_vm6, %v3107_v29  ;;  %3140 = vrot.lane.b32.xlu2 %v2719_v12, %s3933_s6 }
 0x6ce   : > { %v3805_v13 = vpop.eup %3804  ;;  %v2819_v40 = vmul.f32 1.442695, %v2760_v50  ;;  %v3113_v41 = vpop.permute.xlu0 %3112 }
 0x6cf   : > { %v3807_v59 = vpop.eup %3806  ;;  %v2855_v38 = vadd.f32 1.0, %v3805_v13 }
 0x6d0   : > { %3808 = vpow2.f32 %v2819_v40  ;;  %2975 = vrot.lane.b32.xlu1 %v3807_v59, %s3933_s6 }
 0x6d1   : > { %3810 = vrcp.f32 %v2855_v38  ;;  %v2721_v56 = vpop.f32.mrf.mxu0 }
 0x6d2   : > { %v2722_v51 = vadd.f32 %v5371_v39, %v2721_v56  ;;  %v2954_v9 = vpop.permute.xlu2 %2953 }
 0x6d3   : > { %3036 = vst.msk [vmem:[%s4720_s11 + $0x70] sm:$0xff] %vm3021_vm5, %v2954_v9 }
 0x6d4   : > { %v2761_v5 = vsub.f32 0.0, %v2722_v51  ;;  %3142 = vrot.lane.b32.xlu0 %v2722_v51, %s3933_s6 }
 0x6d6   : > { %v3809_v16 = vpop.eup %3808  ;;  %v2821_v57 = vmul.f32 1.442695, %v2761_v5  ;;  %v3115_v43 = vpop.permute.xlu1 %3114 }
 0x6d7   : > { %v3811_v54 = vpop.eup %3810  ;;  %v2856_v25 = vadd.f32 1.0, %v3809_v16  ;;  %3197 = vst.msk [vmem:[%s4720_s11 + $0x70] sm:$0xff] %vm3182_vm6, %v3115_v43 }
 0x6d8   : > { %3812 = vpow2.f32 %v2821_v57  ;;  %2977 = vrot.lane.b32.xlu2 %v3811_v54, %s3933_s6 }
 0x6d9   : > { %3814 = vrcp.f32 %v2856_v25  ;;  %v2724_v31 = vpop.f32.mrf.mxu0 }
 0x6da   : > { %v2725_v24 = vadd.f32 %v5371_v39, %v2724_v31  ;;  %v2950_v11 = vpop.permute.xlu0 %2949 }
 0x6db   : > { %3034 = vst.msk [vmem:[%s4720_s11 + $0x60] sm:$0xff] %vm3021_vm5, %v2950_v11 }
 0x6dc   : > { %v2762_v35 = vsub.f32 0.0, %v2725_v24  ;;  %3195 = vst.msk [vmem:[%s4720_s11 + $0x60] sm:$0xff] %vm3182_vm6, %v5515_v46 }
 0x6de   : > { %v3813_v60 = vpop.eup %3812  ;;  %v2823_v27 = vmul.f32 1.442695, %v2762_v35  ;;  %v3123_v10 = vpop.permute.xlu2 %3122 }
 0x6df   : > { %v3815_v44 = vpop.eup %3814  ;;  %v2857_v23 = vadd.f32 1.0, %v3813_v60 }
 0x6e0   : > { %3816 = vpow2.f32 %v2823_v27  ;;  %2979 = vrot.lane.b32.xlu0 %v3815_v44, %s3933_s6 }
 0x6e1   : > { %3818 = vrcp.f32 %v2857_v23  ;;  %v2727_v17 = vpop.f32.mrf.mxu0 }
 0x6e2   : > { %v2728_v20 = vadd.f32 %v5371_v39, %v2727_v17  ;;  %v2952_v22 = vpop.permute.xlu1 %2951 }
 0x6e3   : > { %3035 = vst.msk [vmem:[%s4720_s11 + $0x68] sm:$0xff] %vm3021_vm5, %v2952_v22 }
 0x6e4   : > { %v2763_v15 = vsub.f32 0.0, %v2728_v20  ;;  %3196 = vst.msk [vmem:[%s4720_s11 + $0x68] sm:$0xff] %vm3182_vm6, %v3113_v41 }
 0x6e6   : > { %v3817_v55 = vpop.eup %3816  ;;  %v2825_v18 = vmul.f32 1.442695, %v2763_v15  ;;  %v3119_v46 = vpop.permute.xlu0 %3118 }
 0x6e7   : > { %v3819_v28 = vpop.eup %3818  ;;  %v2858_v1 = vadd.f32 1.0, %v3817_v55 }
 0x6e8   : > { %3820 = vpow2.f32 %v2825_v18  ;;  %2981 = vrot.lane.b32.xlu1 %v3819_v28, %s3933_s6 }
 0x6e9   : > { %3822 = vrcp.f32 %v2858_v1  ;;  %v2730_v33 = vpop.f32.mrf.mxu0 }
 0x6ea   : > { %v2731_v48 = vadd.f32 %v5371_v39, %v2730_v33  ;;  %v2960_v37 = vpop.permute.xlu2 %2959 }
 0x6eb   : > { %3039 = vst.msk [vmem:[%s4720_s11 + $0x88] sm:$0xff] %vm3021_vm5, %v2960_v37 }
 0x6ec   : > { %v2764_v26 = vsub.f32 0.0, %v2731_v48 }
 0x6ee   : > { %v3821_v14 = vpop.eup %3820  ;;  %v2827_v36 = vmul.f32 1.442695, %v2764_v26  ;;  %v3121_v0 = vpop.permute.xlu1 %3120 }
 0x6ef   : > { %v3823_v7 = vpop.eup %3822  ;;  %v2859_v42 = vadd.f32 1.0, %v3821_v14  ;;  %3200 = vst.msk [vmem:[%s4720_s11 + $0x88] sm:$0xff] %vm3182_vm6, %v3121_v0 }
 0x6f0   : > { %3824 = vpow2.f32 %v2827_v36  ;;  %2983 = vrot.lane.b32.xlu2 %v3823_v7, %s3933_s6 }
 0x6f1   : > { %3826 = vrcp.f32 %v2859_v42 }
 0x6f2   : > { %v2956_v29 = vpop.permute.xlu0 %2955 }
 0x6f3   : > { %3037 = vst.msk [vmem:[%s4720_s11 + $0x78] sm:$0xff] %vm3021_vm5, %v2956_v29 }
 0x6f4   : > { %3198 = vst.msk [vmem:[%s4720_s11 + $0x78] sm:$0xff] %vm3182_vm6, %v5539_v61 }
 0x6f6   : > { %v3825_v39 = vpop.eup %3824  ;;  %v3129_v3 = vpop.permute.xlu2 %3128 }
 0x6f7   : > { %v3827_v58 = vpop.eup %3826  ;;  %v2860_v30 = vadd.f32 1.0, %v3825_v39 }
 0x6f8   : > { %2985 = vrot.lane.b32.xlu0 %v3827_v58, %s3933_s6  ;;  %3146 = vrot.lane.b32.xlu2 %v2728_v20, %s3933_s6 }
 0x6f9   : > { %3828 = vrcp.f32 %v2860_v30 }
 0x6fa   : > { %v2958_v8 = vpop.permute.xlu1 %2957 }
 0x6fb   : > { %3038 = vst.msk [vmem:[%s4720_s11 + $0x80] sm:$0xff] %vm3021_vm5, %v2958_v8 }
 0x6fc   : > { %3199 = vst.msk [vmem:[%s4720_s11 + $0x80] sm:$0xff] %vm3182_vm6, %v3119_v46 }
 0x6fe   : > { %v3125_v62 = vpop.permute.xlu0 %3124 }
 0x6ff   : > { %v3829_v21 = vpop.eup %3828 }
 0x700   : > { %2987 = vrot.lane.b32.xlu1 %v3829_v21, %s3933_s6  ;;  %3148 = vrot.lane.b32.xlu0 %v2731_v48, %s3933_s6 }
 0x702   : > { %v2966_v47 = vpop.permute.xlu2 %2965 }
 0x703   : > { %3042 = vst.msk [vmem:[%s4720_s11 + $0xa0] sm:$0xff] %vm3021_vm5, %v2966_v47 }
 0x706   : > { %v3127_v49 = vpop.permute.xlu1 %3126 }
 0x707   : > { %3203 = vst.msk [vmem:[%s4720_s11 + $0xa0] sm:$0xff] %vm3182_vm6, %v3127_v49 }
 0x708   : > { %3144 = vrot.lane.b32.xlu1 %v2725_v24, %s3933_s6 }
 0x70a   : > { %v2962_v19 = vpop.permute.xlu0 %2961 }
 0x70b   : > { %3040 = vst.msk [vmem:[%s4720_s11 + $0x90] sm:$0xff] %vm3021_vm5, %v2962_v19 }
 0x70c   : > { %3201 = vst.msk [vmem:[%s4720_s11 + $0x90] sm:$0xff] %vm3182_vm6, %v3123_v10 }
 0x70e   : > { %v3135_v45 = vpop.permute.xlu2 %3134 }
 0x712   : > { %v2964_v63 = vpop.permute.xlu1 %2963 }
 0x713   : > { %3041 = vst.msk [vmem:[%s4720_s11 + $0x98] sm:$0xff] %vm3021_vm5, %v2964_v63 }
 0x714   : > { %3202 = vst.msk [vmem:[%s4720_s11 + $0x98] sm:$0xff] %vm3182_vm6, %v3125_v62 }
 0x716   : > { %v3131_v34 = vpop.permute.xlu0 %3130 }
 0x71a   : > { %v2972_v32 = vpop.permute.xlu2 %2971 }
 0x71b   : > { %3045 = vst.msk [vmem:[%s4720_s11 + $0xb8] sm:$0xff] %vm3021_vm5, %v2972_v32 }
 0x71e   : > { %v3133_v2 = vpop.permute.xlu1 %3132 }
 0x71f   : > { %3206 = vst.msk [vmem:[%s4720_s11 + $0xb8] sm:$0xff] %vm3182_vm6, %v3133_v2 }
 0x722   : > { %v2968_v52 = vpop.permute.xlu0 %2967 }
 0x723   : > { %3043 = vst.msk [vmem:[%s4720_s11 + $0xa8] sm:$0xff] %vm3021_vm5, %v2968_v52 }
 0x724   : > { %3204 = vst.msk [vmem:[%s4720_s11 + $0xa8] sm:$0xff] %vm3182_vm6, %v3129_v3 }
 0x726   : > { %v3141_v4 = vpop.permute.xlu2 %3140 }
 0x72a   : > { %v2970_v53 = vpop.permute.xlu1 %2969 }
 0x72b   : > { %3044 = vst.msk [vmem:[%s4720_s11 + $0xb0] sm:$0xff] %vm3021_vm5, %v2970_v53 }
 0x72c   : > { %3205 = vst.msk [vmem:[%s4720_s11 + $0xb0] sm:$0xff] %vm3182_vm6, %v3131_v34 }
 0x72e   : > { %v3137_v61 = vpop.permute.xlu0 %3136 }
 0x732   : > { %v2978_v12 = vpop.permute.xlu2 %2977 }
 0x733   : > { %3048 = vst.msk [vmem:[%s4720_s11 + $0xd0] sm:$0xff] %vm3021_vm5, %v2978_v12 }
 0x736   : > { %v3139_v6 = vpop.permute.xlu1 %3138 }
 0x737   : > { %3209 = vst.msk [vmem:[%s4720_s11 + $0xd0] sm:$0xff] %vm3182_vm6, %v3139_v6 }
 0x73a   : > { %v2974_v50 = vpop.permute.xlu0 %2973 }
 0x73b   : > { %3046 = vst.msk [vmem:[%s4720_s11 + $0xc0] sm:$0xff] %vm3021_vm5, %v2974_v50 }
 0x73c   : > { %3207 = vst.msk [vmem:[%s4720_s11 + $0xc0] sm:$0xff] %vm3182_vm6, %v3135_v45 }
 0x742   : > { %v2976_v13 = vpop.permute.xlu1 %2975 }
 0x743   : > { %3047 = vst.msk [vmem:[%s4720_s11 + $0xc8] sm:$0xff] %vm3021_vm5, %v2976_v13 }
 0x744   : > { %3208 = vst.msk [vmem:[%s4720_s11 + $0xc8] sm:$0xff] %vm3182_vm6, %v3137_v61 }
 0x746   : > { %v3143_v40 = vpop.permute.xlu0 %3142 }
 0x74a   : > { %v2984_v59 = vpop.permute.xlu2 %2983 }
 0x74b   : > { %3051 = vst.msk [vmem:[%s4720_s11 + $0xe8] sm:$0xff] %vm3021_vm5, %v2984_v59 }
 0x752   : > { %v2980_v38 = vpop.permute.xlu0 %2979  ;;  %v3147_v51 = vpop.permute.xlu2 %3146 }
 0x753   : > { %3049 = vst.msk [vmem:[%s4720_s11 + $0xd8] sm:$0xff] %vm3021_vm5, %v2980_v38 }
 0x754   : > { %3210 = vst.msk [vmem:[%s4720_s11 + $0xd8] sm:$0xff] %vm3182_vm6, %v3141_v4 }
 0x75a   : > { %v2982_v56 = vpop.permute.xlu1 %2981 }
 0x75b   : > { %3050 = vst.msk [vmem:[%s4720_s11 + $0xe0] sm:$0xff] %vm3021_vm5, %v2982_v56 }
 0x75c   : > { %3211 = vst.msk [vmem:[%s4720_s11 + $0xe0] sm:$0xff] %vm3182_vm6, %v3143_v40 }
 0x76a   : > { %v2986_v41 = vpop.permute.xlu0 %2985 }
 0x76b   : > { %3052 = vst.msk [vmem:[%s4720_s11 + $0xf0] sm:$0xff] %vm3021_vm5, %v2986_v41 }
 0x76c   : > { %3213 = vst.msk [vmem:[%s4720_s11 + $0xf0] sm:$0xff] %vm3182_vm6, %v3147_v51 }
 0x772   : > { %v2988_v9 = vpop.permute.xlu1 %2987  ;;  %v3149_v5 = vpop.permute.xlu0 %3148 }
 0x773   : > { %3053 = vst.msk [vmem:[%s4720_s11 + $0xf8] sm:$0xff] %vm3021_vm5, %v2988_v9 }
 0x774   : > { %3214 = vst.msk [vmem:[%s4720_s11 + $0xf8] sm:$0xff] %vm3182_vm6, %v3149_v5 }
 0x77a   : > { %v3145_v16 = vpop.permute.xlu1 %3144 }
 0x77b   : > { %3212 = vst.msk [vmem:[%s4720_s11 + $0xe8] sm:$0xff] %vm3182_vm6, %v3145_v16 }
 0x77c   : > { %3887 = shalt.err (!%p3884_p8)
}
 0x77d   : > { %s3934_s5 = smov 128   ;;  %s3935_s11 = smov 8  }
 0x77e   : > { %3576 = dma.vmem_to_hbm [thread:$0]  (%p3999_p5), %s3229_s14, 4096, %s3231_s20, %s3216_s19, %s3934_s5, %s3934_s5, %s3935_s11  }
 0x77f PF: > { %p3588_p9 = scmp.ge.s32.totalorder %s3926_s18, 2  ;;  %s3245_s30 = sand.u32 1, %s3914_s15  }
 0x780   : > { %s3246_s6 = scalar_lea.sflag [#allocation4], %s3245_s30 }
 0x781   : > { %p3583_p10 = pnand %p3588_p9, %p4003_p6 }
 0x783   : > { %p3584_p11 = pneg %p3583_p10 }
 0x785   : > { %3909 = dma.done.wait (%p3584_p11), %s3246_s6, 4096  }
 0x786   : > { %3911 = vsyncadd (%p3584_p11), %s3246_s6, 4294963200  ;;  %p15_p12 = scmp.ge.s32.totalorder %s3986_s21, 4   ;;  %s5685_s15 = smov %s3918_s16 }
 0x787   : > { %s5686_s16 = smov %s3922_s17  ;;  %s5687_s17 = smov %s3997_s24 }
 0x788   : > { %s5688_s18 = smov %s3986_s21  ;;  %17 = sbr.rel (!%p15_p12) target bundleno = 4 (0x4), region = 79 }
 0x78d   :  { %3252 = vsyncpa [#allocation3], 1 }
 0x78e   :  { %3254 = vsyncpa [#allocation3 + $0x1], 1 }
 0x78f   :  { %3255 = vsyncpa [#allocation4], 1 }
 0x790   :  { %3257 = vsyncpa [#allocation4 + $0x1], 1 }

</bundles_post_ra>
